<compile_context>
chip_gen: v5e
topology: v5e:2x2
jax: 0.10.0
libtpu: 0.0.40
codegen_flags: <defaults>
</compile_context>

<pallas_src>
import jax
import jax.numpy as jnp
from jax.experimental import pallas as pl
from jax.experimental.pallas import tpu as pltpu

_MAX_TILE_B = 128  # images per grid step (8-aligned); per-step VMEM is ~MBs


def _round_up(x, m):
    return ((x + m - 1) // m) * m


def _pick_tile(n):
    """8-aligned batch tile with at least 2 grid steps (v7x megacore)."""
    tile = max(8, min(_MAX_TILE_B, _round_up(-(-n // 2), 8)))
    n_pad = _round_up(n, tile)
    if n_pad // tile < 2:
        n_pad += tile
    return tile, n_pad


# --------------------------------------------------------------------------
# The fused kernel
# --------------------------------------------------------------------------
def _convnet_kernel(x4_ref, t1_ref, b1_ref, t2_ref, b2_ref,
                    fw1_ref, fb1_ref, fw2_ref, fb2_ref, fw3_ref, fb3_ref,
                    o_ref):
    f32 = jnp.float32
    B = o_ref.shape[0]  # images in this grid step

    # ---- conv1 (5x5, 1->6) + bias + ReLU + 2x2 maxpool ---------------------
    # xs[s][a*B + b, :] = image row (4a + s) of image b, s = 0..7.
    xs = [x4_ref[s % 4, s // 4:s // 4 + 6, :, :].reshape(6 * B, 28)
          for s in range(8)]

    def conv1_acc(o, dc):
        # conv1 output rows i = 4a + o, columns j = 2*rr + dc.
        r = jnp.dot(xs[o], t1_ref[dc, 0], preferred_element_type=f32)
        for kh in range(1, 5):
            r = r + jnp.dot(xs[o + kh], t1_ref[dc, kh],
                            preferred_element_type=f32)
        return r

    b1t = b1_ref[...]
    h1 = []  # h1[u][a*B + b, rr*6 + c] = pooled conv1 at (b, c, pp=2a+u, rr)
    for u in range(2):
        m = jnp.maximum(
            jnp.maximum(conv1_acc(2 * u, 0), conv1_acc(2 * u + 1, 0)),
            jnp.maximum(conv1_acc(2 * u, 1), conv1_acc(2 * u + 1, 1)))
        h1.append(jnp.maximum(m + b1t, 0.0))

    # ---- conv2 (5x5, 6->16) + bias + ReLU + 2x2 maxpool ---------------------
    # h1s[s][p2*B + b, :] = h1 rows at pp = 2*p2 + s   (s = dr2 + kh2, 0..5)
    h1s = [h1[s % 2][(s // 2) * B:(s // 2 + 4) * B, :] for s in range(6)]

    def conv2_acc(dr, dc):
        r = jnp.dot(h1s[dr], t2_ref[dc, 0], preferred_element_type=f32)
        for kh in range(1, 5):
            r = r + jnp.dot(h1s[dr + kh], t2_ref[dc, kh],
                            preferred_element_type=f32)
        return r

    b2t = b2_ref[...]
    m2 = jnp.maximum(jnp.maximum(conv2_acc(0, 0), conv2_acc(1, 0)),
                     jnp.maximum(conv2_acc(0, 1), conv2_acc(1, 1)))
    h2 = jnp.maximum(m2 + b2t, 0.0)  # (4B, 64): row p2*B+b, col r2*16+co

    # ---- fc1 + ReLU (PyTorch flatten order folded into the weight) ----------
    f = jnp.dot(h2[0:B, :], fw1_ref[0], preferred_element_type=f32)
    for p2 in range(1, 4):
        f = f + jnp.dot(h2[p2 * B:(p2 + 1) * B, :], fw1_ref[p2],
                        preferred_element_type=f32)
    f = jnp.maximum(f + fb1_ref[...], 0.0)

    # ---- fc2 + ReLU, fc3 (output zero-padded to 128 lanes) ------------------
    f = jnp.maximum(
        jnp.dot(f, fw2_ref[...], preferred_element_type=f32) + fb2_ref[...],
        0.0)
    o_ref[...] = (jnp.dot(f, fw3_ref[...], preferred_element_type=f32)
                  + fb3_ref[...]).astype(o_ref.dtype)


# --------------------------------------------------------------------------
# Wrapper-side one-time weight / input preparation (pure relayout, tiny)
# --------------------------------------------------------------------------
def _prepare_constants(p):
    f32 = jnp.float32

    # conv1: Toeplitz band matrices over (width -> pooled-width x out-chan),
    # one per (pool column phase dc, kernel row kh).
    w1 = jnp.transpose(p["w1"][:, 0], (1, 2, 0)).astype(f32)       # (kh,kw,c)
    t1 = jnp.zeros((2, 5, 28, 12 * 6), f32)
    for dc in range(2):
        for kw in range(5):
            for rr in range(12):
                j = 2 * rr + dc + kw
                t1 = t1.at[dc, :, j, rr * 6:(rr + 1) * 6].set(w1[:, kw, :])
    b1t = jnp.tile(p["b1"].astype(f32), 12).reshape(1, 72)

    # conv2: same trick over (width*in-chan -> pooled-width*out-chan).
    w2 = jnp.transpose(p["w2"], (2, 3, 1, 0)).astype(f32)      # (kh,kw,ci,co)
    t2 = jnp.zeros((2, 5, 12 * 6, 4 * 16), f32)
    for dc in range(2):
        for kw in range(5):
            for r2 in range(4):
                rr = 2 * r2 + dc + kw
                t2 = t2.at[dc, :, rr * 6:(rr + 1) * 6,
                           r2 * 16:(r2 + 1) * 16].set(w2[:, kw, :, :])
    b2t = jnp.tile(p["b2"].astype(f32), 4).reshape(1, 64)

    # fc1: fold the PyTorch (C, H, W) flatten into a row permutation of the
    # weight, split per pooled row p2 so the kernel needs no reshape.
    perm = [[co * 16 + p2 * 4 + r2 for r2 in range(4) for co in range(16)]
            for p2 in range(4)]
    fw1_r = p["fw1"].astype(f32)[jnp.array(perm, jnp.int32)]       # (4,64,120)
    fb1 = p["fb1"].astype(f32).reshape(1, 120)

    fw2 = p["fw2"].astype(f32)
    fb2 = p["fb2"].astype(f32).reshape(1, 84)

    # fc3: pad 10 logits to 128 lanes for an unmasked, lane-dense store.
    fw3 = jnp.zeros((84, 128), f32).at[:, :10].set(p["fw3"].astype(f32))
    fb3 = jnp.zeros((1, 128), f32).at[0, :10].set(p["fb3"].astype(f32))

    return (t1, b1t, t2, b2t, fw1_r, fb1, fw2, fb2, fw3, fb3)


def _prep_input(x_nchw, n_pad):
    x = x_nchw[:, 0].astype(jnp.float32)                           # (N,28,28)
    n = x.shape[0]
    if n_pad > n:
        x = jnp.pad(x, ((0, n_pad - n), (0, 0), (0, 0)))
    # mod-4 row split: x4[m, t, n, :] = x[n, 4t + m, :]  (no inflation)
    return jnp.transpose(x.reshape(n_pad, 7, 4, 28), (2, 1, 0, 3))


# --------------------------------------------------------------------------
# Full forward pass (single fused pallas_call)
# --------------------------------------------------------------------------
@jax.jit
def simple_convnet_forward(x_nchw, params):
    n = x_nchw.shape[0]
    tile, n_pad = _pick_tile(n)
    x4 = _prep_input(x_nchw, n_pad)
    consts = _prepare_constants(params)

    out = pl.pallas_call(
        _convnet_kernel,
        out_shape=jax.ShapeDtypeStruct((n_pad, 128), jnp.float32),
        grid=(n_pad // tile,),
        in_specs=[
            pl.BlockSpec((4, 7, tile, 28), lambda i: (0, 0, i, 0)),   # images
            pl.BlockSpec((2, 5, 28, 72), lambda i: (0, 0, 0, 0)),     # conv1 T
            pl.BlockSpec((1, 72), lambda i: (0, 0)),                  # conv1 b
            pl.BlockSpec((2, 5, 72, 64), lambda i: (0, 0, 0, 0)),     # conv2 T
            pl.BlockSpec((1, 64), lambda i: (0, 0)),                  # conv2 b
            pl.BlockSpec((4, 64, 120), lambda i: (0, 0, 0)),          # fc1 w
            pl.BlockSpec((1, 120), lambda i: (0, 0)),                 # fc1 b
            pl.BlockSpec((120, 84), lambda i: (0, 0)),                # fc2 w
            pl.BlockSpec((1, 84), lambda i: (0, 0)),                  # fc2 b
            pl.BlockSpec((84, 128), lambda i: (0, 0)),                # fc3 w
            pl.BlockSpec((1, 128), lambda i: (0, 0)),                 # fc3 b
        ],
        out_specs=pl.BlockSpec((tile, 128), lambda i: (i, 0)),
        compiler_params=pltpu.CompilerParams(
            dimension_semantics=("parallel",)),
    )(x4, *consts)
    return out[:n, :10]


# --------------------------------------------------------------------------
# Pure-JAX reference (PyTorch semantics) for the in-script correctness check
# --------------------------------------------------------------------------
def reference_forward(x_nchw, p):
    def conv(x, w, b):
        y = jax.lax.conv_general_dilated(
            x, w, window_strides=(1, 1), padding="VALID",
            dimension_numbers=("NCHW", "OIHW", "NCHW"))
        return y + b[None, :, None, None]

    def pool(x):
        return jax.lax.reduce_window(
            x, -jnp.inf, jax.lax.max, (1, 1, 2, 2), (1, 1, 2, 2), "VALID")

    h = pool(jax.nn.relu(conv(x_nchw, p["w1"], p["b1"])))
    h = pool(jax.nn.relu(conv(h, p["w2"], p["b2"])))
    h = h.reshape(h.shape[0], -1)                     # (C, H, W) flatten order
    h = jax.nn.relu(h @ p["fw1"] + p["fb1"])
    h = jax.nn.relu(h @ p["fw2"] + p["fb2"])
    return h @ p["fw3"] + p["fb3"]


# --------------------------------------------------------------------------
# Deterministic parameter init (shapes from SimpleConvNet.__init__)
# --------------------------------------------------------------------------
def init_params(key):
    ks = jax.random.split(key, 10)
    f32 = jnp.float32
    return {
        "w1": 0.1 * jax.random.normal(ks[0], (6, 1, 5, 5), f32),
        "b1": 0.1 * jax.random.normal(ks[1], (6,), f32),
        "w2": 0.1 * jax.random.normal(ks[2], (16, 6, 5, 5), f32),
        "b2": 0.1 * jax.random.normal(ks[3], (16,), f32),
        # fc weights stored as (in, out)  (PyTorch weight transposed)
        "fw1": 0.1 * jax.random.normal(ks[4], (4 * 4 * 16, 120), f32),
        "fb1": 0.1 * jax.random.normal(ks[5], (120,), f32),
        "fw2": 0.1 * jax.random.normal(ks[6], (120, 84), f32),
        "fb2": 0.1 * jax.random.normal(ks[7], (84,), f32),
        "fw3": 0.1 * jax.random.normal(ks[8], (84, 10), f32),
        "fb3": 0.1 * jax.random.normal(ks[9], (10,), f32),
    }


if __name__ == "__main__":
    key = jax.random.PRNGKey(0)
    k_x, k_p = jax.random.split(key)
    params = init_params(k_p)

    # MNIST-like input implied by fc1 = Linear(4*4*16, 120): (N, 1, 28, 28)
    x = jax.random.normal(k_x, (2, 1, 28, 28), jnp.float32)

    out = jax.block_until_ready(simple_convnet_forward(x, params))
    ref = jax.block_until_ready(reference_forward(x, params))

    assert out.shape == (2, 10), out.shape
    err = jnp.max(jnp.abs(out - ref))
    assert jnp.allclose(out, ref, atol=1e-3, rtol=1e-3), f"max abs err {err}"

    print("KERNEL_OK")
</pallas_src>

<mosaic_0001>
module attributes {stable_mosaic.version = 11 : i64} {
  func.func @_convnet_kernel(%arg0: i32, %arg1: memref<4x7x8x28xf32, #tpu.memory_space<vmem>>, %arg2: memref<2x5x28x72xf32, #tpu.memory_space<vmem>>, %arg3: memref<1x72xf32, #tpu.memory_space<vmem>>, %arg4: memref<2x5x72x64xf32, #tpu.memory_space<vmem>>, %arg5: memref<1x64xf32, #tpu.memory_space<vmem>>, %arg6: memref<4x64x120xf32, #tpu.memory_space<vmem>>, %arg7: memref<1x120xf32, #tpu.memory_space<vmem>>, %arg8: memref<120x84xf32, #tpu.memory_space<vmem>>, %arg9: memref<1x84xf32, #tpu.memory_space<vmem>>, %arg10: memref<84x128xf32, #tpu.memory_space<vmem>>, %arg11: memref<1x128xf32, #tpu.memory_space<vmem>>, %arg12: memref<8x128xf32, #tpu.memory_space<vmem>>) attributes {dimension_semantics = [#tpu.dimension_semantics<parallel>], iteration_bounds = array<i64: 2>, scalar_prefetch = 0 : i64, scratch_operands = 0 : i64, tpu.core_type = #tpu.core_type<tc>, window_params = [{transform_indices = @transform_0, window_bounds = array<i64: 4, 7, 8, 28>}, {pipeline_mode = #tpu.pipeline_mode<synchronous>, transform_indices = @transform_1, window_bounds = array<i64: 2, 5, 28, 72>}, {pipeline_mode = #tpu.pipeline_mode<synchronous>, transform_indices = @transform_2, window_bounds = array<i64: 1, 72>}, {pipeline_mode = #tpu.pipeline_mode<synchronous>, transform_indices = @transform_3, window_bounds = array<i64: 2, 5, 72, 64>}, {pipeline_mode = #tpu.pipeline_mode<synchronous>, transform_indices = @transform_4, window_bounds = array<i64: 1, 64>}, {pipeline_mode = #tpu.pipeline_mode<synchronous>, transform_indices = @transform_5, window_bounds = array<i64: 4, 64, 120>}, {pipeline_mode = #tpu.pipeline_mode<synchronous>, transform_indices = @transform_6, window_bounds = array<i64: 1, 120>}, {pipeline_mode = #tpu.pipeline_mode<synchronous>, transform_indices = @transform_7, window_bounds = array<i64: 120, 84>}, {pipeline_mode = #tpu.pipeline_mode<synchronous>, transform_indices = @transform_8, window_bounds = array<i64: 1, 84>}, {pipeline_mode = #tpu.pipeline_mode<synchronous>, transform_indices = @transform_9, window_bounds = array<i64: 84, 128>}, {pipeline_mode = #tpu.pipeline_mode<synchronous>, transform_indices = @transform_10, window_bounds = array<i64: 1, 128>}, {transform_indices = @transform_11, window_bounds = array<i64: 8, 128>}]} {
    %c0 = arith.constant 0 : index
    %c0_0 = arith.constant 0 : index
    %c0_1 = arith.constant 0 : index
    %c0_2 = arith.constant 0 : index
    %0 = vector.load %arg1[%c0, %c0_0, %c0_1, %c0_2] : memref<4x7x8x28xf32, #tpu.memory_space<vmem>>, vector<1x6x8x28xf32>
    %1 = vector.shape_cast %0 : vector<1x6x8x28xf32> to vector<6x8x28xf32>
    %2 = vector.shape_cast %1 : vector<6x8x28xf32> to vector<48x28xf32>
    %c1 = arith.constant 1 : index
    %c0_3 = arith.constant 0 : index
    %c0_4 = arith.constant 0 : index
    %c0_5 = arith.constant 0 : index
    %3 = vector.load %arg1[%c1, %c0_3, %c0_4, %c0_5] : memref<4x7x8x28xf32, #tpu.memory_space<vmem>>, vector<1x6x8x28xf32>
    %4 = vector.shape_cast %3 : vector<1x6x8x28xf32> to vector<6x8x28xf32>
    %5 = vector.shape_cast %4 : vector<6x8x28xf32> to vector<48x28xf32>
    %c2 = arith.constant 2 : index
    %c0_6 = arith.constant 0 : index
    %c0_7 = arith.constant 0 : index
    %c0_8 = arith.constant 0 : index
    %6 = vector.load %arg1[%c2, %c0_6, %c0_7, %c0_8] : memref<4x7x8x28xf32, #tpu.memory_space<vmem>>, vector<1x6x8x28xf32>
    %7 = vector.shape_cast %6 : vector<1x6x8x28xf32> to vector<6x8x28xf32>
    %8 = vector.shape_cast %7 : vector<6x8x28xf32> to vector<48x28xf32>
    %c3 = arith.constant 3 : index
    %c0_9 = arith.constant 0 : index
    %c0_10 = arith.constant 0 : index
    %c0_11 = arith.constant 0 : index
    %9 = vector.load %arg1[%c3, %c0_9, %c0_10, %c0_11] : memref<4x7x8x28xf32, #tpu.memory_space<vmem>>, vector<1x6x8x28xf32>
    %10 = vector.shape_cast %9 : vector<1x6x8x28xf32> to vector<6x8x28xf32>
    %11 = vector.shape_cast %10 : vector<6x8x28xf32> to vector<48x28xf32>
    %c0_12 = arith.constant 0 : index
    %c1_13 = arith.constant 1 : index
    %c0_14 = arith.constant 0 : index
    %c0_15 = arith.constant 0 : index
    %12 = vector.load %arg1[%c0_12, %c1_13, %c0_14, %c0_15] : memref<4x7x8x28xf32, #tpu.memory_space<vmem>>, vector<1x6x8x28xf32>
    %13 = vector.shape_cast %12 : vector<1x6x8x28xf32> to vector<6x8x28xf32>
    %14 = vector.shape_cast %13 : vector<6x8x28xf32> to vector<48x28xf32>
    %c1_16 = arith.constant 1 : index
    %c1_17 = arith.constant 1 : index
    %c0_18 = arith.constant 0 : index
    %c0_19 = arith.constant 0 : index
    %15 = vector.load %arg1[%c1_16, %c1_17, %c0_18, %c0_19] : memref<4x7x8x28xf32, #tpu.memory_space<vmem>>, vector<1x6x8x28xf32>
    %16 = vector.shape_cast %15 : vector<1x6x8x28xf32> to vector<6x8x28xf32>
    %17 = vector.shape_cast %16 : vector<6x8x28xf32> to vector<48x28xf32>
    %c2_20 = arith.constant 2 : index
    %c1_21 = arith.constant 1 : index
    %c0_22 = arith.constant 0 : index
    %c0_23 = arith.constant 0 : index
    %18 = vector.load %arg1[%c2_20, %c1_21, %c0_22, %c0_23] : memref<4x7x8x28xf32, #tpu.memory_space<vmem>>, vector<1x6x8x28xf32>
    %19 = vector.shape_cast %18 : vector<1x6x8x28xf32> to vector<6x8x28xf32>
    %20 = vector.shape_cast %19 : vector<6x8x28xf32> to vector<48x28xf32>
    %c3_24 = arith.constant 3 : index
    %c1_25 = arith.constant 1 : index
    %c0_26 = arith.constant 0 : index
    %c0_27 = arith.constant 0 : index
    %21 = vector.load %arg1[%c3_24, %c1_25, %c0_26, %c0_27] : memref<4x7x8x28xf32, #tpu.memory_space<vmem>>, vector<1x6x8x28xf32>
    %22 = vector.shape_cast %21 : vector<1x6x8x28xf32> to vector<6x8x28xf32>
    %23 = vector.shape_cast %22 : vector<6x8x28xf32> to vector<48x28xf32>
    %c0_28 = arith.constant 0 : index
    %c0_29 = arith.constant 0 : index
    %24 = vector.load %arg3[%c0_28, %c0_29] : memref<1x72xf32, #tpu.memory_space<vmem>>, vector<1x72xf32>
    %c0_30 = arith.constant 0 : index
    %c0_31 = arith.constant 0 : index
    %c0_32 = arith.constant 0 : index
    %c0_33 = arith.constant 0 : index
    %25 = vector.load %arg2[%c0_30, %c0_31, %c0_32, %c0_33] : memref<2x5x28x72xf32, #tpu.memory_space<vmem>>, vector<1x1x28x72xf32>
    %26 = vector.shape_cast %25 : vector<1x1x28x72xf32> to vector<28x72xf32>
    %cst = arith.constant dense<0.000000e+00> : vector<48x72xf32>
    %27 = tpu.matmul %2, %26, %cst {dimension_numbers = #tpu.dot_dimension_numbers<[1], [0], [0], [1], [0, 0, 1, 1], [], []>} : vector<48x28xf32>, vector<28x72xf32>, vector<48x72xf32> -> vector<48x72xf32>
    %c0_34 = arith.constant 0 : index
    %c1_35 = arith.constant 1 : index
    %c0_36 = arith.constant 0 : index
    %c0_37 = arith.constant 0 : index
    %28 = vector.load %arg2[%c0_34, %c1_35, %c0_36, %c0_37] : memref<2x5x28x72xf32, #tpu.memory_space<vmem>>, vector<1x1x28x72xf32>
    %29 = vector.shape_cast %28 : vector<1x1x28x72xf32> to vector<28x72xf32>
    %cst_38 = arith.constant dense<0.000000e+00> : vector<48x72xf32>
    %30 = tpu.matmul %5, %29, %cst_38 {dimension_numbers = #tpu.dot_dimension_numbers<[1], [0], [0], [1], [0, 0, 1, 1], [], []>} : vector<48x28xf32>, vector<28x72xf32>, vector<48x72xf32> -> vector<48x72xf32>
    %31 = arith.addf %27, %30 : vector<48x72xf32>
    %c0_39 = arith.constant 0 : index
    %c2_40 = arith.constant 2 : index
    %c0_41 = arith.constant 0 : index
    %c0_42 = arith.constant 0 : index
    %32 = vector.load %arg2[%c0_39, %c2_40, %c0_41, %c0_42] : memref<2x5x28x72xf32, #tpu.memory_space<vmem>>, vector<1x1x28x72xf32>
    %33 = vector.shape_cast %32 : vector<1x1x28x72xf32> to vector<28x72xf32>
    %cst_43 = arith.constant dense<0.000000e+00> : vector<48x72xf32>
    %34 = tpu.matmul %8, %33, %cst_43 {dimension_numbers = #tpu.dot_dimension_numbers<[1], [0], [0], [1], [0, 0, 1, 1], [], []>} : vector<48x28xf32>, vector<28x72xf32>, vector<48x72xf32> -> vector<48x72xf32>
    %35 = arith.addf %31, %34 : vector<48x72xf32>
    %c0_44 = arith.constant 0 : index
    %c3_45 = arith.constant 3 : index
    %c0_46 = arith.constant 0 : index
    %c0_47 = arith.constant 0 : index
    %36 = vector.load %arg2[%c0_44, %c3_45, %c0_46, %c0_47] : memref<2x5x28x72xf32, #tpu.memory_space<vmem>>, vector<1x1x28x72xf32>
    %37 = vector.shape_cast %36 : vector<1x1x28x72xf32> to vector<28x72xf32>
    %cst_48 = arith.constant dense<0.000000e+00> : vector<48x72xf32>
    %38 = tpu.matmul %11, %37, %cst_48 {dimension_numbers = #tpu.dot_dimension_numbers<[1], [0], [0], [1], [0, 0, 1, 1], [], []>} : vector<48x28xf32>, vector<28x72xf32>, vector<48x72xf32> -> vector<48x72xf32>
    %39 = arith.addf %35, %38 : vector<48x72xf32>
    %c0_49 = arith.constant 0 : index
    %c4 = arith.constant 4 : index
    %c0_50 = arith.constant 0 : index
    %c0_51 = arith.constant 0 : index
    %40 = vector.load %arg2[%c0_49, %c4, %c0_50, %c0_51] : memref<2x5x28x72xf32, #tpu.memory_space<vmem>>, vector<1x1x28x72xf32>
    %41 = vector.shape_cast %40 : vector<1x1x28x72xf32> to vector<28x72xf32>
    %cst_52 = arith.constant dense<0.000000e+00> : vector<48x72xf32>
    %42 = tpu.matmul %14, %41, %cst_52 {dimension_numbers = #tpu.dot_dimension_numbers<[1], [0], [0], [1], [0, 0, 1, 1], [], []>} : vector<48x28xf32>, vector<28x72xf32>, vector<48x72xf32> -> vector<48x72xf32>
    %43 = arith.addf %39, %42 : vector<48x72xf32>
    %c0_53 = arith.constant 0 : index
    %c0_54 = arith.constant 0 : index
    %c0_55 = arith.constant 0 : index
    %c0_56 = arith.constant 0 : index
    %44 = vector.load %arg2[%c0_53, %c0_54, %c0_55, %c0_56] : memref<2x5x28x72xf32, #tpu.memory_space<vmem>>, vector<1x1x28x72xf32>
    %45 = vector.shape_cast %44 : vector<1x1x28x72xf32> to vector<28x72xf32>
    %cst_57 = arith.constant dense<0.000000e+00> : vector<48x72xf32>
    %46 = tpu.matmul %5, %45, %cst_57 {dimension_numbers = #tpu.dot_dimension_numbers<[1], [0], [0], [1], [0, 0, 1, 1], [], []>} : vector<48x28xf32>, vector<28x72xf32>, vector<48x72xf32> -> vector<48x72xf32>
    %c0_58 = arith.constant 0 : index
    %c1_59 = arith.constant 1 : index
    %c0_60 = arith.constant 0 : index
    %c0_61 = arith.constant 0 : index
    %47 = vector.load %arg2[%c0_58, %c1_59, %c0_60, %c0_61] : memref<2x5x28x72xf32, #tpu.memory_space<vmem>>, vector<1x1x28x72xf32>
    %48 = vector.shape_cast %47 : vector<1x1x28x72xf32> to vector<28x72xf32>
    %cst_62 = arith.constant dense<0.000000e+00> : vector<48x72xf32>
    %49 = tpu.matmul %8, %48, %cst_62 {dimension_numbers = #tpu.dot_dimension_numbers<[1], [0], [0], [1], [0, 0, 1, 1], [], []>} : vector<48x28xf32>, vector<28x72xf32>, vector<48x72xf32> -> vector<48x72xf32>
    %50 = arith.addf %46, %49 : vector<48x72xf32>
    %c0_63 = arith.constant 0 : index
    %c2_64 = arith.constant 2 : index
    %c0_65 = arith.constant 0 : index
    %c0_66 = arith.constant 0 : index
    %51 = vector.load %arg2[%c0_63, %c2_64, %c0_65, %c0_66] : memref<2x5x28x72xf32, #tpu.memory_space<vmem>>, vector<1x1x28x72xf32>
    %52 = vector.shape_cast %51 : vector<1x1x28x72xf32> to vector<28x72xf32>
    %cst_67 = arith.constant dense<0.000000e+00> : vector<48x72xf32>
    %53 = tpu.matmul %11, %52, %cst_67 {dimension_numbers = #tpu.dot_dimension_numbers<[1], [0], [0], [1], [0, 0, 1, 1], [], []>} : vector<48x28xf32>, vector<28x72xf32>, vector<48x72xf32> -> vector<48x72xf32>
    %54 = arith.addf %50, %53 : vector<48x72xf32>
    %c0_68 = arith.constant 0 : index
    %c3_69 = arith.constant 3 : index
    %c0_70 = arith.constant 0 : index
    %c0_71 = arith.constant 0 : index
    %55 = vector.load %arg2[%c0_68, %c3_69, %c0_70, %c0_71] : memref<2x5x28x72xf32, #tpu.memory_space<vmem>>, vector<1x1x28x72xf32>
    %56 = vector.shape_cast %55 : vector<1x1x28x72xf32> to vector<28x72xf32>
    %cst_72 = arith.constant dense<0.000000e+00> : vector<48x72xf32>
    %57 = tpu.matmul %14, %56, %cst_72 {dimension_numbers = #tpu.dot_dimension_numbers<[1], [0], [0], [1], [0, 0, 1, 1], [], []>} : vector<48x28xf32>, vector<28x72xf32>, vector<48x72xf32> -> vector<48x72xf32>
    %58 = arith.addf %54, %57 : vector<48x72xf32>
    %c0_73 = arith.constant 0 : index
    %c4_74 = arith.constant 4 : index
    %c0_75 = arith.constant 0 : index
    %c0_76 = arith.constant 0 : index
    %59 = vector.load %arg2[%c0_73, %c4_74, %c0_75, %c0_76] : memref<2x5x28x72xf32, #tpu.memory_space<vmem>>, vector<1x1x28x72xf32>
    %60 = vector.shape_cast %59 : vector<1x1x28x72xf32> to vector<28x72xf32>
    %cst_77 = arith.constant dense<0.000000e+00> : vector<48x72xf32>
    %61 = tpu.matmul %17, %60, %cst_77 {dimension_numbers = #tpu.dot_dimension_numbers<[1], [0], [0], [1], [0, 0, 1, 1], [], []>} : vector<48x28xf32>, vector<28x72xf32>, vector<48x72xf32> -> vector<48x72xf32>
    %62 = arith.addf %58, %61 : vector<48x72xf32>
    %63 = arith.maximumf %43, %62 : vector<48x72xf32>
    %c1_78 = arith.constant 1 : index
    %c0_79 = arith.constant 0 : index
    %c0_80 = arith.constant 0 : index
    %c0_81 = arith.constant 0 : index
    %64 = vector.load %arg2[%c1_78, %c0_79, %c0_80, %c0_81] : memref<2x5x28x72xf32, #tpu.memory_space<vmem>>, vector<1x1x28x72xf32>
    %65 = vector.shape_cast %64 : vector<1x1x28x72xf32> to vector<28x72xf32>
    %cst_82 = arith.constant dense<0.000000e+00> : vector<48x72xf32>
    %66 = tpu.matmul %2, %65, %cst_82 {dimension_numbers = #tpu.dot_dimension_numbers<[1], [0], [0], [1], [0, 0, 1, 1], [], []>} : vector<48x28xf32>, vector<28x72xf32>, vector<48x72xf32> -> vector<48x72xf32>
    %c1_83 = arith.constant 1 : index
    %c1_84 = arith.constant 1 : index
    %c0_85 = arith.constant 0 : index
    %c0_86 = arith.constant 0 : index
    %67 = vector.load %arg2[%c1_83, %c1_84, %c0_85, %c0_86] : memref<2x5x28x72xf32, #tpu.memory_space<vmem>>, vector<1x1x28x72xf32>
    %68 = vector.shape_cast %67 : vector<1x1x28x72xf32> to vector<28x72xf32>
    %cst_87 = arith.constant dense<0.000000e+00> : vector<48x72xf32>
    %69 = tpu.matmul %5, %68, %cst_87 {dimension_numbers = #tpu.dot_dimension_numbers<[1], [0], [0], [1], [0, 0, 1, 1], [], []>} : vector<48x28xf32>, vector<28x72xf32>, vector<48x72xf32> -> vector<48x72xf32>
    %70 = arith.addf %66, %69 : vector<48x72xf32>
    %c1_88 = arith.constant 1 : index
    %c2_89 = arith.constant 2 : index
    %c0_90 = arith.constant 0 : index
    %c0_91 = arith.constant 0 : index
    %71 = vector.load %arg2[%c1_88, %c2_89, %c0_90, %c0_91] : memref<2x5x28x72xf32, #tpu.memory_space<vmem>>, vector<1x1x28x72xf32>
    %72 = vector.shape_cast %71 : vector<1x1x28x72xf32> to vector<28x72xf32>
    %cst_92 = arith.constant dense<0.000000e+00> : vector<48x72xf32>
    %73 = tpu.matmul %8, %72, %cst_92 {dimension_numbers = #tpu.dot_dimension_numbers<[1], [0], [0], [1], [0, 0, 1, 1], [], []>} : vector<48x28xf32>, vector<28x72xf32>, vector<48x72xf32> -> vector<48x72xf32>
    %74 = arith.addf %70, %73 : vector<48x72xf32>
    %c1_93 = arith.constant 1 : index
    %c3_94 = arith.constant 3 : index
    %c0_95 = arith.constant 0 : index
    %c0_96 = arith.constant 0 : index
    %75 = vector.load %arg2[%c1_93, %c3_94, %c0_95, %c0_96] : memref<2x5x28x72xf32, #tpu.memory_space<vmem>>, vector<1x1x28x72xf32>
    %76 = vector.shape_cast %75 : vector<1x1x28x72xf32> to vector<28x72xf32>
    %cst_97 = arith.constant dense<0.000000e+00> : vector<48x72xf32>
    %77 = tpu.matmul %11, %76, %cst_97 {dimension_numbers = #tpu.dot_dimension_numbers<[1], [0], [0], [1], [0, 0, 1, 1], [], []>} : vector<48x28xf32>, vector<28x72xf32>, vector<48x72xf32> -> vector<48x72xf32>
    %78 = arith.addf %74, %77 : vector<48x72xf32>
    %c1_98 = arith.constant 1 : index
    %c4_99 = arith.constant 4 : index
    %c0_100 = arith.constant 0 : index
    %c0_101 = arith.constant 0 : index
    %79 = vector.load %arg2[%c1_98, %c4_99, %c0_100, %c0_101] : memref<2x5x28x72xf32, #tpu.memory_space<vmem>>, vector<1x1x28x72xf32>
    %80 = vector.shape_cast %79 : vector<1x1x28x72xf32> to vector<28x72xf32>
    %cst_102 = arith.constant dense<0.000000e+00> : vector<48x72xf32>
    %81 = tpu.matmul %14, %80, %cst_102 {dimension_numbers = #tpu.dot_dimension_numbers<[1], [0], [0], [1], [0, 0, 1, 1], [], []>} : vector<48x28xf32>, vector<28x72xf32>, vector<48x72xf32> -> vector<48x72xf32>
    %82 = arith.addf %78, %81 : vector<48x72xf32>
    %c1_103 = arith.constant 1 : index
    %c0_104 = arith.constant 0 : index
    %c0_105 = arith.constant 0 : index
    %c0_106 = arith.constant 0 : index
    %83 = vector.load %arg2[%c1_103, %c0_104, %c0_105, %c0_106] : memref<2x5x28x72xf32, #tpu.memory_space<vmem>>, vector<1x1x28x72xf32>
    %84 = vector.shape_cast %83 : vector<1x1x28x72xf32> to vector<28x72xf32>
    %cst_107 = arith.constant dense<0.000000e+00> : vector<48x72xf32>
    %85 = tpu.matmul %5, %84, %cst_107 {dimension_numbers = #tpu.dot_dimension_numbers<[1], [0], [0], [1], [0, 0, 1, 1], [], []>} : vector<48x28xf32>, vector<28x72xf32>, vector<48x72xf32> -> vector<48x72xf32>
    %c1_108 = arith.constant 1 : index
    %c1_109 = arith.constant 1 : index
    %c0_110 = arith.constant 0 : index
    %c0_111 = arith.constant 0 : index
    %86 = vector.load %arg2[%c1_108, %c1_109, %c0_110, %c0_111] : memref<2x5x28x72xf32, #tpu.memory_space<vmem>>, vector<1x1x28x72xf32>
    %87 = vector.shape_cast %86 : vector<1x1x28x72xf32> to vector<28x72xf32>
    %cst_112 = arith.constant dense<0.000000e+00> : vector<48x72xf32>
    %88 = tpu.matmul %8, %87, %cst_112 {dimension_numbers = #tpu.dot_dimension_numbers<[1], [0], [0], [1], [0, 0, 1, 1], [], []>} : vector<48x28xf32>, vector<28x72xf32>, vector<48x72xf32> -> vector<48x72xf32>
    %89 = arith.addf %85, %88 : vector<48x72xf32>
    %c1_113 = arith.constant 1 : index
    %c2_114 = arith.constant 2 : index
    %c0_115 = arith.constant 0 : index
    %c0_116 = arith.constant 0 : index
    %90 = vector.load %arg2[%c1_113, %c2_114, %c0_115, %c0_116] : memref<2x5x28x72xf32, #tpu.memory_space<vmem>>, vector<1x1x28x72xf32>
    %91 = vector.shape_cast %90 : vector<1x1x28x72xf32> to vector<28x72xf32>
    %cst_117 = arith.constant dense<0.000000e+00> : vector<48x72xf32>
    %92 = tpu.matmul %11, %91, %cst_117 {dimension_numbers = #tpu.dot_dimension_numbers<[1], [0], [0], [1], [0, 0, 1, 1], [], []>} : vector<48x28xf32>, vector<28x72xf32>, vector<48x72xf32> -> vector<48x72xf32>
    %93 = arith.addf %89, %92 : vector<48x72xf32>
    %c1_118 = arith.constant 1 : index
    %c3_119 = arith.constant 3 : index
    %c0_120 = arith.constant 0 : index
    %c0_121 = arith.constant 0 : index
    %94 = vector.load %arg2[%c1_118, %c3_119, %c0_120, %c0_121] : memref<2x5x28x72xf32, #tpu.memory_space<vmem>>, vector<1x1x28x72xf32>
    %95 = vector.shape_cast %94 : vector<1x1x28x72xf32> to vector<28x72xf32>
    %cst_122 = arith.constant dense<0.000000e+00> : vector<48x72xf32>
    %96 = tpu.matmul %14, %95, %cst_122 {dimension_numbers = #tpu.dot_dimension_numbers<[1], [0], [0], [1], [0, 0, 1, 1], [], []>} : vector<48x28xf32>, vector<28x72xf32>, vector<48x72xf32> -> vector<48x72xf32>
    %97 = arith.addf %93, %96 : vector<48x72xf32>
    %c1_123 = arith.constant 1 : index
    %c4_124 = arith.constant 4 : index
    %c0_125 = arith.constant 0 : index
    %c0_126 = arith.constant 0 : index
    %98 = vector.load %arg2[%c1_123, %c4_124, %c0_125, %c0_126] : memref<2x5x28x72xf32, #tpu.memory_space<vmem>>, vector<1x1x28x72xf32>
    %99 = vector.shape_cast %98 : vector<1x1x28x72xf32> to vector<28x72xf32>
    %cst_127 = arith.constant dense<0.000000e+00> : vector<48x72xf32>
    %100 = tpu.matmul %17, %99, %cst_127 {dimension_numbers = #tpu.dot_dimension_numbers<[1], [0], [0], [1], [0, 0, 1, 1], [], []>} : vector<48x28xf32>, vector<28x72xf32>, vector<48x72xf32> -> vector<48x72xf32>
    %101 = arith.addf %97, %100 : vector<48x72xf32>
    %102 = arith.maximumf %82, %101 : vector<48x72xf32>
    %103 = arith.maximumf %63, %102 : vector<48x72xf32>
    %104 = vector.broadcast %24 : vector<1x72xf32> to vector<48x72xf32>
    %105 = arith.addf %103, %104 : vector<48x72xf32>
    %cst_128 = arith.constant 0.000000e+00 : f32
    %106 = vector.broadcast %cst_128 : f32 to vector<48x72xf32>
    %107 = arith.maximumf %105, %106 : vector<48x72xf32>
    %c0_129 = arith.constant 0 : index
    %c0_130 = arith.constant 0 : index
    %c0_131 = arith.constant 0 : index
    %c0_132 = arith.constant 0 : index
    %108 = vector.load %arg2[%c0_129, %c0_130, %c0_131, %c0_132] : memref<2x5x28x72xf32, #tpu.memory_space<vmem>>, vector<1x1x28x72xf32>
    %109 = vector.shape_cast %108 : vector<1x1x28x72xf32> to vector<28x72xf32>
    %cst_133 = arith.constant dense<0.000000e+00> : vector<48x72xf32>
    %110 = tpu.matmul %8, %109, %cst_133 {dimension_numbers = #tpu.dot_dimension_numbers<[1], [0], [0], [1], [0, 0, 1, 1], [], []>} : vector<48x28xf32>, vector<28x72xf32>, vector<48x72xf32> -> vector<48x72xf32>
    %c0_134 = arith.constant 0 : index
    %c1_135 = arith.constant 1 : index
    %c0_136 = arith.constant 0 : index
    %c0_137 = arith.constant 0 : index
    %111 = vector.load %arg2[%c0_134, %c1_135, %c0_136, %c0_137] : memref<2x5x28x72xf32, #tpu.memory_space<vmem>>, vector<1x1x28x72xf32>
    %112 = vector.shape_cast %111 : vector<1x1x28x72xf32> to vector<28x72xf32>
    %cst_138 = arith.constant dense<0.000000e+00> : vector<48x72xf32>
    %113 = tpu.matmul %11, %112, %cst_138 {dimension_numbers = #tpu.dot_dimension_numbers<[1], [0], [0], [1], [0, 0, 1, 1], [], []>} : vector<48x28xf32>, vector<28x72xf32>, vector<48x72xf32> -> vector<48x72xf32>
    %114 = arith.addf %110, %113 : vector<48x72xf32>
    %c0_139 = arith.constant 0 : index
    %c2_140 = arith.constant 2 : index
    %c0_141 = arith.constant 0 : index
    %c0_142 = arith.constant 0 : index
    %115 = vector.load %arg2[%c0_139, %c2_140, %c0_141, %c0_142] : memref<2x5x28x72xf32, #tpu.memory_space<vmem>>, vector<1x1x28x72xf32>
    %116 = vector.shape_cast %115 : vector<1x1x28x72xf32> to vector<28x72xf32>
    %cst_143 = arith.constant dense<0.000000e+00> : vector<48x72xf32>
    %117 = tpu.matmul %14, %116, %cst_143 {dimension_numbers = #tpu.dot_dimension_numbers<[1], [0], [0], [1], [0, 0, 1, 1], [], []>} : vector<48x28xf32>, vector<28x72xf32>, vector<48x72xf32> -> vector<48x72xf32>
    %118 = arith.addf %114, %117 : vector<48x72xf32>
    %c0_144 = arith.constant 0 : index
    %c3_145 = arith.constant 3 : index
    %c0_146 = arith.constant 0 : index
    %c0_147 = arith.constant 0 : index
    %119 = vector.load %arg2[%c0_144, %c3_145, %c0_146, %c0_147] : memref<2x5x28x72xf32, #tpu.memory_space<vmem>>, vector<1x1x28x72xf32>
    %120 = vector.shape_cast %119 : vector<1x1x28x72xf32> to vector<28x72xf32>
    %cst_148 = arith.constant dense<0.000000e+00> : vector<48x72xf32>
    %121 = tpu.matmul %17, %120, %cst_148 {dimension_numbers = #tpu.dot_dimension_numbers<[1], [0], [0], [1], [0, 0, 1, 1], [], []>} : vector<48x28xf32>, vector<28x72xf32>, vector<48x72xf32> -> vector<48x72xf32>
    %122 = arith.addf %118, %121 : vector<48x72xf32>
    %c0_149 = arith.constant 0 : index
    %c4_150 = arith.constant 4 : index
    %c0_151 = arith.constant 0 : index
    %c0_152 = arith.constant 0 : index
    %123 = vector.load %arg2[%c0_149, %c4_150, %c0_151, %c0_152] : memref<2x5x28x72xf32, #tpu.memory_space<vmem>>, vector<1x1x28x72xf32>
    %124 = vector.shape_cast %123 : vector<1x1x28x72xf32> to vector<28x72xf32>
    %cst_153 = arith.constant dense<0.000000e+00> : vector<48x72xf32>
    %125 = tpu.matmul %20, %124, %cst_153 {dimension_numbers = #tpu.dot_dimension_numbers<[1], [0], [0], [1], [0, 0, 1, 1], [], []>} : vector<48x28xf32>, vector<28x72xf32>, vector<48x72xf32> -> vector<48x72xf32>
    %126 = arith.addf %122, %125 : vector<48x72xf32>
    %c0_154 = arith.constant 0 : index
    %c0_155 = arith.constant 0 : index
    %c0_156 = arith.constant 0 : index
    %c0_157 = arith.constant 0 : index
    %127 = vector.load %arg2[%c0_154, %c0_155, %c0_156, %c0_157] : memref<2x5x28x72xf32, #tpu.memory_space<vmem>>, vector<1x1x28x72xf32>
    %128 = vector.shape_cast %127 : vector<1x1x28x72xf32> to vector<28x72xf32>
    %cst_158 = arith.constant dense<0.000000e+00> : vector<48x72xf32>
    %129 = tpu.matmul %11, %128, %cst_158 {dimension_numbers = #tpu.dot_dimension_numbers<[1], [0], [0], [1], [0, 0, 1, 1], [], []>} : vector<48x28xf32>, vector<28x72xf32>, vector<48x72xf32> -> vector<48x72xf32>
    %c0_159 = arith.constant 0 : index
    %c1_160 = arith.constant 1 : index
    %c0_161 = arith.constant 0 : index
    %c0_162 = arith.constant 0 : index
    %130 = vector.load %arg2[%c0_159, %c1_160, %c0_161, %c0_162] : memref<2x5x28x72xf32, #tpu.memory_space<vmem>>, vector<1x1x28x72xf32>
    %131 = vector.shape_cast %130 : vector<1x1x28x72xf32> to vector<28x72xf32>
    %cst_163 = arith.constant dense<0.000000e+00> : vector<48x72xf32>
    %132 = tpu.matmul %14, %131, %cst_163 {dimension_numbers = #tpu.dot_dimension_numbers<[1], [0], [0], [1], [0, 0, 1, 1], [], []>} : vector<48x28xf32>, vector<28x72xf32>, vector<48x72xf32> -> vector<48x72xf32>
    %133 = arith.addf %129, %132 : vector<48x72xf32>
    %c0_164 = arith.constant 0 : index
    %c2_165 = arith.constant 2 : index
    %c0_166 = arith.constant 0 : index
    %c0_167 = arith.constant 0 : index
    %134 = vector.load %arg2[%c0_164, %c2_165, %c0_166, %c0_167] : memref<2x5x28x72xf32, #tpu.memory_space<vmem>>, vector<1x1x28x72xf32>
    %135 = vector.shape_cast %134 : vector<1x1x28x72xf32> to vector<28x72xf32>
    %cst_168 = arith.constant dense<0.000000e+00> : vector<48x72xf32>
    %136 = tpu.matmul %17, %135, %cst_168 {dimension_numbers = #tpu.dot_dimension_numbers<[1], [0], [0], [1], [0, 0, 1, 1], [], []>} : vector<48x28xf32>, vector<28x72xf32>, vector<48x72xf32> -> vector<48x72xf32>
    %137 = arith.addf %133, %136 : vector<48x72xf32>
    %c0_169 = arith.constant 0 : index
    %c3_170 = arith.constant 3 : index
    %c0_171 = arith.constant 0 : index
    %c0_172 = arith.constant 0 : index
    %138 = vector.load %arg2[%c0_169, %c3_170, %c0_171, %c0_172] : memref<2x5x28x72xf32, #tpu.memory_space<vmem>>, vector<1x1x28x72xf32>
    %139 = vector.shape_cast %138 : vector<1x1x28x72xf32> to vector<28x72xf32>
    %cst_173 = arith.constant dense<0.000000e+00> : vector<48x72xf32>
    %140 = tpu.matmul %20, %139, %cst_173 {dimension_numbers = #tpu.dot_dimension_numbers<[1], [0], [0], [1], [0, 0, 1, 1], [], []>} : vector<48x28xf32>, vector<28x72xf32>, vector<48x72xf32> -> vector<48x72xf32>
    %141 = arith.addf %137, %140 : vector<48x72xf32>
    %c0_174 = arith.constant 0 : index
    %c4_175 = arith.constant 4 : index
    %c0_176 = arith.constant 0 : index
    %c0_177 = arith.constant 0 : index
    %142 = vector.load %arg2[%c0_174, %c4_175, %c0_176, %c0_177] : memref<2x5x28x72xf32, #tpu.memory_space<vmem>>, vector<1x1x28x72xf32>
    %143 = vector.shape_cast %142 : vector<1x1x28x72xf32> to vector<28x72xf32>
    %cst_178 = arith.constant dense<0.000000e+00> : vector<48x72xf32>
    %144 = tpu.matmul %23, %143, %cst_178 {dimension_numbers = #tpu.dot_dimension_numbers<[1], [0], [0], [1], [0, 0, 1, 1], [], []>} : vector<48x28xf32>, vector<28x72xf32>, vector<48x72xf32> -> vector<48x72xf32>
    %145 = arith.addf %141, %144 : vector<48x72xf32>
    %146 = arith.maximumf %126, %145 : vector<48x72xf32>
    %c1_179 = arith.constant 1 : index
    %c0_180 = arith.constant 0 : index
    %c0_181 = arith.constant 0 : index
    %c0_182 = arith.constant 0 : index
    %147 = vector.load %arg2[%c1_179, %c0_180, %c0_181, %c0_182] : memref<2x5x28x72xf32, #tpu.memory_space<vmem>>, vector<1x1x28x72xf32>
    %148 = vector.shape_cast %147 : vector<1x1x28x72xf32> to vector<28x72xf32>
    %cst_183 = arith.constant dense<0.000000e+00> : vector<48x72xf32>
    %149 = tpu.matmul %8, %148, %cst_183 {dimension_numbers = #tpu.dot_dimension_numbers<[1], [0], [0], [1], [0, 0, 1, 1], [], []>} : vector<48x28xf32>, vector<28x72xf32>, vector<48x72xf32> -> vector<48x72xf32>
    %c1_184 = arith.constant 1 : index
    %c1_185 = arith.constant 1 : index
    %c0_186 = arith.constant 0 : index
    %c0_187 = arith.constant 0 : index
    %150 = vector.load %arg2[%c1_184, %c1_185, %c0_186, %c0_187] : memref<2x5x28x72xf32, #tpu.memory_space<vmem>>, vector<1x1x28x72xf32>
    %151 = vector.shape_cast %150 : vector<1x1x28x72xf32> to vector<28x72xf32>
    %cst_188 = arith.constant dense<0.000000e+00> : vector<48x72xf32>
    %152 = tpu.matmul %11, %151, %cst_188 {dimension_numbers = #tpu.dot_dimension_numbers<[1], [0], [0], [1], [0, 0, 1, 1], [], []>} : vector<48x28xf32>, vector<28x72xf32>, vector<48x72xf32> -> vector<48x72xf32>
    %153 = arith.addf %149, %152 : vector<48x72xf32>
    %c1_189 = arith.constant 1 : index
    %c2_190 = arith.constant 2 : index
    %c0_191 = arith.constant 0 : index
    %c0_192 = arith.constant 0 : index
    %154 = vector.load %arg2[%c1_189, %c2_190, %c0_191, %c0_192] : memref<2x5x28x72xf32, #tpu.memory_space<vmem>>, vector<1x1x28x72xf32>
    %155 = vector.shape_cast %154 : vector<1x1x28x72xf32> to vector<28x72xf32>
    %cst_193 = arith.constant dense<0.000000e+00> : vector<48x72xf32>
    %156 = tpu.matmul %14, %155, %cst_193 {dimension_numbers = #tpu.dot_dimension_numbers<[1], [0], [0], [1], [0, 0, 1, 1], [], []>} : vector<48x28xf32>, vector<28x72xf32>, vector<48x72xf32> -> vector<48x72xf32>
    %157 = arith.addf %153, %156 : vector<48x72xf32>
    %c1_194 = arith.constant 1 : index
    %c3_195 = arith.constant 3 : index
    %c0_196 = arith.constant 0 : index
    %c0_197 = arith.constant 0 : index
    %158 = vector.load %arg2[%c1_194, %c3_195, %c0_196, %c0_197] : memref<2x5x28x72xf32, #tpu.memory_space<vmem>>, vector<1x1x28x72xf32>
    %159 = vector.shape_cast %158 : vector<1x1x28x72xf32> to vector<28x72xf32>
    %cst_198 = arith.constant dense<0.000000e+00> : vector<48x72xf32>
    %160 = tpu.matmul %17, %159, %cst_198 {dimension_numbers = #tpu.dot_dimension_numbers<[1], [0], [0], [1], [0, 0, 1, 1], [], []>} : vector<48x28xf32>, vector<28x72xf32>, vector<48x72xf32> -> vector<48x72xf32>
    %161 = arith.addf %157, %160 : vector<48x72xf32>
    %c1_199 = arith.constant 1 : index
    %c4_200 = arith.constant 4 : index
    %c0_201 = arith.constant 0 : index
    %c0_202 = arith.constant 0 : index
    %162 = vector.load %arg2[%c1_199, %c4_200, %c0_201, %c0_202] : memref<2x5x28x72xf32, #tpu.memory_space<vmem>>, vector<1x1x28x72xf32>
    %163 = vector.shape_cast %162 : vector<1x1x28x72xf32> to vector<28x72xf32>
    %cst_203 = arith.constant dense<0.000000e+00> : vector<48x72xf32>
    %164 = tpu.matmul %20, %163, %cst_203 {dimension_numbers = #tpu.dot_dimension_numbers<[1], [0], [0], [1], [0, 0, 1, 1], [], []>} : vector<48x28xf32>, vector<28x72xf32>, vector<48x72xf32> -> vector<48x72xf32>
    %165 = arith.addf %161, %164 : vector<48x72xf32>
    %c1_204 = arith.constant 1 : index
    %c0_205 = arith.constant 0 : index
    %c0_206 = arith.constant 0 : index
    %c0_207 = arith.constant 0 : index
    %166 = vector.load %arg2[%c1_204, %c0_205, %c0_206, %c0_207] : memref<2x5x28x72xf32, #tpu.memory_space<vmem>>, vector<1x1x28x72xf32>
    %167 = vector.shape_cast %166 : vector<1x1x28x72xf32> to vector<28x72xf32>
    %cst_208 = arith.constant dense<0.000000e+00> : vector<48x72xf32>
    %168 = tpu.matmul %11, %167, %cst_208 {dimension_numbers = #tpu.dot_dimension_numbers<[1], [0], [0], [1], [0, 0, 1, 1], [], []>} : vector<48x28xf32>, vector<28x72xf32>, vector<48x72xf32> -> vector<48x72xf32>
    %c1_209 = arith.constant 1 : index
    %c1_210 = arith.constant 1 : index
    %c0_211 = arith.constant 0 : index
    %c0_212 = arith.constant 0 : index
    %169 = vector.load %arg2[%c1_209, %c1_210, %c0_211, %c0_212] : memref<2x5x28x72xf32, #tpu.memory_space<vmem>>, vector<1x1x28x72xf32>
    %170 = vector.shape_cast %169 : vector<1x1x28x72xf32> to vector<28x72xf32>
    %cst_213 = arith.constant dense<0.000000e+00> : vector<48x72xf32>
    %171 = tpu.matmul %14, %170, %cst_213 {dimension_numbers = #tpu.dot_dimension_numbers<[1], [0], [0], [1], [0, 0, 1, 1], [], []>} : vector<48x28xf32>, vector<28x72xf32>, vector<48x72xf32> -> vector<48x72xf32>
    %172 = arith.addf %168, %171 : vector<48x72xf32>
    %c1_214 = arith.constant 1 : index
    %c2_215 = arith.constant 2 : index
    %c0_216 = arith.constant 0 : index
    %c0_217 = arith.constant 0 : index
    %173 = vector.load %arg2[%c1_214, %c2_215, %c0_216, %c0_217] : memref<2x5x28x72xf32, #tpu.memory_space<vmem>>, vector<1x1x28x72xf32>
    %174 = vector.shape_cast %173 : vector<1x1x28x72xf32> to vector<28x72xf32>
    %cst_218 = arith.constant dense<0.000000e+00> : vector<48x72xf32>
    %175 = tpu.matmul %17, %174, %cst_218 {dimension_numbers = #tpu.dot_dimension_numbers<[1], [0], [0], [1], [0, 0, 1, 1], [], []>} : vector<48x28xf32>, vector<28x72xf32>, vector<48x72xf32> -> vector<48x72xf32>
    %176 = arith.addf %172, %175 : vector<48x72xf32>
    %c1_219 = arith.constant 1 : index
    %c3_220 = arith.constant 3 : index
    %c0_221 = arith.constant 0 : index
    %c0_222 = arith.constant 0 : index
    %177 = vector.load %arg2[%c1_219, %c3_220, %c0_221, %c0_222] : memref<2x5x28x72xf32, #tpu.memory_space<vmem>>, vector<1x1x28x72xf32>
    %178 = vector.shape_cast %177 : vector<1x1x28x72xf32> to vector<28x72xf32>
    %cst_223 = arith.constant dense<0.000000e+00> : vector<48x72xf32>
    %179 = tpu.matmul %20, %178, %cst_223 {dimension_numbers = #tpu.dot_dimension_numbers<[1], [0], [0], [1], [0, 0, 1, 1], [], []>} : vector<48x28xf32>, vector<28x72xf32>, vector<48x72xf32> -> vector<48x72xf32>
    %180 = arith.addf %176, %179 : vector<48x72xf32>
    %c1_224 = arith.constant 1 : index
    %c4_225 = arith.constant 4 : index
    %c0_226 = arith.constant 0 : index
    %c0_227 = arith.constant 0 : index
    %181 = vector.load %arg2[%c1_224, %c4_225, %c0_226, %c0_227] : memref<2x5x28x72xf32, #tpu.memory_space<vmem>>, vector<1x1x28x72xf32>
    %182 = vector.shape_cast %181 : vector<1x1x28x72xf32> to vector<28x72xf32>
    %cst_228 = arith.constant dense<0.000000e+00> : vector<48x72xf32>
    %183 = tpu.matmul %23, %182, %cst_228 {dimension_numbers = #tpu.dot_dimension_numbers<[1], [0], [0], [1], [0, 0, 1, 1], [], []>} : vector<48x28xf32>, vector<28x72xf32>, vector<48x72xf32> -> vector<48x72xf32>
    %184 = arith.addf %180, %183 : vector<48x72xf32>
    %185 = arith.maximumf %165, %184 : vector<48x72xf32>
    %186 = arith.maximumf %146, %185 : vector<48x72xf32>
    %187 = vector.broadcast %24 : vector<1x72xf32> to vector<48x72xf32>
    %188 = arith.addf %186, %187 : vector<48x72xf32>
    %cst_229 = arith.constant 0.000000e+00 : f32
    %189 = vector.broadcast %cst_229 : f32 to vector<48x72xf32>
    %190 = arith.maximumf %188, %189 : vector<48x72xf32>
    %191 = vector.extract_strided_slice %107 {offsets = [0, 0], sizes = [32, 72], strides = [1, 1]} : vector<48x72xf32> to vector<32x72xf32>
    %192 = vector.extract_strided_slice %190 {offsets = [0, 0], sizes = [32, 72], strides = [1, 1]} : vector<48x72xf32> to vector<32x72xf32>
    %193 = vector.extract_strided_slice %107 {offsets = [8, 0], sizes = [32, 72], strides = [1, 1]} : vector<48x72xf32> to vector<32x72xf32>
    %194 = vector.extract_strided_slice %190 {offsets = [8, 0], sizes = [32, 72], strides = [1, 1]} : vector<48x72xf32> to vector<32x72xf32>
    %195 = vector.extract_strided_slice %107 {offsets = [16, 0], sizes = [32, 72], strides = [1, 1]} : vector<48x72xf32> to vector<32x72xf32>
    %196 = vector.extract_strided_slice %190 {offsets = [16, 0], sizes = [32, 72], strides = [1, 1]} : vector<48x72xf32> to vector<32x72xf32>
    %c0_230 = arith.constant 0 : index
    %c0_231 = arith.constant 0 : index
    %197 = vector.load %arg5[%c0_230, %c0_231] : memref<1x64xf32, #tpu.memory_space<vmem>>, vector<1x64xf32>
    %c0_232 = arith.constant 0 : index
    %c0_233 = arith.constant 0 : index
    %c0_234 = arith.constant 0 : index
    %c0_235 = arith.constant 0 : index
    %198 = vector.load %arg4[%c0_232, %c0_233, %c0_234, %c0_235] : memref<2x5x72x64xf32, #tpu.memory_space<vmem>>, vector<1x1x72x64xf32>
    %199 = vector.shape_cast %198 : vector<1x1x72x64xf32> to vector<72x64xf32>
    %cst_236 = arith.constant dense<0.000000e+00> : vector<32x64xf32>
    %200 = tpu.matmul %191, %199, %cst_236 {dimension_numbers = #tpu.dot_dimension_numbers<[1], [0], [0], [1], [0, 0, 1, 1], [], []>} : vector<32x72xf32>, vector<72x64xf32>, vector<32x64xf32> -> vector<32x64xf32>
    %c0_237 = arith.constant 0 : index
    %c1_238 = arith.constant 1 : index
    %c0_239 = arith.constant 0 : index
    %c0_240 = arith.constant 0 : index
    %201 = vector.load %arg4[%c0_237, %c1_238, %c0_239, %c0_240] : memref<2x5x72x64xf32, #tpu.memory_space<vmem>>, vector<1x1x72x64xf32>
    %202 = vector.shape_cast %201 : vector<1x1x72x64xf32> to vector<72x64xf32>
    %cst_241 = arith.constant dense<0.000000e+00> : vector<32x64xf32>
    %203 = tpu.matmul %192, %202, %cst_241 {dimension_numbers = #tpu.dot_dimension_numbers<[1], [0], [0], [1], [0, 0, 1, 1], [], []>} : vector<32x72xf32>, vector<72x64xf32>, vector<32x64xf32> -> vector<32x64xf32>
    %204 = arith.addf %200, %203 : vector<32x64xf32>
    %c0_242 = arith.constant 0 : index
    %c2_243 = arith.constant 2 : index
    %c0_244 = arith.constant 0 : index
    %c0_245 = arith.constant 0 : index
    %205 = vector.load %arg4[%c0_242, %c2_243, %c0_244, %c0_245] : memref<2x5x72x64xf32, #tpu.memory_space<vmem>>, vector<1x1x72x64xf32>
    %206 = vector.shape_cast %205 : vector<1x1x72x64xf32> to vector<72x64xf32>
    %cst_246 = arith.constant dense<0.000000e+00> : vector<32x64xf32>
    %207 = tpu.matmul %193, %206, %cst_246 {dimension_numbers = #tpu.dot_dimension_numbers<[1], [0], [0], [1], [0, 0, 1, 1], [], []>} : vector<32x72xf32>, vector<72x64xf32>, vector<32x64xf32> -> vector<32x64xf32>
    %208 = arith.addf %204, %207 : vector<32x64xf32>
    %c0_247 = arith.constant 0 : index
    %c3_248 = arith.constant 3 : index
    %c0_249 = arith.constant 0 : index
    %c0_250 = arith.constant 0 : index
    %209 = vector.load %arg4[%c0_247, %c3_248, %c0_249, %c0_250] : memref<2x5x72x64xf32, #tpu.memory_space<vmem>>, vector<1x1x72x64xf32>
    %210 = vector.shape_cast %209 : vector<1x1x72x64xf32> to vector<72x64xf32>
    %cst_251 = arith.constant dense<0.000000e+00> : vector<32x64xf32>
    %211 = tpu.matmul %194, %210, %cst_251 {dimension_numbers = #tpu.dot_dimension_numbers<[1], [0], [0], [1], [0, 0, 1, 1], [], []>} : vector<32x72xf32>, vector<72x64xf32>, vector<32x64xf32> -> vector<32x64xf32>
    %212 = arith.addf %208, %211 : vector<32x64xf32>
    %c0_252 = arith.constant 0 : index
    %c4_253 = arith.constant 4 : index
    %c0_254 = arith.constant 0 : index
    %c0_255 = arith.constant 0 : index
    %213 = vector.load %arg4[%c0_252, %c4_253, %c0_254, %c0_255] : memref<2x5x72x64xf32, #tpu.memory_space<vmem>>, vector<1x1x72x64xf32>
    %214 = vector.shape_cast %213 : vector<1x1x72x64xf32> to vector<72x64xf32>
    %cst_256 = arith.constant dense<0.000000e+00> : vector<32x64xf32>
    %215 = tpu.matmul %195, %214, %cst_256 {dimension_numbers = #tpu.dot_dimension_numbers<[1], [0], [0], [1], [0, 0, 1, 1], [], []>} : vector<32x72xf32>, vector<72x64xf32>, vector<32x64xf32> -> vector<32x64xf32>
    %216 = arith.addf %212, %215 : vector<32x64xf32>
    %c0_257 = arith.constant 0 : index
    %c0_258 = arith.constant 0 : index
    %c0_259 = arith.constant 0 : index
    %c0_260 = arith.constant 0 : index
    %217 = vector.load %arg4[%c0_257, %c0_258, %c0_259, %c0_260] : memref<2x5x72x64xf32, #tpu.memory_space<vmem>>, vector<1x1x72x64xf32>
    %218 = vector.shape_cast %217 : vector<1x1x72x64xf32> to vector<72x64xf32>
    %cst_261 = arith.constant dense<0.000000e+00> : vector<32x64xf32>
    %219 = tpu.matmul %192, %218, %cst_261 {dimension_numbers = #tpu.dot_dimension_numbers<[1], [0], [0], [1], [0, 0, 1, 1], [], []>} : vector<32x72xf32>, vector<72x64xf32>, vector<32x64xf32> -> vector<32x64xf32>
    %c0_262 = arith.constant 0 : index
    %c1_263 = arith.constant 1 : index
    %c0_264 = arith.constant 0 : index
    %c0_265 = arith.constant 0 : index
    %220 = vector.load %arg4[%c0_262, %c1_263, %c0_264, %c0_265] : memref<2x5x72x64xf32, #tpu.memory_space<vmem>>, vector<1x1x72x64xf32>
    %221 = vector.shape_cast %220 : vector<1x1x72x64xf32> to vector<72x64xf32>
    %cst_266 = arith.constant dense<0.000000e+00> : vector<32x64xf32>
    %222 = tpu.matmul %193, %221, %cst_266 {dimension_numbers = #tpu.dot_dimension_numbers<[1], [0], [0], [1], [0, 0, 1, 1], [], []>} : vector<32x72xf32>, vector<72x64xf32>, vector<32x64xf32> -> vector<32x64xf32>
    %223 = arith.addf %219, %222 : vector<32x64xf32>
    %c0_267 = arith.constant 0 : index
    %c2_268 = arith.constant 2 : index
    %c0_269 = arith.constant 0 : index
    %c0_270 = arith.constant 0 : index
    %224 = vector.load %arg4[%c0_267, %c2_268, %c0_269, %c0_270] : memref<2x5x72x64xf32, #tpu.memory_space<vmem>>, vector<1x1x72x64xf32>
    %225 = vector.shape_cast %224 : vector<1x1x72x64xf32> to vector<72x64xf32>
    %cst_271 = arith.constant dense<0.000000e+00> : vector<32x64xf32>
    %226 = tpu.matmul %194, %225, %cst_271 {dimension_numbers = #tpu.dot_dimension_numbers<[1], [0], [0], [1], [0, 0, 1, 1], [], []>} : vector<32x72xf32>, vector<72x64xf32>, vector<32x64xf32> -> vector<32x64xf32>
    %227 = arith.addf %223, %226 : vector<32x64xf32>
    %c0_272 = arith.constant 0 : index
    %c3_273 = arith.constant 3 : index
    %c0_274 = arith.constant 0 : index
    %c0_275 = arith.constant 0 : index
    %228 = vector.load %arg4[%c0_272, %c3_273, %c0_274, %c0_275] : memref<2x5x72x64xf32, #tpu.memory_space<vmem>>, vector<1x1x72x64xf32>
    %229 = vector.shape_cast %228 : vector<1x1x72x64xf32> to vector<72x64xf32>
    %cst_276 = arith.constant dense<0.000000e+00> : vector<32x64xf32>
    %230 = tpu.matmul %195, %229, %cst_276 {dimension_numbers = #tpu.dot_dimension_numbers<[1], [0], [0], [1], [0, 0, 1, 1], [], []>} : vector<32x72xf32>, vector<72x64xf32>, vector<32x64xf32> -> vector<32x64xf32>
    %231 = arith.addf %227, %230 : vector<32x64xf32>
    %c0_277 = arith.constant 0 : index
    %c4_278 = arith.constant 4 : index
    %c0_279 = arith.constant 0 : index
    %c0_280 = arith.constant 0 : index
    %232 = vector.load %arg4[%c0_277, %c4_278, %c0_279, %c0_280] : memref<2x5x72x64xf32, #tpu.memory_space<vmem>>, vector<1x1x72x64xf32>
    %233 = vector.shape_cast %232 : vector<1x1x72x64xf32> to vector<72x64xf32>
    %cst_281 = arith.constant dense<0.000000e+00> : vector<32x64xf32>
    %234 = tpu.matmul %196, %233, %cst_281 {dimension_numbers = #tpu.dot_dimension_numbers<[1], [0], [0], [1], [0, 0, 1, 1], [], []>} : vector<32x72xf32>, vector<72x64xf32>, vector<32x64xf32> -> vector<32x64xf32>
    %235 = arith.addf %231, %234 : vector<32x64xf32>
    %236 = arith.maximumf %216, %235 : vector<32x64xf32>
    %c1_282 = arith.constant 1 : index
    %c0_283 = arith.constant 0 : index
    %c0_284 = arith.constant 0 : index
    %c0_285 = arith.constant 0 : index
    %237 = vector.load %arg4[%c1_282, %c0_283, %c0_284, %c0_285] : memref<2x5x72x64xf32, #tpu.memory_space<vmem>>, vector<1x1x72x64xf32>
    %238 = vector.shape_cast %237 : vector<1x1x72x64xf32> to vector<72x64xf32>
    %cst_286 = arith.constant dense<0.000000e+00> : vector<32x64xf32>
    %239 = tpu.matmul %191, %238, %cst_286 {dimension_numbers = #tpu.dot_dimension_numbers<[1], [0], [0], [1], [0, 0, 1, 1], [], []>} : vector<32x72xf32>, vector<72x64xf32>, vector<32x64xf32> -> vector<32x64xf32>
    %c1_287 = arith.constant 1 : index
    %c1_288 = arith.constant 1 : index
    %c0_289 = arith.constant 0 : index
    %c0_290 = arith.constant 0 : index
    %240 = vector.load %arg4[%c1_287, %c1_288, %c0_289, %c0_290] : memref<2x5x72x64xf32, #tpu.memory_space<vmem>>, vector<1x1x72x64xf32>
    %241 = vector.shape_cast %240 : vector<1x1x72x64xf32> to vector<72x64xf32>
    %cst_291 = arith.constant dense<0.000000e+00> : vector<32x64xf32>
    %242 = tpu.matmul %192, %241, %cst_291 {dimension_numbers = #tpu.dot_dimension_numbers<[1], [0], [0], [1], [0, 0, 1, 1], [], []>} : vector<32x72xf32>, vector<72x64xf32>, vector<32x64xf32> -> vector<32x64xf32>
    %243 = arith.addf %239, %242 : vector<32x64xf32>
    %c1_292 = arith.constant 1 : index
    %c2_293 = arith.constant 2 : index
    %c0_294 = arith.constant 0 : index
    %c0_295 = arith.constant 0 : index
    %244 = vector.load %arg4[%c1_292, %c2_293, %c0_294, %c0_295] : memref<2x5x72x64xf32, #tpu.memory_space<vmem>>, vector<1x1x72x64xf32>
    %245 = vector.shape_cast %244 : vector<1x1x72x64xf32> to vector<72x64xf32>
    %cst_296 = arith.constant dense<0.000000e+00> : vector<32x64xf32>
    %246 = tpu.matmul %193, %245, %cst_296 {dimension_numbers = #tpu.dot_dimension_numbers<[1], [0], [0], [1], [0, 0, 1, 1], [], []>} : vector<32x72xf32>, vector<72x64xf32>, vector<32x64xf32> -> vector<32x64xf32>
    %247 = arith.addf %243, %246 : vector<32x64xf32>
    %c1_297 = arith.constant 1 : index
    %c3_298 = arith.constant 3 : index
    %c0_299 = arith.constant 0 : index
    %c0_300 = arith.constant 0 : index
    %248 = vector.load %arg4[%c1_297, %c3_298, %c0_299, %c0_300] : memref<2x5x72x64xf32, #tpu.memory_space<vmem>>, vector<1x1x72x64xf32>
    %249 = vector.shape_cast %248 : vector<1x1x72x64xf32> to vector<72x64xf32>
    %cst_301 = arith.constant dense<0.000000e+00> : vector<32x64xf32>
    %250 = tpu.matmul %194, %249, %cst_301 {dimension_numbers = #tpu.dot_dimension_numbers<[1], [0], [0], [1], [0, 0, 1, 1], [], []>} : vector<32x72xf32>, vector<72x64xf32>, vector<32x64xf32> -> vector<32x64xf32>
    %251 = arith.addf %247, %250 : vector<32x64xf32>
    %c1_302 = arith.constant 1 : index
    %c4_303 = arith.constant 4 : index
    %c0_304 = arith.constant 0 : index
    %c0_305 = arith.constant 0 : index
    %252 = vector.load %arg4[%c1_302, %c4_303, %c0_304, %c0_305] : memref<2x5x72x64xf32, #tpu.memory_space<vmem>>, vector<1x1x72x64xf32>
    %253 = vector.shape_cast %252 : vector<1x1x72x64xf32> to vector<72x64xf32>
    %cst_306 = arith.constant dense<0.000000e+00> : vector<32x64xf32>
    %254 = tpu.matmul %195, %253, %cst_306 {dimension_numbers = #tpu.dot_dimension_numbers<[1], [0], [0], [1], [0, 0, 1, 1], [], []>} : vector<32x72xf32>, vector<72x64xf32>, vector<32x64xf32> -> vector<32x64xf32>
    %255 = arith.addf %251, %254 : vector<32x64xf32>
    %c1_307 = arith.constant 1 : index
    %c0_308 = arith.constant 0 : index
    %c0_309 = arith.constant 0 : index
    %c0_310 = arith.constant 0 : index
    %256 = vector.load %arg4[%c1_307, %c0_308, %c0_309, %c0_310] : memref<2x5x72x64xf32, #tpu.memory_space<vmem>>, vector<1x1x72x64xf32>
    %257 = vector.shape_cast %256 : vector<1x1x72x64xf32> to vector<72x64xf32>
    %cst_311 = arith.constant dense<0.000000e+00> : vector<32x64xf32>
    %258 = tpu.matmul %192, %257, %cst_311 {dimension_numbers = #tpu.dot_dimension_numbers<[1], [0], [0], [1], [0, 0, 1, 1], [], []>} : vector<32x72xf32>, vector<72x64xf32>, vector<32x64xf32> -> vector<32x64xf32>
    %c1_312 = arith.constant 1 : index
    %c1_313 = arith.constant 1 : index
    %c0_314 = arith.constant 0 : index
    %c0_315 = arith.constant 0 : index
    %259 = vector.load %arg4[%c1_312, %c1_313, %c0_314, %c0_315] : memref<2x5x72x64xf32, #tpu.memory_space<vmem>>, vector<1x1x72x64xf32>
    %260 = vector.shape_cast %259 : vector<1x1x72x64xf32> to vector<72x64xf32>
    %cst_316 = arith.constant dense<0.000000e+00> : vector<32x64xf32>
    %261 = tpu.matmul %193, %260, %cst_316 {dimension_numbers = #tpu.dot_dimension_numbers<[1], [0], [0], [1], [0, 0, 1, 1], [], []>} : vector<32x72xf32>, vector<72x64xf32>, vector<32x64xf32> -> vector<32x64xf32>
    %262 = arith.addf %258, %261 : vector<32x64xf32>
    %c1_317 = arith.constant 1 : index
    %c2_318 = arith.constant 2 : index
    %c0_319 = arith.constant 0 : index
    %c0_320 = arith.constant 0 : index
    %263 = vector.load %arg4[%c1_317, %c2_318, %c0_319, %c0_320] : memref<2x5x72x64xf32, #tpu.memory_space<vmem>>, vector<1x1x72x64xf32>
    %264 = vector.shape_cast %263 : vector<1x1x72x64xf32> to vector<72x64xf32>
    %cst_321 = arith.constant dense<0.000000e+00> : vector<32x64xf32>
    %265 = tpu.matmul %194, %264, %cst_321 {dimension_numbers = #tpu.dot_dimension_numbers<[1], [0], [0], [1], [0, 0, 1, 1], [], []>} : vector<32x72xf32>, vector<72x64xf32>, vector<32x64xf32> -> vector<32x64xf32>
    %266 = arith.addf %262, %265 : vector<32x64xf32>
    %c1_322 = arith.constant 1 : index
    %c3_323 = arith.constant 3 : index
    %c0_324 = arith.constant 0 : index
    %c0_325 = arith.constant 0 : index
    %267 = vector.load %arg4[%c1_322, %c3_323, %c0_324, %c0_325] : memref<2x5x72x64xf32, #tpu.memory_space<vmem>>, vector<1x1x72x64xf32>
    %268 = vector.shape_cast %267 : vector<1x1x72x64xf32> to vector<72x64xf32>
    %cst_326 = arith.constant dense<0.000000e+00> : vector<32x64xf32>
    %269 = tpu.matmul %195, %268, %cst_326 {dimension_numbers = #tpu.dot_dimension_numbers<[1], [0], [0], [1], [0, 0, 1, 1], [], []>} : vector<32x72xf32>, vector<72x64xf32>, vector<32x64xf32> -> vector<32x64xf32>
    %270 = arith.addf %266, %269 : vector<32x64xf32>
    %c1_327 = arith.constant 1 : index
    %c4_328 = arith.constant 4 : index
    %c0_329 = arith.constant 0 : index
    %c0_330 = arith.constant 0 : index
    %271 = vector.load %arg4[%c1_327, %c4_328, %c0_329, %c0_330] : memref<2x5x72x64xf32, #tpu.memory_space<vmem>>, vector<1x1x72x64xf32>
    %272 = vector.shape_cast %271 : vector<1x1x72x64xf32> to vector<72x64xf32>
    %cst_331 = arith.constant dense<0.000000e+00> : vector<32x64xf32>
    %273 = tpu.matmul %196, %272, %cst_331 {dimension_numbers = #tpu.dot_dimension_numbers<[1], [0], [0], [1], [0, 0, 1, 1], [], []>} : vector<32x72xf32>, vector<72x64xf32>, vector<32x64xf32> -> vector<32x64xf32>
    %274 = arith.addf %270, %273 : vector<32x64xf32>
    %275 = arith.maximumf %255, %274 : vector<32x64xf32>
    %276 = arith.maximumf %236, %275 : vector<32x64xf32>
    %277 = vector.broadcast %197 : vector<1x64xf32> to vector<32x64xf32>
    %278 = arith.addf %276, %277 : vector<32x64xf32>
    %cst_332 = arith.constant 0.000000e+00 : f32
    %279 = vector.broadcast %cst_332 : f32 to vector<32x64xf32>
    %280 = arith.maximumf %278, %279 : vector<32x64xf32>
    %281 = vector.extract_strided_slice %280 {offsets = [0, 0], sizes = [8, 64], strides = [1, 1]} : vector<32x64xf32> to vector<8x64xf32>
    %c0_333 = arith.constant 0 : index
    %c0_334 = arith.constant 0 : index
    %c0_335 = arith.constant 0 : index
    %282 = vector.load %arg6[%c0_333, %c0_334, %c0_335] : memref<4x64x120xf32, #tpu.memory_space<vmem>>, vector<1x64x120xf32>
    %283 = vector.shape_cast %282 : vector<1x64x120xf32> to vector<64x120xf32>
    %cst_336 = arith.constant dense<0.000000e+00> : vector<8x120xf32>
    %284 = tpu.matmul %281, %283, %cst_336 {dimension_numbers = #tpu.dot_dimension_numbers<[1], [0], [0], [1], [0, 0, 1, 1], [], []>} : vector<8x64xf32>, vector<64x120xf32>, vector<8x120xf32> -> vector<8x120xf32>
    %285 = vector.extract_strided_slice %280 {offsets = [8, 0], sizes = [8, 64], strides = [1, 1]} : vector<32x64xf32> to vector<8x64xf32>
    %c1_337 = arith.constant 1 : index
    %c0_338 = arith.constant 0 : index
    %c0_339 = arith.constant 0 : index
    %286 = vector.load %arg6[%c1_337, %c0_338, %c0_339] : memref<4x64x120xf32, #tpu.memory_space<vmem>>, vector<1x64x120xf32>
    %287 = vector.shape_cast %286 : vector<1x64x120xf32> to vector<64x120xf32>
    %cst_340 = arith.constant dense<0.000000e+00> : vector<8x120xf32>
    %288 = tpu.matmul %285, %287, %cst_340 {dimension_numbers = #tpu.dot_dimension_numbers<[1], [0], [0], [1], [0, 0, 1, 1], [], []>} : vector<8x64xf32>, vector<64x120xf32>, vector<8x120xf32> -> vector<8x120xf32>
    %289 = arith.addf %284, %288 : vector<8x120xf32>
    %290 = vector.extract_strided_slice %280 {offsets = [16, 0], sizes = [8, 64], strides = [1, 1]} : vector<32x64xf32> to vector<8x64xf32>
    %c2_341 = arith.constant 2 : index
    %c0_342 = arith.constant 0 : index
    %c0_343 = arith.constant 0 : index
    %291 = vector.load %arg6[%c2_341, %c0_342, %c0_343] : memref<4x64x120xf32, #tpu.memory_space<vmem>>, vector<1x64x120xf32>
    %292 = vector.shape_cast %291 : vector<1x64x120xf32> to vector<64x120xf32>
    %cst_344 = arith.constant dense<0.000000e+00> : vector<8x120xf32>
    %293 = tpu.matmul %290, %292, %cst_344 {dimension_numbers = #tpu.dot_dimension_numbers<[1], [0], [0], [1], [0, 0, 1, 1], [], []>} : vector<8x64xf32>, vector<64x120xf32>, vector<8x120xf32> -> vector<8x120xf32>
    %294 = arith.addf %289, %293 : vector<8x120xf32>
    %295 = vector.extract_strided_slice %280 {offsets = [24, 0], sizes = [8, 64], strides = [1, 1]} : vector<32x64xf32> to vector<8x64xf32>
    %c3_345 = arith.constant 3 : index
    %c0_346 = arith.constant 0 : index
    %c0_347 = arith.constant 0 : index
    %296 = vector.load %arg6[%c3_345, %c0_346, %c0_347] : memref<4x64x120xf32, #tpu.memory_space<vmem>>, vector<1x64x120xf32>
    %297 = vector.shape_cast %296 : vector<1x64x120xf32> to vector<64x120xf32>
    %cst_348 = arith.constant dense<0.000000e+00> : vector<8x120xf32>
    %298 = tpu.matmul %295, %297, %cst_348 {dimension_numbers = #tpu.dot_dimension_numbers<[1], [0], [0], [1], [0, 0, 1, 1], [], []>} : vector<8x64xf32>, vector<64x120xf32>, vector<8x120xf32> -> vector<8x120xf32>
    %299 = arith.addf %294, %298 : vector<8x120xf32>
    %c0_349 = arith.constant 0 : index
    %c0_350 = arith.constant 0 : index
    %300 = vector.load %arg7[%c0_349, %c0_350] : memref<1x120xf32, #tpu.memory_space<vmem>>, vector<1x120xf32>
    %301 = vector.broadcast %300 : vector<1x120xf32> to vector<8x120xf32>
    %302 = arith.addf %299, %301 : vector<8x120xf32>
    %cst_351 = arith.constant 0.000000e+00 : f32
    %303 = vector.broadcast %cst_351 : f32 to vector<8x120xf32>
    %304 = arith.maximumf %302, %303 : vector<8x120xf32>
    %c0_352 = arith.constant 0 : index
    %c0_353 = arith.constant 0 : index
    %305 = vector.load %arg8[%c0_352, %c0_353] : memref<120x84xf32, #tpu.memory_space<vmem>>, vector<120x84xf32>
    %cst_354 = arith.constant dense<0.000000e+00> : vector<8x84xf32>
    %306 = tpu.matmul %304, %305, %cst_354 {dimension_numbers = #tpu.dot_dimension_numbers<[1], [0], [0], [1], [0, 0, 1, 1], [], []>} : vector<8x120xf32>, vector<120x84xf32>, vector<8x84xf32> -> vector<8x84xf32>
    %c0_355 = arith.constant 0 : index
    %c0_356 = arith.constant 0 : index
    %307 = vector.load %arg9[%c0_355, %c0_356] : memref<1x84xf32, #tpu.memory_space<vmem>>, vector<1x84xf32>
    %308 = vector.broadcast %307 : vector<1x84xf32> to vector<8x84xf32>
    %309 = arith.addf %306, %308 : vector<8x84xf32>
    %cst_357 = arith.constant 0.000000e+00 : f32
    %310 = vector.broadcast %cst_357 : f32 to vector<8x84xf32>
    %311 = arith.maximumf %309, %310 : vector<8x84xf32>
    %c0_358 = arith.constant 0 : index
    %c0_359 = arith.constant 0 : index
    %312 = vector.load %arg10[%c0_358, %c0_359] : memref<84x128xf32, #tpu.memory_space<vmem>>, vector<84x128xf32>
    %cst_360 = arith.constant dense<0.000000e+00> : vector<8x128xf32>
    %313 = tpu.matmul %311, %312, %cst_360 {dimension_numbers = #tpu.dot_dimension_numbers<[1], [0], [0], [1], [0, 0, 1, 1], [], []>} : vector<8x84xf32>, vector<84x128xf32>, vector<8x128xf32> -> vector<8x128xf32>
    %c0_361 = arith.constant 0 : index
    %c0_362 = arith.constant 0 : index
    %314 = vector.load %arg11[%c0_361, %c0_362] : memref<1x128xf32, #tpu.memory_space<vmem>>, vector<1x128xf32>
    %315 = vector.broadcast %314 : vector<1x128xf32> to vector<8x128xf32>
    %316 = arith.addf %313, %315 : vector<8x128xf32>
    %c0_363 = arith.constant 0 : index
    %c0_364 = arith.constant 0 : index
    %317 = vector.load %arg12[%c0_363, %c0_364] : memref<8x128xf32, #tpu.memory_space<vmem>>, vector<8x128xf32>
    tpu.vector_store %arg12[%c0_363, %c0_364], %316 {strides = array<i32>} : memref<8x128xf32, #tpu.memory_space<vmem>>, vector<8x128xf32>,
    return
  }
  func.func @transform_0(%arg0: i32) -> (i32, i32, i32, i32) {
    %c0_i32 = arith.constant 0 : i32
    %c0_i32_0 = arith.constant 0 : i32
    %c0_i32_1 = arith.constant 0 : i32
    %c0_i32_2 = arith.constant 0 : i32
    return %c0_i32, %c0_i32_0, %arg0, %c0_i32_1 : i32, i32, i32, i32
  }
  func.func @transform_1(%arg0: i32) -> (i32, i32, i32, i32) {
    %c0_i32 = arith.constant 0 : i32
    %c0_i32_0 = arith.constant 0 : i32
    %c0_i32_1 = arith.constant 0 : i32
    %c0_i32_2 = arith.constant 0 : i32
    %c0_i32_3 = arith.constant 0 : i32
    return %c0_i32, %c0_i32_0, %c0_i32_1, %c0_i32_2 : i32, i32, i32, i32
  }
  func.func @transform_2(%arg0: i32) -> (i32, i32) {
    %c0_i32 = arith.constant 0 : i32
    %c0_i32_0 = arith.constant 0 : i32
    %c0_i32_1 = arith.constant 0 : i32
    return %c0_i32, %c0_i32_0 : i32, i32
  }
  func.func @transform_3(%arg0: i32) -> (i32, i32, i32, i32) {
    %c0_i32 = arith.constant 0 : i32
    %c0_i32_0 = arith.constant 0 : i32
    %c0_i32_1 = arith.constant 0 : i32
    %c0_i32_2 = arith.constant 0 : i32
    %c0_i32_3 = arith.constant 0 : i32
    return %c0_i32, %c0_i32_0, %c0_i32_1, %c0_i32_2 : i32, i32, i32, i32
  }
  func.func @transform_4(%arg0: i32) -> (i32, i32) {
    %c0_i32 = arith.constant 0 : i32
    %c0_i32_0 = arith.constant 0 : i32
    %c0_i32_1 = arith.constant 0 : i32
    return %c0_i32, %c0_i32_0 : i32, i32
  }
  func.func @transform_5(%arg0: i32) -> (i32, i32, i32) {
    %c0_i32 = arith.constant 0 : i32
    %c0_i32_0 = arith.constant 0 : i32
    %c0_i32_1 = arith.constant 0 : i32
    %c0_i32_2 = arith.constant 0 : i32
    return %c0_i32, %c0_i32_0, %c0_i32_1 : i32, i32, i32
  }
  func.func @transform_6(%arg0: i32) -> (i32, i32) {
    %c0_i32 = arith.constant 0 : i32
    %c0_i32_0 = arith.constant 0 : i32
    %c0_i32_1 = arith.constant 0 : i32
    return %c0_i32, %c0_i32_0 : i32, i32
  }
  func.func @transform_7(%arg0: i32) -> (i32, i32) {
    %c0_i32 = arith.constant 0 : i32
    %c0_i32_0 = arith.constant 0 : i32
    %c0_i32_1 = arith.constant 0 : i32
    return %c0_i32, %c0_i32_0 : i32, i32
  }
  func.func @transform_8(%arg0: i32) -> (i32, i32) {
    %c0_i32 = arith.constant 0 : i32
    %c0_i32_0 = arith.constant 0 : i32
    %c0_i32_1 = arith.constant 0 : i32
    return %c0_i32, %c0_i32_0 : i32, i32
  }
  func.func @transform_9(%arg0: i32) -> (i32, i32) {
    %c0_i32 = arith.constant 0 : i32
    %c0_i32_0 = arith.constant 0 : i32
    %c0_i32_1 = arith.constant 0 : i32
    return %c0_i32, %c0_i32_0 : i32, i32
  }
  func.func @transform_10(%arg0: i32) -> (i32, i32) {
    %c0_i32 = arith.constant 0 : i32
    %c0_i32_0 = arith.constant 0 : i32
    %c0_i32_1 = arith.constant 0 : i32
    return %c0_i32, %c0_i32_0 : i32, i32
  }
  func.func @transform_11(%arg0: i32) -> (i32, i32) {
    %c0_i32 = arith.constant 0 : i32
    %c0_i32_0 = arith.constant 0 : i32
    return %arg0, %c0_i32 : i32, i32
  }
}

</mosaic_0001>

<bundles_post_ra>
// kernel: tile.13
= control target key start
LH: loop header
LB: loop body
LE: loop exit
PB: predicated region body
PF: predicated region fallthrough
CT: control target
= control target key end

     0   :  { %s28_s0 = inlined_call_operand.vmem [shape: f32[6], index: 0, kind: input, shape index: {}]   ;;  %s29_s1 = inlined_call_operand.vmem [shape: f32[12,6], index: 1, kind: output, shape index: {}]  }
   0x1   :  { %v4_v0 = vld [vmem:[%s28_s0] ss:$0 sm:$0xff] }
   0x2   :  { %5 = vst [vmem:[%s29_s1] sm:$0xff] %v4_v0 }
   0x3   :  { %8 = vst [vmem:[%s29_s1 + $0x8] sm:$0xff] %v4_v0 }

// kernel: tile.14
= control target key start
LH: loop header
LB: loop body
LE: loop exit
PB: predicated region body
PF: predicated region fallthrough
CT: control target
= control target key end

     0   :  { %s99_s10 = smov 66   ;;  %s100_s11 = smov 54   ;;  %vm3_vm0 = vcmask 48128   ;;  %vm9_vm1 = vcmask 589328   ;;  %vm15_vm2 = vcmask 540128   ;;  %vm21_vm3 = vcmask 490928   ;;  %s159_s0 = inlined_call_operand.vmem [shape: f32[12,6], index: 0, kind: input, shape index: {}]   ;;  %s160_s1 = inlined_call_operand.vmem [shape: f32[1,72], index: 1, kind: output, shape index: {}]  }
   0x1   :  { %v77_v0 = vld [vmem:[%s159_s0 + $0xb] sm:$0x1]   ;;  %v79_v1 = vld [vmem:[%s159_s0 + $0x9] sm:$0x1]   ;;  %v81_v2 = vld [vmem:[%s159_s0 + $0x7] sm:$0x1]  }
   0x2   :  { %7 = vrot.lane.b32.xlu0 %v77_v0, %s99_s10  ;;  %19 = vrot.lane.b32.xlu1 %v79_v1, %s100_s11  ;;  %s101_s14 = smov 42   ;;  %v78_v3 = vld [vmem:[%s159_s0 + $0xa] sm:$0x1]   ;;  %v80_v4 = vld [vmem:[%s159_s0 + $0x8] sm:$0x1]   ;;  %s102_s19 = smov 60  }
   0x3   :  { %31 = vrot.lane.b32.xlu2 %v81_v2, %s101_s14  ;;  %s103_s20 = smov 48   ;;  %v82_v5 = vld [vmem:[%s159_s0 + $0x6] sm:$0x1]   ;;  %s104_s23 = smov 36   ;;  %v83_v6 = vld [vmem:[%s159_s0 + $0x5] sm:$0x1]  }
   0x4   :  { %v84_v7 = vld [vmem:[%s159_s0 + $0x4] sm:$0x1]   ;;  %s105_s28 = smov 30   ;;  %s106_s29 = smov 24   ;;  %v85_v8 = vld [vmem:[%s159_s0 + $0x3] sm:$0x1]  }
   0x5   :  { %s107_s3 = smov 18   ;;  %v86_v9 = vld [vmem:[%s159_s0 + $0x2] sm:$0x1]   ;;  %v87_v10 = vld [vmem:[%s159_s0 + $0x1] sm:$0x1]   ;;  %s108_s8 = smov 12  }
   0x6   :  { %s109_s9 = smov 6   ;;  %v2_v11 = vld [vmem:[%s159_s0] sm:$0x1]   ;;  %vm27_vm4 = vcmask 441728   ;;  %vm33_vm5 = vcmask 392528   ;;  %vm39_vm6 = vcmask 343328  }
   0x7   :  { %4 = vst.msk [vmem:[#allocation0] sm:$0x1] %vm3_vm0, %v2_v11   ;;  %vm45_vm7 = vcmask 294128   ;;  %vm51_vm8 = vcmask 244928   ;;  %vm57_vm9 = vcmask 195728   ;;  %vm63_vm10 = vcmask 146528  }
   0x8   :  { %vm69_vm11 = vcmask 97328  }
   0xa   :  { %13 = vrot.lane.b32.xlu0 %v78_v3, %s102_s19  ;;  %25 = vrot.lane.b32.xlu1 %v80_v4, %s103_s20 }
   0xb   :  { %37 = vrot.lane.b32.xlu2 %v82_v5, %s104_s23 }
  0x12   :  { %43 = vrot.lane.b32.xlu0 %v83_v6, %s105_s28  ;;  %49 = vrot.lane.b32.xlu1 %v84_v7, %s106_s29 }
  0x13   :  { %55 = vrot.lane.b32.xlu2 %v85_v8, %s107_s3 }
  0x1a   :  { %61 = vrot.lane.b32.xlu0 %v86_v9, %s108_s8  ;;  %67 = vrot.lane.b32.xlu1 %v87_v10, %s109_s9 }
  0x5d   :  { %v32_v12 = vpop.permute.xlu2 %31  }
  0x65   :  { %v38_v13 = vpop.permute.xlu2 %37  }
  0x6d   :  { %v56_v14 = vpop.permute.xlu2 %55  }
  0x74   :  { %v8_v15 = vpop.permute.xlu0 %7   ;;  %v20_v16 = vpop.permute.xlu1 %19  }
  0x75   :  { %10 = vst.msk [vmem:[#allocation0] sm:$0x1] %vm9_vm1, %v8_v15  }
  0x7c   :  { %v14_v17 = vpop.permute.xlu0 %13   ;;  %v26_v18 = vpop.permute.xlu1 %25  }
  0x7d   :  { %16 = vst.msk [vmem:[#allocation0] sm:$0x1] %vm15_vm2, %v14_v17  }
  0x7e   :  { %22 = vst.msk [vmem:[#allocation0] sm:$0x1] %vm21_vm3, %v20_v16  }
  0x7f   :  { %28 = vst.msk [vmem:[#allocation0] sm:$0x1] %vm27_vm4, %v26_v18  }
  0x80   :  { %34 = vst.msk [vmem:[#allocation0] sm:$0x1] %vm33_vm5, %v32_v12  }
  0x81   :  { %40 = vst.msk [vmem:[#allocation0] sm:$0x1] %vm39_vm6, %v38_v13  }
  0x84   :  { %v44_v19 = vpop.permute.xlu0 %43   ;;  %v50_v20 = vpop.permute.xlu1 %49  }
  0x85   :  { %46 = vst.msk [vmem:[#allocation0] sm:$0x1] %vm45_vm7, %v44_v19  }
  0x86   :  { %52 = vst.msk [vmem:[#allocation0] sm:$0x1] %vm51_vm8, %v50_v20  }
  0x87   :  { %58 = vst.msk [vmem:[#allocation0] sm:$0x1] %vm57_vm9, %v56_v14  }
  0x8c   :  { %v62_v21 = vpop.permute.xlu0 %61   ;;  %v68_v22 = vpop.permute.xlu1 %67  }
  0x8d   :  { %64 = vst.msk [vmem:[#allocation0] sm:$0x1] %vm63_vm10, %v62_v21  }
  0x8e   :  { %70 = vst.msk [vmem:[#allocation0] sm:$0x1] %vm69_vm11, %v68_v22  }
  0x95   :  { %v73_v23 = vld [vmem:[#allocation0] sm:$0x1] }
  0x96   :  { %76 = vst [vmem:[%s160_s1] sm:$0x1] %v73_v23 }

// kernel: tile.18
= control target key start
LH: loop header
LB: loop body
LE: loop exit
PB: predicated region body
PF: predicated region fallthrough
CT: control target
= control target key end

     0   :  { %s22_s0 = inlined_call_operand.vmem [shape: f32[16], index: 0, kind: input, shape index: {}]   ;;  %s23_s1 = inlined_call_operand.vmem [shape: f32[4,16], index: 1, kind: output, shape index: {}]  }
   0x1   :  { %v4_v0 = vld [vmem:[%s22_s0] ss:$0 sm:$0xff] }
   0x2   :  { %5 = vst [vmem:[%s23_s1] sm:$0xf] %v4_v0 }

// kernel: tile.19
= control target key start
LH: loop header
LB: loop body
LE: loop exit
PB: predicated region body
PF: predicated region fallthrough
CT: control target
= control target key end

     0   :  { %s37_s8 = smov 16   ;;  %s38_s9 = smov 32   ;;  %vm7_vm0 = vcmask 130048   ;;  %vm13_vm1 = vcmask 523648   ;;  %vm19_vm2 = vcmask 392448   ;;  %vm25_vm3 = vcmask 261248   ;;  %s55_s0 = inlined_call_operand.vmem [shape: f32[4,16], index: 0, kind: input, shape index: {}]   ;;  %s56_s1 = inlined_call_operand.vmem [shape: f32[1,64], index: 1, kind: output, shape index: {}]  }
   0x1   :  { %v4_v0 = vld [vmem:[%s55_s0] sm:$0xf]  ;;  %s36_s0 = smov 48  }
   0x2   :  { %5 = vst [vmem:[#allocation1] sm:$0xf] %v4_v0 }
   0x9   :  { %v10_v1 = vld [vmem:[#allocation1 + $0x3] sm:$0x1]   ;;  %v22_v2 = vld [vmem:[#allocation1 + $0x1] sm:$0x1]   ;;  %v16_v3 = vld [vmem:[#allocation1 + $0x2] sm:$0x1]  }
   0xa   :  { %11 = vrot.lane.b32.xlu0 %v10_v1, %s36_s0  ;;  %23 = vrot.lane.b32.xlu1 %v22_v2, %s37_s8  ;;  %v6_v4 = vld [vmem:[#allocation1] sm:$0x1]  }
   0xb   :  { %8 = vst.msk [vmem:[#allocation0] sm:$0x1] %vm7_vm0, %v6_v4  }
  0x12   :  { %17 = vrot.lane.b32.xlu0 %v16_v3, %s38_s9 }
  0x7c   :  { %v12_v5 = vpop.permute.xlu0 %11   ;;  %v24_v6 = vpop.permute.xlu1 %23  }
  0x7d   :  { %14 = vst.msk [vmem:[#allocation0] sm:$0x1] %vm13_vm1, %v12_v5  }
  0x84   :  { %v18_v7 = vpop.permute.xlu0 %17  }
  0x85   :  { %20 = vst.msk [vmem:[#allocation0] sm:$0x1] %vm19_vm2, %v18_v7  }
  0x86   :  { %26 = vst.msk [vmem:[#allocation0] sm:$0x1] %vm25_vm3, %v24_v6  }
  0x8d   :  { %v29_v8 = vld [vmem:[#allocation0] sm:$0x1] }
  0x8e   :  { %32 = vst [vmem:[%s56_s1] sm:$0x1] %v29_v8 }

// kernel: simple_convnet_forward.1
= control target key start
LH: loop header
LB: loop body
LE: loop exit
PB: predicated region body
PF: predicated region fallthrough
CT: control target
= control target key end

     0   :  { %s4192_s17 = smov 0   ;;  %s4194_s18 = smov 0   ;;  %s6780_s0 = inlined_call_operand.vmem [shape: f32[4,7,16,28], index: 0, kind: input, shape index: {}]   ;;  %s6781_s1 = inlined_call_operand.vmem [shape: f32[2,5,28,72], index: 1, kind: input, shape index: {}]   ;;  %s6782_s2 = inlined_call_operand.vmem [shape: f32[1,72], index: 2, kind: input, shape index: {}]   ;;  %s6783_s3 = inlined_call_operand.vmem [shape: f32[2,5,72,64], index: 3, kind: input, shape index: {}]   ;;  %s6784_s4 = inlined_call_operand.vmem [shape: f32[1,64], index: 4, kind: input, shape index: {}]   ;;  %s6785_s5 = inlined_call_operand.vmem [shape: f32[4,64,120], index: 5, kind: input, shape index: {}]   ;;  %s6786_s6 = inlined_call_operand.vmem [shape: f32[1,120], index: 6, kind: input, shape index: {}]   ;;  %s6787_s7 = inlined_call_operand.vmem [shape: f32[120,84], index: 7, kind: input, shape index: {}]   ;;  %s6788_s8 = inlined_call_operand.vmem [shape: f32[1,84], index: 8, kind: input, shape index: {}]   ;;  %s6789_s9 = inlined_call_operand.vmem [shape: f32[84,128], index: 9, kind: input, shape index: {}]   ;;  %s6790_s10 = inlined_call_operand.vmem [shape: f32[1,128], index: 10, kind: input, shape index: {}]   ;;  %s6791_s11 = inlined_call_operand.vmem [shape: f32[16,128], index: 11, kind: output, shape index: {}]  }
   0x1   :  { %s4196_s19 = smov 0  }
   0x2 LB: > { %s3486_s20 = sadd.s32 4294967295, %s4130_s19   ;;  %s4209_s21 = sadd.s32 1, %s4130_s19   ;;  %s4130_s19 = sphi %s4196_s19, %s6956_s19   ;;  %s4126_s18 = sphi %s4194_s18, %s6955_s18   ;;  %s4122_s17 = sphi %s4192_s17, %s6954_s17  }
   0x3   : > { %s25_s22 = ssub.s32 %s4130_s19, %s4209_s21  ;;  %s28_s23 = sadd.s32 1, %s4126_s18 }
   0x4   : > { %p26_p0 = scmp.eq.s32.totalorder %s25_s22, 0  ;;  %p35_p1 = scmp.ne.s32.totalorder %s4126_s18, %s4122_s17 }
   0x5   : > { %p36_p2 = scmp.eq.s32.totalorder %s4130_s19, 0  ;;  %p3489_p4 = scmp.ge.s32.totalorder %s4130_s19, 2 }
   0x6   : > { %s4218_s24 = scalar_select %p26_p0, %s4126_s18, %s28_s23  }
   0x7   : > { %p37_p3 = por %p36_p2, %p35_p1  ;;  %327 = sbr.rel (%p3489_p4) target bundleno = 44 (0x2c), region = 56 }
   0xc   : > { %330 = sbr.rel (!%p37_p3) target bundleno = 44 (0x2c), region = 60  ;;  %s332_s25 = sand.u32 (%p37_p3), 1, %s4126_s18  }
   0xd   : > { %s3490_s26 = sshll.u32 (%p37_p3), %s4130_s19, 3  ;;  %s4053_s27 = smul.u32 (%p37_p3), 224, %s332_s25 }
   0xe   : > { %s4226_s30 = scalar_lea.vmem (%p37_p3), %s6780_s0, %s3490_s26 }
   0xf   : > { %v419_v0 = vld [vmem:[%s4226_s30] sm:$0xff] (%p37_p3)  ;;  %v421_v1 = vld [vmem:[%s4226_s30 + $0x10] sm:$0xff] (%p37_p3)  ;;  %s4231_s12 = scalar_lea.vmem (%p37_p3), [#allocation2], %s4053_s27 }
  0x10   : > { %v423_v2 = vld [vmem:[%s4226_s30 + $0x20] sm:$0xff] (%p37_p3)  ;;  %420 = vst [vmem:[%s4231_s12] sm:$0xff] (%p37_p3), %v419_v0  ;;  %v425_v3 = vld [vmem:[%s4226_s30 + $0x30] sm:$0xff] (%p37_p3) }
  0x11   : > { %422 = vst [vmem:[%s4231_s12 + $0x8] sm:$0xff] %v421_v1  ;;  %v427_v4 = vld [vmem:[%s4226_s30 + $0x40] sm:$0xff]  ;;  %v429_v5 = vld [vmem:[%s4226_s30 + $0x50] sm:$0xff] }
  0x12   : > { %424 = vst [vmem:[%s4231_s12 + $0x10] sm:$0xff] %v423_v2  ;;  %v431_v6 = vld [vmem:[%s4226_s30 + $0x60] sm:$0xff]  ;;  %v433_v7 = vld [vmem:[%s4226_s30 + $0x70] sm:$0xff] }
  0x13   : > { %426 = vst [vmem:[%s4231_s12 + $0x18] sm:$0xff] %v425_v3  ;;  %v435_v8 = vld [vmem:[%s4226_s30 + $0x80] sm:$0xff]  ;;  %v437_v9 = vld [vmem:[%s4226_s30 + $0x90] sm:$0xff] }
  0x14   : > { %428 = vst [vmem:[%s4231_s12 + $0x20] sm:$0xff] %v427_v4  ;;  %v439_v10 = vld [vmem:[%s4226_s30 + $0xa0] sm:$0xff]  ;;  %v441_v11 = vld [vmem:[%s4226_s30 + $0xb0] sm:$0xff] }
  0x15   : > { %430 = vst [vmem:[%s4231_s12 + $0x28] sm:$0xff] %v429_v5  ;;  %v443_v12 = vld [vmem:[%s4226_s30 + $0xc0] sm:$0xff]  ;;  %v445_v13 = vld [vmem:[%s4226_s30 + $0xd0] sm:$0xff] }
  0x16   : > { %432 = vst [vmem:[%s4231_s12 + $0x30] sm:$0xff] %v431_v6  ;;  %v447_v14 = vld [vmem:[%s4226_s30 + $0xe0] sm:$0xff]  ;;  %v449_v15 = vld [vmem:[%s4226_s30 + $0xf0] sm:$0xff] }
  0x17   : > { %434 = vst [vmem:[%s4231_s12 + $0x38] sm:$0xff] %v433_v7  ;;  %v451_v16 = vld [vmem:[%s4226_s30 + $0x100] sm:$0xff]  ;;  %v453_v17 = vld [vmem:[%s4226_s30 + $0x110] sm:$0xff] }
  0x18   : > { %436 = vst [vmem:[%s4231_s12 + $0x40] sm:$0xff] %v435_v8  ;;  %v455_v18 = vld [vmem:[%s4226_s30 + $0x120] sm:$0xff]  ;;  %v457_v19 = vld [vmem:[%s4226_s30 + $0x130] sm:$0xff] }
  0x19   : > { %438 = vst [vmem:[%s4231_s12 + $0x48] sm:$0xff] %v437_v9  ;;  %v459_v20 = vld [vmem:[%s4226_s30 + $0x140] sm:$0xff]  ;;  %v461_v21 = vld [vmem:[%s4226_s30 + $0x150] sm:$0xff] }
  0x1a   : > { %440 = vst [vmem:[%s4231_s12 + $0x50] sm:$0xff] %v439_v10  ;;  %v463_v22 = vld [vmem:[%s4226_s30 + $0x160] sm:$0xff]  ;;  %v465_v23 = vld [vmem:[%s4226_s30 + $0x170] sm:$0xff] }
  0x1b   : > { %442 = vst [vmem:[%s4231_s12 + $0x58] sm:$0xff] %v441_v11  ;;  %v467_v24 = vld [vmem:[%s4226_s30 + $0x180] sm:$0xff]  ;;  %v469_v25 = vld [vmem:[%s4226_s30 + $0x190] sm:$0xff] }
  0x1c   : > { %444 = vst [vmem:[%s4231_s12 + $0x60] sm:$0xff] %v443_v12  ;;  %v471_v26 = vld [vmem:[%s4226_s30 + $0x1a0] sm:$0xff]  ;;  %v473_v27 = vld [vmem:[%s4226_s30 + $0x1b0] sm:$0xff] }
  0x1d   : > { %446 = vst [vmem:[%s4231_s12 + $0x68] sm:$0xff] %v445_v13 }
  0x1e   : > { %448 = vst [vmem:[%s4231_s12 + $0x70] sm:$0xff] %v447_v14 }
  0x1f   : > { %450 = vst [vmem:[%s4231_s12 + $0x78] sm:$0xff] %v449_v15 }
  0x20   : > { %452 = vst [vmem:[%s4231_s12 + $0x80] sm:$0xff] %v451_v16 }
  0x21   : > { %454 = vst [vmem:[%s4231_s12 + $0x88] sm:$0xff] %v453_v17 }
  0x22   : > { %456 = vst [vmem:[%s4231_s12 + $0x90] sm:$0xff] %v455_v18 }
  0x23   : > { %458 = vst [vmem:[%s4231_s12 + $0x98] sm:$0xff] %v457_v19 }
  0x24   : > { %460 = vst [vmem:[%s4231_s12 + $0xa0] sm:$0xff] %v459_v20 }
  0x25   : > { %462 = vst [vmem:[%s4231_s12 + $0xa8] sm:$0xff] %v461_v21 }
  0x26   : > { %464 = vst [vmem:[%s4231_s12 + $0xb0] sm:$0xff] %v463_v22 }
  0x27   : > { %466 = vst [vmem:[%s4231_s12 + $0xb8] sm:$0xff] %v465_v23 }
  0x28   : > { %468 = vst [vmem:[%s4231_s12 + $0xc0] sm:$0xff] %v467_v24 }
  0x29   : > { %470 = vst [vmem:[%s4231_s12 + $0xc8] sm:$0xff] %v469_v25 }
  0x2a   : > { %472 = vst [vmem:[%s4231_s12 + $0xd0] sm:$0xff] %v471_v26 }
  0x2b   : > { %474 = vst [vmem:[%s4231_s12 + $0xd8] sm:$0xff] %v473_v27 }
  0x2c PF: > { %p3491_p5 = scmp.ge.s32.totalorder %s4130_s19, 1  ;;  %p479_p6 = scmp.lt.s32.totalorder %s4130_s19, 3 }
  0x2e   : > { %p480_p7 = pnand %p3491_p5, %p479_p6 }
  0x30   : > { %483 = sbr.rel (%p480_p7) target bundleno = 1353 (0x549), region = 98 }
  0x35   : > { %v4291_v28 = vld [vmem:[%s6781_s1 + $0x38] sm:$0xf]  ;;  %vm612_vm0 = vcmask 1043456   ;;  %v4301_v30 = vld [vmem:[%s6781_s1 + $0x30] sm:$0xff]  ;;  %s486_s27 = sand.u32 1, %s4122_s17   ;;  %v4318_v32 = vld [vmem:[%s6781_s1 + $0x28] sm:$0xff] }
  0x36   : > { %v4296_v29 = vld [vmem:[%s6781_s1 + $0x18] sm:$0xf]  ;;  %3539 = vmatpush.msk.msra.mxu0 %vm612_vm0, %v4291_v28  ;;  %4045 = vmatpush.msk.msra.mxu2 %vm612_vm0, %v4291_v28  ;;  %v4310_v31 = vld [vmem:[%s6781_s1 + $0x10] sm:$0xff]  ;;  %s4054_s30 = smul.u32 224, %s486_s27  ;;  %v4327_v33 = vld [vmem:[%s6781_s1 + $0x8] sm:$0xff]  ;;  %vm593_vm1 = vcmask 228352  }
  0x37   : > { %3546 = vmatpush.msk.msra.mxu1 %vm612_vm0, %v4296_v29  ;;  %4049 = vmatpush.msk.msra.mxu3 %vm612_vm0, %v4296_v29  ;;  %v4333_v34 = vld [vmem:[%s6781_s1 + $0x20] sm:$0xff]  ;;  %v4361_v39 = vld [vmem:[%s6781_s1 + $0x58] sm:$0xf]  ;;  %v4376_v41 = vld [vmem:[%s6781_s1 + $0x50] sm:$0xff]  ;;  %vm2436_vm2 = vcmask 588800   ;;  %vm3221_vm3 = vcmask 523264  }
  0x38   : > { %629 = vmatpush.msra.mxu0 %v4301_v30  ;;  %4046 = vmatpush.msra.mxu2 %v4301_v30  ;;  %v4341_v35 = vld [vmem:[%s6781_s1] sm:$0xff]  ;;  %s4343_s22 = scalar_lea.vmem [#allocation2], %s4054_s30  ;;  %v4381_v42 = vld [vmem:[%s6781_s1 + $0x78] sm:$0xf]  ;;  %v4394_v44 = vld [vmem:[%s6781_s1 + $0x90] sm:$0xff]  ;;  %vm3359_vm4 = vcmask 982016  }
  0x39   : > { %685 = vmatpush.msra.mxu1 %v4310_v31  ;;  %4050 = vmatpush.msra.mxu3 %v4310_v31  ;;  %v4346_v36 = vld [vmem:[%s4343_s22 + $0x38] sm:$0xff]  ;;  %v4353_v38 = vld [vmem:[%s4343_s22] sm:$0xff]  ;;  %v4367_v40 = vld [vmem:[%s4343_s22 + $0x28] sm:$0xff]  ;;  %vm3399_vm5 = vcmask 687104   ;;  %p524_p8 = scmp.lt.s32.totalorder %s3486_s20, 1 }
  0x3a   : > { %630 = vmatpush.msra.mxu0 %v4318_v32  ;;  %4047 = vmatpush.msra.mxu2 %v4318_v32  ;;  %v4350_v37 = vld [vmem:[%s4343_s22 + $0x58] sm:$0xff]  ;;  %v4401_v45 = vld [vmem:[%s6781_s1 + $0x48] sm:$0xff]  ;;  %v4406_v46 = vld [vmem:[%s6781_s1 + $0x70] sm:$0xff] }
  0x3b   : > { %686 = vmatpush.msra.mxu1 %v4327_v33  ;;  %4051 = vmatpush.msra.mxu3 %v4327_v33  ;;  %v4389_v43 = vld [vmem:[%s6781_s1 + $0x98] sm:$0xf]  ;;  %v4411_v47 = vld [vmem:[%s6781_s1 + $0x40] sm:$0xff]  ;;  %v4427_v50 = vld [vmem:[%s6781_s1 + $0x88] sm:$0xff]  ;;  %s6958_s20 = smov (!%p524_p8, %s3486_s20), 1 }
  0x3c   : > { %631 = vmatpush.msra.mxu0 %v4333_v34  ;;  %4048 = vmatpush.msra.mxu2 %v4333_v34  ;;  %v4417_v48 = vld [vmem:[%s4343_s22 + $0x40] sm:$0xff]  ;;  %v4433_v51 = vld [vmem:[%s4343_s22 + $0x8] sm:$0xff]  ;;  %v4478_v57 = vld [vmem:[%s4343_s22 + $0x10] sm:$0xff] }
  0x3d   : > { %687 = vmatpush.msra.mxu1 %v4341_v35  ;;  %3540 = vmatmul.msk.f32.vlgmr.msra.gmra.mxu0 %vm593_vm1, %v4346_v36  ;;  %v4420_v49 = vld [vmem:[%s4343_s22 + $0x60] sm:$0xff]  ;;  %v4440_v52 = vld [vmem:[%s6781_s1 + $0x68] sm:$0xff]  ;;  %v4481_v58 = vld [vmem:[%s4343_s22 + $0x70] sm:$0xff] }
  0x3e   : > { %3544 = vmatmul.msk.f32.vlgmr.msra.gmra.mxu2 %vm593_vm1, %v4350_v37  ;;  %3547 = vmatmul.msk.f32.vlgmr.msra.gmra.mxu1 %vm593_vm1, %v4353_v38  ;;  %v4450_v53 = vld [vmem:[%s6781_s1 + $0x80] sm:$0xff]  ;;  %v4463_v55 = vld [vmem:[%s4343_s22 + $0xa8] sm:$0xff]  ;;  %v4498_v59 = vld [vmem:[%s4343_s22 + $0xb0] sm:$0xff] }
  0x3f   : > { %3557 = vmatpush.msk.msrb.mxu2 %vm612_vm0, %v4361_v39  ;;  %4052 = vmatpush.msra.mxu3 %v4341_v35  ;;  %v4459_v54 = vld [vmem:[%s6781_s1 + $0x60] sm:$0xff]  ;;  %v4472_v56 = vld [vmem:[%s4343_s22 + $0x48] sm:$0xff]  ;;  %v4506_v60 = vld [vmem:[%s4343_s22 + $0x50] sm:$0xff] }
  0x40   : > { %3552 = vmatmul.msk.f32.vlgmr.msra.gmra.mxu3 %vm593_vm1, %v4367_v40  ;;  %3579 = vmatpush.msk.msrb.mxu0 %vm612_vm0, %v4389_v43  ;;  %v4512_v61 = vld [vmem:[%s4343_s22 + $0x18] sm:$0xff]  ;;  %v4532_v0 = vld [vmem:[%s4343_s22 + $0x20] sm:$0xff]  ;;  %v4563_v5 = vld [vmem:[%s4343_s22 + $0x88] sm:$0xff] }
  0x41   : > { %746 = vmatpush.msrb.mxu2 %v4376_v41  ;;  %3568 = vmatpush.msk.msrb.mxu3 %vm612_vm0, %v4381_v42  ;;  %v4515_v62 = vld [vmem:[%s4343_s22 + $0x78] sm:$0xff]  ;;  %v4535_v1 = vld [vmem:[%s4343_s22 + $0x80] sm:$0xff]  ;;  %v4574_v6 = vld [vmem:[%s6781_s1 + $0xd0] sm:$0xff] }
  0x42   : > { %880 = vmatpush.msrb.mxu0 %v4394_v44  ;;  %3586 = vmatpush.msk.msrb.mxu1 %vm612_vm0, %v4291_v28  ;;  %v4527_v63 = vld [vmem:[%s4343_s22 + $0xb8] sm:$0xff]  ;;  %v4554_v4 = vld [vmem:[%s4343_s22 + $0xc0] sm:$0xff]  ;;  %6855 = vst [vmem:[#allocation5_spill] sm:$0xff] %v4574_v6  ;;  %v4579_v7 = vld [vmem:[%s6781_s1 + $0xb0] sm:$0xff] }
  0x43   : > { %747 = vmatpush.msrb.mxu2 %v4401_v45  ;;  %813 = vmatpush.msrb.mxu3 %v4406_v46  ;;  %v4546_v2 = vld [vmem:[%s6781_s1 + $0xd8] sm:$0xf]  ;;  %6856 = vst [vmem:[#allocation6_spill] sm:$0xff] %v4579_v7  ;;  %v4582_v8 = vld [vmem:[%s4343_s22 + $0xc8] sm:$0xff]  ;;  %v4589_v9 = vld [vmem:[%s4343_s22 + $0x90] sm:$0xff] }
  0x44   : > { %881 = vmatpush.msrb.mxu0 %v4427_v50  ;;  %921 = vmatpush.msrb.mxu1 %v4301_v30  ;;  %6853 = vst [vmem:[#allocation3_spill] sm:$0xff] %v4546_v2  ;;  %v4551_v3 = vld [vmem:[%s6781_s1 + $0xb8] sm:$0xf]  ;;  %v4598_v10 = vld [vmem:[%s4343_s22 + $0xd0] sm:$0xff]  ;;  %v4614_v12 = vld [vmem:[%s6781_s1 + $0xc8] sm:$0xff] }
  0x45   : > { %3541 = vmatmul.msk.f32.gmra.mxu0 %vm593_vm1, %v4417_v48  ;;  %748 = vmatpush.msrb.mxu2 %v4411_v47  ;;  %6854 = vst [vmem:[#allocation4_spill] sm:$0xff] %v4551_v3  ;;  %v4603_v11 = vld [vmem:[%s4343_s22 + $0x98] sm:$0xff]  ;;  %v4619_v13 = vld [vmem:[%s6781_s1 + $0xa8] sm:$0xff]  ;;  %v4634_v14 = vld [vmem:[%s6781_s1 + $0xc0] sm:$0xff] }
  0x46   : > { %3545 = vmatmul.msk.f32.gmra.mxu2 %vm593_vm1, %v4420_v49  ;;  %3548 = vmatmul.msk.f32.gmra.mxu1 %vm593_vm1, %v4433_v51  ;;  %6857 = vst [vmem:[#allocation7_spill] sm:$0xff] %v4614_v12  ;;  %v4639_v15 = vld [vmem:[%s6781_s1 + $0xa0] sm:$0xff]  ;;  %v4646_v16 = vld [vmem:[%s4343_s22 + $0x30] sm:$0xff]  ;;  %v4670_v17 = vld [vmem:[%s6781_s1 + $0x138] sm:$0xf] }
  0x47   : > { %814 = vmatpush.msrb.mxu3 %v4440_v52  ;;  %3593 = vmatpush.msk.msra.mxu2 %vm612_vm0, %v4296_v29  ;;  %6858 = vst [vmem:[#allocation8_spill] sm:$0xff] %v4619_v13  ;;  %v4675_v18 = vld [vmem:[%s6781_s1 + $0xf8] sm:$0xf]  ;;  %v4699_v20 = vld [vmem:[%s6781_s1 + $0xf0] sm:$0xff]  ;;  %v4713_v22 = vld [vmem:[%s6781_s1 + $0xe8] sm:$0xff] }
  0x48   : > { %882 = vmatpush.msrb.mxu0 %v4450_v53  ;;  %922 = vmatpush.msrb.mxu1 %v4318_v32  ;;  %6859 = vst [vmem:[#allocation9_spill] sm:$0xff] %v4634_v14  ;;  %v4680_v19 = vld [vmem:[%s6781_s1 + $0x118] sm:$0xf]  ;;  %v4704_v21 = vld [vmem:[%s6781_s1 + $0x130] sm:$0xff]  ;;  %v4719_v23 = vld [vmem:[%s6781_s1 + $0xe0] sm:$0xff] }
  0x49   : > { %815 = vmatpush.msrb.mxu3 %v4459_v54  ;;  %956 = vmatpush.msra.mxu2 %v4310_v31  ;;  %6860 = vst [vmem:[#allocation10_spill] sm:$0xff] %v4639_v15  ;;  %v4730_v24 = vld [vmem:[%s6781_s1 + $0x110] sm:$0xff]  ;;  %v4741_v25 = vld [vmem:[%s6781_s1 + $0x108] sm:$0xff]  ;;  %v4748_v26 = vld [vmem:[%s6781_s1 + $0x100] sm:$0xff] }
  0x4a   : > { %3569 = vmatmul.msk.f32.vlgmr.msrb.gmra.mxu3 %vm593_vm1, %v4463_v55  ;;  %923 = vmatpush.msrb.mxu1 %v4333_v34  ;;  %6861 = vst [vmem:[#allocation11_spill] sm:$0xff] %v4670_v17  ;;  %v4761_v27 = vld [vmem:[%s6781_s1 + $0x128] sm:$0xff] }
  0x4b   : > { %3600 = vmatpush.msk.msra.mxu3 %vm612_vm0, %v4361_v39  ;;  %957 = vmatpush.msra.mxu2 %v4327_v33  ;;  %6862 = vst [vmem:[#allocation12_spill] sm:$0xff] %v4675_v18 }
  0x4c   : > { %3607 = vmatpush.msk.msra.mxu0 %vm612_vm0, %v4381_v42  ;;  %3614 = vmatpush.msk.msra.mxu1 %vm612_vm0, %v4389_v43  ;;  %6863 = vst [vmem:[#allocation13_spill] sm:$0xff] %v4680_v19 }
  0x4d   : > { %3542 = vmatmul.msk.f32.gmra.mxu0 %vm593_vm1, %v4472_v56  ;;  %991 = vmatpush.msra.mxu3 %v4376_v41  ;;  %6864 = vst [vmem:[#allocation14_spill] sm:$0xff] %v4699_v20 }
  0x4e   : > { %3549 = vmatmul.msk.f32.gmra.mxu1 %vm593_vm1, %v4478_v57  ;;  %3558 = vmatmul.msk.f32.vlgmr.msrb.gmra.mxu2 %vm593_vm1, %v4481_v58  ;;  %6865 = vst [vmem:[#allocation15_spill] sm:$0xff] %v4704_v21 }
  0x4f   : > { %992 = vmatpush.msra.mxu3 %v4401_v45  ;;  %958 = vmatpush.msra.mxu2 %v4341_v35  ;;  %6866 = vst [vmem:[#allocation16_spill] sm:$0xff] %v4713_v22 }
  0x50   : > { %1032 = vmatpush.msra.mxu0 %v4406_v46  ;;  %1091 = vmatpush.msra.mxu1 %v4394_v44  ;;  %6867 = vst [vmem:[#allocation17_spill] sm:$0xff] %v4719_v23 }
  0x51   : > { %993 = vmatpush.msra.mxu3 %v4411_v47  ;;  %3629 = vmatpush.msk.msrb.mxu2 %vm612_vm0, %v4546_v2  ;;  %6868 = vst [vmem:[#allocation18_spill] sm:$0xff] %v4730_v24 }
  0x52   : > { %3570 = vmatmul.msk.f32.gmra.mxu3 %vm593_vm1, %v4498_v59  ;;  %1033 = vmatpush.msra.mxu0 %v4440_v52  ;;  %6869 = vst [vmem:[#allocation19_spill] sm:$0xff] %v4741_v25 }
  0x53   : > { %1092 = vmatpush.msra.mxu1 %v4427_v50  ;;  %3636 = vmatpush.msk.msrb.mxu3 %vm612_vm0, %v4551_v3  ;;  %6870 = vst [vmem:[#allocation20_spill] sm:$0xff] %v4748_v26 }
  0x54   : > { %1034 = vmatpush.msra.mxu0 %v4459_v54  ;;  %1151 = vmatpush.msrb.mxu2 %v4574_v6  ;;  %6871 = vst [vmem:[#allocation21_spill] sm:$0xff] %v4761_v27 }
  0x55   : > { %3543 = vmatmul.msk.f32.gmra.mxu0 %vm593_vm1, %v4506_v60  ;;  %1093 = vmatpush.msra.mxu1 %v4450_v53 }
  0x56   : > { %3550 = vmatmul.msk.f32.gmra.mxu1 %vm593_vm1, %v4512_v61  ;;  %3559 = vmatmul.msk.f32.gmra.mxu2 %vm593_vm1, %v4515_v62 }
  0x57   : > { %1189 = vmatpush.msrb.mxu3 %v4579_v7  ;;  %1152 = vmatpush.msrb.mxu2 %v4614_v12 }
  0x59   : > { %1190 = vmatpush.msrb.mxu3 %v4619_v13  ;;  %1153 = vmatpush.msrb.mxu2 %v4634_v14 }
  0x5a   : > { %3571 = vmatmul.msk.f32.gmra.mxu3 %vm593_vm1, %v4527_v63 }
  0x5b   : > { %1191 = vmatpush.msrb.mxu3 %v4639_v15 }
  0x5d   : > { %3580 = vmatmul.msk.f32.vlgmr.msrb.gmra.mxu0 %vm593_vm1, %v4433_v51 }
  0x5e   : > { %3551 = vmatmul.msk.f32.gmra.mxu1 %vm593_vm1, %v4532_v0  ;;  %3560 = vmatmul.msk.f32.gmra.mxu2 %vm593_vm1, %v4535_v1 }
  0x5f   : > { %3647 = vmatpush.msk.msrb.mxu0 %vm612_vm0, %v4675_v18 }
  0x61   : > { %1232 = vmatpush.msrb.mxu0 %v4699_v20 }
  0x62   : > { %3572 = vmatmul.msk.f32.gmra.mxu3 %vm593_vm1, %v4554_v4 }
  0x63   : > { %1233 = vmatpush.msrb.mxu0 %v4713_v22 }
  0x65   : > { %3581 = vmatmul.msk.f32.gmra.mxu0 %vm593_vm1, %v4478_v57 }
  0x66   : > { %3561 = vmatmul.msk.f32.gmra.mxu2 %vm593_vm1, %v4563_v5  ;;  %3587 = vmatmul.msk.f32.vlgmr.msrb.gmra.mxu1 %vm593_vm1, %v4481_v58 }
  0x67   : > { %3658 = vmatpush.msk.msrb.mxu1 %vm612_vm0, %v4680_v19  ;;  %1234 = vmatpush.msrb.mxu0 %v4719_v23 }
  0x69   : > { %1281 = vmatpush.msrb.mxu1 %v4730_v24 }
  0x6a   : > { %3573 = vmatmul.msk.f32.gmra.mxu3 %vm593_vm1, %v4582_v8 }
  0x6b   : > { %1282 = vmatpush.msrb.mxu1 %v4741_v25 }
  0x6d   : > { %3582 = vmatmul.msk.f32.gmra.mxu0 %vm593_vm1, %v4512_v61  ;;  %1283 = vmatpush.msrb.mxu1 %v4748_v26 }
  0x6e   : > { %3562 = vmatmul.msk.f32.gmra.mxu2 %vm593_vm1, %v4589_v9  ;;  %3588 = vmatmul.msk.f32.gmra.mxu1 %vm593_vm1, %v4515_v62 }
  0x72   : > { %3574 = vmatmul.msk.f32.gmra.mxu3 %vm593_vm1, %v4598_v10 }
  0x75   : > { %3583 = vmatmul.msk.f32.gmra.mxu0 %vm593_vm1, %v4532_v0 }
  0x76   : > { %3563 = vmatmul.msk.f32.gmra.mxu2 %vm593_vm1, %v4603_v11  ;;  %3589 = vmatmul.msk.f32.gmra.mxu1 %vm593_vm1, %v4535_v1 }
  0x7a   : > { %3601 = vmatmul.msk.f32.vlgmr.msra.gmra.mxu3 %vm593_vm1, %v4463_v55 }
  0x7b   : > { %3676 = vmatpush.msk.msra.mxu3 %vm612_vm0, %v4546_v2 }
  0x7d   : > { %3584 = vmatmul.msk.f32.gmra.mxu0 %vm593_vm1, %v4367_v40  ;;  %1371 = vmatpush.msra.mxu3 %v4574_v6 }
  0x7e   : > { %3590 = vmatmul.msk.f32.gmra.mxu1 %vm593_vm1, %v4563_v5  ;;  %3594 = vmatmul.msk.f32.vlgmr.msra.gmra.mxu2 %vm593_vm1, %v4346_v36 }
  0x7f   : > { %1372 = vmatpush.msra.mxu3 %v4614_v12  ;;  %3669 = vmatpush.msk.msra.mxu2 %vm612_vm0, %v4670_v17 }
  0x81   : > { %1373 = vmatpush.msra.mxu3 %v4634_v14  ;;  %1330 = vmatpush.msra.mxu2 %v4704_v21 }
  0x82   : > { %3602 = vmatmul.msk.f32.gmra.mxu3 %vm593_vm1, %v4498_v59 }
  0x83   : > { %1331 = vmatpush.msra.mxu2 %v4761_v27 }
  0x85   : > { %3585 = vmatmul.msk.f32.gmra.mxu0 %vm593_vm1, %v4646_v16 }
  0x86   : > { %3591 = vmatmul.msk.f32.gmra.mxu1 %vm593_vm1, %v4589_v9  ;;  %3595 = vmatmul.msk.f32.gmra.mxu2 %vm593_vm1, %v4417_v48 }
  0x8a   : > { %3603 = vmatmul.msk.f32.gmra.mxu3 %vm593_vm1, %v4527_v63 }
  0x8d   : > { %3608 = vmatmul.msk.f32.vlgmr.msra.gmra.mxu0 %vm593_vm1, %v4433_v51 }
  0x8e   : > { %3592 = vmatmul.msk.f32.gmra.mxu1 %vm593_vm1, %v4603_v11  ;;  %3596 = vmatmul.msk.f32.gmra.mxu2 %vm593_vm1, %v4472_v56 }
  0x8f   : > { %3683 = vmatpush.msk.msra.mxu0 %vm612_vm0, %v4551_v3 }
  0x91   : > { %1406 = vmatpush.msra.mxu0 %v4579_v7 }
  0x92   : > { %3604 = vmatmul.msk.f32.gmra.mxu3 %vm593_vm1, %v4554_v4 }
  0x93   : > { %1407 = vmatpush.msra.mxu0 %v4619_v13 }
  0x95   : > { %3609 = vmatmul.msk.f32.gmra.mxu0 %vm593_vm1, %v4478_v57 }
  0x96   : > { %3597 = vmatmul.msk.f32.gmra.mxu2 %vm593_vm1, %v4506_v60  ;;  %3615 = vmatmul.msk.f32.vlgmr.msra.gmra.mxu1 %vm593_vm1, %v4417_v48 }
  0x97   : > { %3690 = vmatpush.msk.msra.mxu1 %vm612_vm0, %v4675_v18  ;;  %1408 = vmatpush.msra.mxu0 %v4639_v15 }
  0x99   : > { %1441 = vmatpush.msra.mxu1 %v4699_v20 }
  0x9a   : > { %3605 = vmatmul.msk.f32.gmra.mxu3 %vm593_vm1, %v4582_v8 }
  0x9b   : > { %1442 = vmatpush.msra.mxu1 %v4713_v22 }
  0x9d   : > { %3610 = vmatmul.msk.f32.gmra.mxu0 %vm593_vm1, %v4512_v61  ;;  %1443 = vmatpush.msra.mxu1 %v4719_v23 }
  0x9e   : > { %3598 = vmatmul.msk.f32.gmra.mxu2 %vm593_vm1, %v4350_v37  ;;  %3616 = vmatmul.msk.f32.gmra.mxu1 %vm593_vm1, %v4472_v56 }
  0xa2   : > { %3606 = vmatmul.msk.f32.gmra.mxu3 %vm593_vm1, %v4598_v10 }
  0xa5   : > { %3611 = vmatmul.msk.f32.gmra.mxu0 %vm593_vm1, %v4532_v0 }
  0xa6   : > { %3599 = vmatmul.msk.f32.gmra.mxu2 %vm593_vm1, %v4420_v49  ;;  %3617 = vmatmul.msk.f32.gmra.mxu1 %vm593_vm1, %v4506_v60 }
  0xaa   : > { %3637 = vmatmul.msk.f32.vlgmr.msrb.gmra.mxu3 %vm593_vm1, %v4353_v38  ;;  %v4787_v38 = vld [vmem:[%s6781_s1 + $0x120] sm:$0xff] }
  0xab   : > { %3704 = vmatpush.msk.msrb.mxu3 %vm612_vm0, %v4670_v17  ;;  %6872 = vst [vmem:[#allocation22_spill] sm:$0xff] %v4787_v38  ;;  %1332 = vmatpush.msra.mxu2 %v4787_v38  ;;  %v4803_v17 = vld [vmem:[%s4343_s22 + $0x68] sm:$0xff] }
  0xad   : > { %3612 = vmatmul.msk.f32.gmra.mxu0 %vm593_vm1, %v4367_v40  ;;  %1523 = vmatpush.msrb.mxu3 %v4704_v21 }
  0xae   : > { %3618 = vmatmul.msk.f32.gmra.mxu1 %vm593_vm1, %v4350_v37  ;;  %3630 = vmatmul.msk.f32.vlgmr.msrb.gmra.mxu2 %vm593_vm1, %v4346_v36 }
  0xaf   : > { %1524 = vmatpush.msrb.mxu3 %v4761_v27  ;;  %3697 = vmatpush.msk.msrb.mxu2 %vm612_vm0, %v4680_v19 }
  0xb1   : > { %1525 = vmatpush.msrb.mxu3 %v4787_v38  ;;  %1482 = vmatpush.msrb.mxu2 %v4730_v24 }
  0xb2   : > { %3638 = vmatmul.msk.f32.gmra.mxu3 %vm593_vm1, %v4433_v51 }
  0xb3   : > { %1483 = vmatpush.msrb.mxu2 %v4741_v25 }
  0xb5   : > { %3613 = vmatmul.msk.f32.gmra.mxu0 %vm593_vm1, %v4646_v16  ;;  %1484 = vmatpush.msrb.mxu2 %v4748_v26 }
  0xb6   : > { %3619 = vmatmul.msk.f32.gmra.mxu1 %vm593_vm1, %v4420_v49  ;;  %3631 = vmatmul.msk.f32.gmra.mxu2 %vm593_vm1, %v4417_v48 }
  0xba   : > { %v633_v27 = vpop.f32.mrf.mxu0  ;;  %3639 = vmatmul.msk.f32.gmra.mxu3 %vm593_vm1, %v4478_v57 }
  0xbb   : > { %v689_v21 = vpop.f32.mrf.mxu1 }
  0xbc   : > { %v690_v14 = vadd.f32 %v689_v21, %v633_v27 }
  0xbd   : > { %3648 = vmatmul.msk.f32.vlgmr.msrb.gmra.mxu0 %vm593_vm1, %v4481_v58 }
  0xbe   : > { %3620 = vmatmul.msk.f32.gmra.mxu1 %vm593_vm1, %v4803_v17  ;;  %3632 = vmatmul.msk.f32.gmra.mxu2 %vm593_vm1, %v4472_v56 }
  0xbf   : > { %3711 = vmatpush.msk.msrb.mxu0 %vm612_vm0, %v4291_v28 }
  0xc1   : > { %v4815_v38 = vpop.f32.mrf.mxu2  ;;  %1591 = vmatpush.msrb.mxu0 %v4301_v30 }
  0xc2   : > { %v636_v24 = vpop.f32.mrf.mxu0  ;;  %3640 = vmatmul.msk.f32.gmra.mxu3 %vm593_vm1, %v4512_v61 }
  0xc3   : > { %v692_v25 = vpop.f32.mrf.mxu1  ;;  %v704_v23 = vpop.f32.mrf.mxu3  ;;  %1592 = vmatpush.msrb.mxu0 %v4318_v32 }
  0xc4   : > { %v693_v21 = vadd.f32 %v692_v25, %v636_v24 }
  0xc5   : > { %3649 = vmatmul.msk.f32.gmra.mxu0 %vm593_vm1, %v4515_v62 }
  0xc6   : > { %3633 = vmatmul.msk.f32.gmra.mxu2 %vm593_vm1, %v4506_v60  ;;  %3659 = vmatmul.msk.f32.vlgmr.msrb.gmra.mxu1 %vm593_vm1, %v4463_v55 }
  0xc7   : > { %3718 = vmatpush.msk.msrb.mxu1 %vm612_vm0, %v4296_v29  ;;  %1593 = vmatpush.msrb.mxu0 %v4333_v34 }
  0xc9   : > { %v648_v26 = vpop.f32.mrf.mxu2  ;;  %1626 = vmatpush.msrb.mxu1 %v4310_v31 }
  0xca   : > { %v4831_v19 = vadd.f32 %v704_v23, %v648_v26  ;;  %v639_v22 = vpop.f32.mrf.mxu0  ;;  %3641 = vmatmul.msk.f32.gmra.mxu3 %vm593_vm1, %v4532_v0 }
  0xcb   : > { %v695_v20 = vpop.f32.mrf.mxu1  ;;  %1627 = vmatpush.msrb.mxu1 %v4327_v33 }
  0xcc   : > { %v696_v25 = vadd.f32 %v695_v20, %v639_v22 }
  0xcd   : > { %3650 = vmatmul.msk.f32.gmra.mxu0 %vm593_vm1, %v4535_v1  ;;  %v817_v18 = vpop.f32.mrf.mxu3  ;;  %1628 = vmatpush.msrb.mxu1 %v4341_v35 }
  0xce   : > { %3634 = vmatmul.msk.f32.gmra.mxu2 %vm593_vm1, %v4350_v37  ;;  %3660 = vmatmul.msk.f32.gmra.mxu1 %vm593_vm1, %v4498_v59 }
  0xd1   : > { %v750_v23 = vpop.f32.mrf.mxu2 }
  0xd2   : > { %v768_v26 = vadd.f32 %v750_v23, %v690_v14  ;;  %v642_v12 = vpop.f32.mrf.mxu0  ;;  %3642 = vmatmul.msk.f32.gmra.mxu3 %vm593_vm1, %v4367_v40 }
  0xd3   : > { %v698_v15 = vpop.f32.mrf.mxu1 }
  0xd4   : > { %v4845_v6 = vadd.f32 %v817_v18, %v768_v26  ;;  %v699_v2 = vadd.f32 %v698_v15, %v642_v12 }
  0xd5   : > { %3651 = vmatmul.msk.f32.gmra.mxu0 %vm593_vm1, %v4563_v5  ;;  %v820_v13 = vpop.f32.mrf.mxu3 }
  0xd6   : > { %3635 = vmatmul.msk.f32.gmra.mxu2 %vm593_vm1, %v4420_v49  ;;  %3661 = vmatmul.msk.f32.gmra.mxu1 %vm593_vm1, %v4527_v63 }
  0xd9   : > { %v753_v27 = vpop.f32.mrf.mxu2 }
  0xda   : > { %v769_v14 = vadd.f32 %v753_v27, %v693_v21  ;;  %v4853_v23 = vpop.f32.mrf.mxu0  ;;  %3677 = vmatmul.msk.f32.vlgmr.msra.gmra.mxu3 %vm593_vm1, %v4481_v58 }
  0xdb   : > { %v701_v18 = vpop.f32.mrf.mxu1  ;;  %3732 = vmatpush.msk.msra.mxu3 %vm612_vm0, %v4381_v42 }
  0xdc   : > { %v4859_v26 = vadd.f32 %v820_v13, %v769_v14 }
  0xdd   : > { %3652 = vmatmul.msk.f32.gmra.mxu0 %vm593_vm1, %v4589_v9  ;;  %v823_v24 = vpop.f32.mrf.mxu3  ;;  %1702 = vmatpush.msra.mxu3 %v4406_v46 }
  0xde   : > { %3662 = vmatmul.msk.f32.gmra.mxu1 %vm593_vm1, %v4554_v4  ;;  %3670 = vmatmul.msk.f32.vlgmr.msra.gmra.mxu2 %vm593_vm1, %v4433_v51 }
  0xdf   : > { %3725 = vmatpush.msk.msra.mxu2 %vm612_vm0, %v4361_v39  ;;  %1703 = vmatpush.msra.mxu3 %v4440_v52 }
  0xe1   : > { %v756_v13 = vpop.f32.mrf.mxu2  ;;  %1661 = vmatpush.msra.mxu2 %v4376_v41  ;;  %1704 = vmatpush.msra.mxu3 %v4459_v54 }
  0xe2   : > { %v770_v21 = vadd.f32 %v756_v13, %v696_v25  ;;  %v4873_v27 = vpop.f32.mrf.mxu0  ;;  %3678 = vmatmul.msk.f32.gmra.mxu3 %vm593_vm1, %v4515_v62 }
  0xe3   : > { %v925_v20 = vpop.f32.mrf.mxu1  ;;  %1662 = vmatpush.msra.mxu2 %v4401_v45 }
  0xe4   : > { %v4878_v22 = vadd.f32 %v823_v24, %v770_v21 }
  0xe5   : > { %3653 = vmatmul.msk.f32.gmra.mxu0 %vm593_vm1, %v4603_v11  ;;  %v826_v14 = vpop.f32.mrf.mxu3  ;;  %1663 = vmatpush.msra.mxu2 %v4411_v47 }
  0xe6   : > { %3663 = vmatmul.msk.f32.gmra.mxu1 %vm593_vm1, %v4582_v8  ;;  %3671 = vmatmul.msk.f32.gmra.mxu2 %vm593_vm1, %v4478_v57 }
  0xe9   : > { %v759_v25 = vpop.f32.mrf.mxu2 }
  0xea   : > { %v771_v13 = vadd.f32 %v759_v25, %v699_v2  ;;  %v4887_v7 = vpop.f32.mrf.mxu0  ;;  %3679 = vmatmul.msk.f32.gmra.mxu3 %vm593_vm1, %v4535_v1  ;;  %v702_v2 = vadd.f32 %v701_v18, %v4815_v38 }
  0xeb   : > { %v928_v24 = vpop.f32.mrf.mxu1 }
  0xec   : > { %v4891_v21 = vadd.f32 %v826_v14, %v771_v13 }
  0xed   : > { %3684 = vmatmul.msk.f32.vlgmr.msra.gmra.mxu0 %vm593_vm1, %v4346_v36  ;;  %v829_v12 = vpop.f32.mrf.mxu3 }
  0xee   : > { %3664 = vmatmul.msk.f32.gmra.mxu1 %vm593_vm1, %v4598_v10  ;;  %3672 = vmatmul.msk.f32.gmra.mxu2 %vm593_vm1, %v4512_v61 }
  0xef   : > { %3739 = vmatpush.msk.msra.mxu0 %vm612_vm0, %v4389_v43 }
  0xf1   : > { %v762_v15 = vpop.f32.mrf.mxu2  ;;  %1761 = vmatpush.msra.mxu0 %v4394_v44 }
  0xf2   : > { %v772_v14 = vadd.f32 %v762_v15, %v702_v2  ;;  %v4903_v25 = vpop.f32.mrf.mxu0  ;;  %3680 = vmatmul.msk.f32.gmra.mxu3 %vm593_vm1, %v4563_v5 }
  0xf3   : > { %v931_v36 = vpop.f32.mrf.mxu1  ;;  %1762 = vmatpush.msra.mxu0 %v4427_v50 }
  0xf4   : > { %v4908_v13 = vadd.f32 %v829_v12, %v772_v14 }
  0xf5   : > { %3685 = vmatmul.msk.f32.gmra.mxu0 %vm593_vm1, %v4417_v48  ;;  %v832_v3 = vpop.f32.mrf.mxu3 }
  0xf6   : > { %3673 = vmatmul.msk.f32.gmra.mxu2 %vm593_vm1, %v4532_v0  ;;  %3691 = vmatmul.msk.f32.vlgmr.msra.gmra.mxu1 %vm593_vm1, %v4463_v55 }
  0xf7   : > { %3746 = vmatpush.msk.msra.mxu1 %vm612_vm0, %v4291_v28  ;;  %1763 = vmatpush.msra.mxu0 %v4450_v53 }
  0xf9   : > { %v765_v38 = vpop.f32.mrf.mxu2  ;;  %1802 = vmatpush.msra.mxu1 %v4301_v30 }
  0xfa   : > { %v773_v18 = vadd.f32 %v765_v38, %v4831_v19  ;;  %v4921_v12 = vpop.f32.mrf.mxu0  ;;  %3681 = vmatmul.msk.f32.gmra.mxu3 %vm593_vm1, %v4589_v9 }
  0xfb   : > { %v934_v2 = vpop.f32.mrf.mxu1  ;;  %1803 = vmatpush.msra.mxu1 %v4318_v32 }
  0xfc   : > { %v4926_v15 = vadd.f32 %v832_v3, %v773_v18 }
  0xfd   : > { %3686 = vmatmul.msk.f32.gmra.mxu0 %vm593_vm1, %v4472_v56  ;;  %v995_v28 = vpop.f32.mrf.mxu3  ;;  %1804 = vmatpush.msra.mxu1 %v4333_v34 }
  0xfe   : > { %3674 = vmatmul.msk.f32.gmra.mxu2 %vm593_vm1, %v4367_v40  ;;  %3692 = vmatmul.msk.f32.gmra.mxu1 %vm593_vm1, %v4498_v59 }
 0x101   : > { %v960_v30 = vpop.f32.mrf.mxu2 }
 0x102   : > { %v961_v19 = vadd.f32 %v960_v30, %v925_v20  ;;  %v4935_v14 = vpop.f32.mrf.mxu0  ;;  %3682 = vmatmul.msk.f32.gmra.mxu3 %vm593_vm1, %v4603_v11 }
 0x103   : > { %v937_v32 = vpop.f32.mrf.mxu1 }
 0x104   : > { %v1013_v3 = vadd.f32 %v995_v28, %v961_v19 }
 0x105   : > { %3687 = vmatmul.msk.f32.gmra.mxu0 %vm593_vm1, %v4506_v60  ;;  %v998_v38 = vpop.f32.mrf.mxu3 }
 0x106   : > { %3675 = vmatmul.msk.f32.gmra.mxu2 %vm593_vm1, %v4646_v16  ;;  %3693 = vmatmul.msk.f32.gmra.mxu1 %vm593_vm1, %v4527_v63 }
 0x109   : > { %v963_v34 = vpop.f32.mrf.mxu2 }
 0x10a   : > { %v964_v18 = vadd.f32 %v963_v34, %v928_v24  ;;  %v1036_v20 = vpop.f32.mrf.mxu0  ;;  %3705 = vmatmul.msk.f32.vlgmr.msrb.gmra.mxu3 %vm593_vm1, %v4417_v48 }
 0x10b   : > { %v4947_v30 = vpop.f32.mrf.mxu1  ;;  %3760 = vmatpush.msk.msrb.mxu3 %vm612_vm0, %v4361_v39  ;;  %v1054_v39 = vadd.f32 %v1036_v20, %v1013_v3 }
 0x10c   : > { %v1014_v28 = vadd.f32 %v998_v38, %v964_v18  ;;  %v4968_v18 = vadd.f32 %v4853_v23, %v4845_v6 }
 0x10d   : > { %3688 = vmatmul.msk.f32.gmra.mxu0 %vm593_vm1, %v4350_v37  ;;  %v1001_v19 = vpop.f32.mrf.mxu3  ;;  %1872 = vmatpush.msrb.mxu3 %v4376_v41 }
 0x10e   : > { %3694 = vmatmul.msk.f32.gmra.mxu1 %vm593_vm1, %v4554_v4  ;;  %3698 = vmatmul.msk.f32.vlgmr.msrb.gmra.mxu2 %vm593_vm1, %v4433_v51 }
 0x10f   : > { %3753 = vmatpush.msk.msrb.mxu2 %vm612_vm0, %v4296_v29  ;;  %1873 = vmatpush.msrb.mxu3 %v4401_v45 }
 0x111   : > { %v966_v24 = vpop.f32.mrf.mxu2  ;;  %1837 = vmatpush.msrb.mxu2 %v4310_v31  ;;  %1874 = vmatpush.msrb.mxu3 %v4411_v47 }
 0x112   : > { %v967_v38 = vadd.f32 %v966_v24, %v931_v36  ;;  %v1039_v34 = vpop.f32.mrf.mxu0  ;;  %3706 = vmatmul.msk.f32.gmra.mxu3 %vm593_vm1, %v4472_v56 }
 0x113   : > { %v1095_v41 = vpop.f32.mrf.mxu1  ;;  %1838 = vmatpush.msrb.mxu2 %v4327_v33  ;;  %v1055_v6 = vadd.f32 %v1039_v34, %v1014_v28  ;;  %v5005_v34 = vadd.f32 %v4887_v7, %v4878_v22 }
 0x114   : > { %v1015_v29 = vadd.f32 %v1001_v19, %v967_v38  ;;  %v4970_v45 = vadd.f32 %v1095_v41, %v1054_v39 }
 0x115   : > { %3689 = vmatmul.msk.f32.gmra.mxu0 %vm593_vm1, %v4420_v49  ;;  %v1004_v31 = vpop.f32.mrf.mxu3  ;;  %1839 = vmatpush.msrb.mxu2 %v4341_v35  ;;  %v4985_v35 = vadd.f32 %v4873_v27, %v4859_v26 }
 0x116   : > { %3695 = vmatmul.msk.f32.gmra.mxu1 %vm593_vm1, %v4582_v8  ;;  %3699 = vmatmul.msk.f32.gmra.mxu2 %vm593_vm1, %v4478_v57 }
 0x119   : > { %v969_v33 = vpop.f32.mrf.mxu2 }
 0x11a   : > { %v970_v23 = vadd.f32 %v969_v33, %v934_v2  ;;  %v1042_v36 = vpop.f32.mrf.mxu0  ;;  %3707 = vmatmul.msk.f32.gmra.mxu3 %vm593_vm1, %v4506_v60 }
 0x11b   : > { %v1098_v3 = vpop.f32.mrf.mxu1  ;;  %v1056_v27 = vadd.f32 %v1042_v36, %v1015_v29 }
 0x11c   : > { %v1016_v20 = vadd.f32 %v1004_v31, %v970_v23  ;;  %v4987_v19 = vadd.f32 %v1098_v3, %v1055_v6  ;;  %v6889_v3 = vld [vmem:[#allocation16_spill] sm:$0xff] }
 0x11d   : > { %3712 = vmatmul.msk.f32.vlgmr.msrb.gmra.mxu0 %vm593_vm1, %v4463_v55  ;;  %v1007_v24 = vpop.f32.mrf.mxu3 }
 0x11e   : > { %3696 = vmatmul.msk.f32.gmra.mxu1 %vm593_vm1, %v4598_v10  ;;  %3700 = vmatmul.msk.f32.gmra.mxu2 %vm593_vm1, %v4512_v61 }
 0x11f   : > { %3767 = vmatpush.msk.msrb.mxu0 %vm612_vm0, %v4381_v42 }
 0x121   : > { %v972_v26 = vpop.f32.mrf.mxu2  ;;  %1913 = vmatpush.msrb.mxu0 %v4406_v46  ;;  %v6890_v46 = vld [vmem:[#allocation13_spill] sm:$0xff] }
 0x122   : > { %v973_v2 = vadd.f32 %v972_v26, %v937_v32  ;;  %v1045_v39 = vpop.f32.mrf.mxu0  ;;  %3708 = vmatmul.msk.f32.gmra.mxu3 %vm593_vm1, %v4350_v37 }
 0x123   : > { %v1101_v38 = vpop.f32.mrf.mxu1  ;;  %1914 = vmatpush.msrb.mxu0 %v4440_v52  ;;  %v1057_v7 = vadd.f32 %v1045_v39, %v1016_v20 }
 0x124   : > { %v1017_v41 = vadd.f32 %v1007_v24, %v973_v2  ;;  %v5007_v31 = vadd.f32 %v1101_v38, %v1056_v27  ;;  %v6877_v27 = vld [vmem:[#allocation4_spill] sm:$0xff]  ;;  %v5066_v2 = vadd.f32 %v4935_v14, %v4926_v15 }
 0x125   : > { %3713 = vmatmul.msk.f32.gmra.mxu0 %vm593_vm1, %v4498_v59  ;;  %v1010_v42 = vpop.f32.mrf.mxu3  ;;  %v6882_v15 = vld [vmem:[#allocation8_spill] sm:$0xff] }
 0x126   : > { %3701 = vmatmul.msk.f32.gmra.mxu2 %vm593_vm1, %v4532_v0  ;;  %3719 = vmatmul.msk.f32.vlgmr.msrb.gmra.mxu1 %vm593_vm1, %v4481_v58  ;;  %v5027_v58 = vadd.f32 %v4903_v25, %v4891_v21  ;;  %6878 = vst [vmem:[#allocation4_spill] sm:$0xff] %v5066_v2  ;;  %v6893_v2 = vld [vmem:[#allocation19_spill] sm:$0xff] }
 0x127   : > { %3774 = vmatpush.msk.msrb.mxu1 %vm612_vm0, %v4389_v43  ;;  %1915 = vmatpush.msrb.mxu0 %v4459_v54 }
 0x128   : > { %6873 = vst [vmem:[#allocation23_spill] sm:$0xff] %v5027_v58 }
 0x129   : > { %v975_v52 = vpop.f32.mrf.mxu2  ;;  %1972 = vmatpush.msrb.mxu1 %v4394_v44 }
 0x12a   : > { %v976_v22 = vadd.f32 %v975_v52, %v4947_v30  ;;  %v1048_v32 = vpop.f32.mrf.mxu0  ;;  %3709 = vmatmul.msk.f32.gmra.mxu3 %vm593_vm1, %v4420_v49  ;;  %v6881_v52 = vld [vmem:[#allocation3_spill] sm:$0xff] }
 0x12b   : > { %v1104_v29 = vpop.f32.mrf.mxu1  ;;  %1973 = vmatpush.msrb.mxu1 %v4427_v50  ;;  %v1058_v21 = vadd.f32 %v1048_v32, %v1017_v41  ;;  %v6880_v41 = vld [vmem:[#allocation6_spill] sm:$0xff] }
 0x12c   : > { %v1018_v43 = vadd.f32 %v1010_v42, %v976_v22  ;;  %v5029_v33 = vadd.f32 %v1104_v29, %v1057_v7  ;;  %v6883_v7 = vld [vmem:[#allocation5_spill] sm:$0xff]  ;;  %v6884_v22 = vld [vmem:[#allocation10_spill] sm:$0xff] }
 0x12d   : > { %3714 = vmatmul.msk.f32.gmra.mxu0 %vm593_vm1, %v4527_v63  ;;  %v1193_v44 = vpop.f32.mrf.mxu3  ;;  %1974 = vmatpush.msrb.mxu1 %v4450_v53  ;;  %v5046_v53 = vadd.f32 %v4921_v12, %v4908_v13 }
 0x12e   : > { %6874 = vst [vmem:[#allocation24_spill] sm:$0xff] %v5029_v33  ;;  %3702 = vmatmul.msk.f32.gmra.mxu2 %vm593_vm1, %v4367_v40  ;;  %3720 = vmatmul.msk.f32.gmra.mxu1 %vm593_vm1, %v4515_v62 }
 0x12f   : > { %6875 = vst [vmem:[#allocation25_spill] sm:$0xff] %v5046_v53 }
 0x131   : > { %v1155_v50 = vpop.f32.mrf.mxu2 }
 0x132   : > { %v5040_v25 = vadd.f32 %v1193_v44, %v1155_v50  ;;  %v1051_v30 = vpop.f32.mrf.mxu0  ;;  %3710 = vmatmul.msk.f32.gmra.mxu3 %vm593_vm1, %v4803_v17  ;;  %v6885_v44 = vld [vmem:[#allocation7_spill] sm:$0xff] }
 0x133   : > { %v1107_v6 = vpop.f32.mrf.mxu1  ;;  %v1059_v24 = vadd.f32 %v1051_v30, %v1018_v43 }
 0x134   : > { %v5048_v23 = vadd.f32 %v1107_v6, %v1058_v21  ;;  %v6886_v21 = vld [vmem:[#allocation9_spill] sm:$0xff] }
 0x135   : > { %3715 = vmatmul.msk.f32.gmra.mxu0 %vm593_vm1, %v4554_v4  ;;  %v1196_v36 = vpop.f32.mrf.mxu3 }
 0x136   : > { %6876 = vst [vmem:[#allocation26_spill] sm:$0xff] %v5048_v23  ;;  %3703 = vmatmul.msk.f32.gmra.mxu2 %vm593_vm1, %v4646_v16  ;;  %3721 = vmatmul.msk.f32.gmra.mxu1 %vm593_vm1, %v4535_v1  ;;  %v6894_v23 = vld [vmem:[#allocation20_spill] sm:$0xff] }
 0x139   : > { %v1158_v20 = vpop.f32.mrf.mxu2 }
 0x13a   : > { %v5058_v26 = vadd.f32 %v1196_v36, %v1158_v20  ;;  %v1236_v13 = vpop.f32.mrf.mxu0  ;;  %3733 = vmatmul.msk.f32.vlgmr.msra.gmra.mxu3 %vm593_vm1, %v4417_v48 }
 0x13b   : > { %v1110_v12 = vpop.f32.mrf.mxu1  ;;  %3788 = vmatpush.msk.msra.mxu3 %vm612_vm0, %v6877_v27  ;;  %v1254_v53 = vadd.f32 %v1236_v13, %v5040_v25 }
 0x13c   : > { %v5068_v39 = vadd.f32 %v1110_v12, %v1059_v24  ;;  %v6887_v12 = vld [vmem:[#allocation12_spill] sm:$0xff] }
 0x13d   : > { %3716 = vmatmul.msk.f32.gmra.mxu0 %vm593_vm1, %v4582_v8  ;;  %v1199_v38 = vpop.f32.mrf.mxu3  ;;  %2054 = vmatpush.msra.mxu3 %v6880_v41 }
 0x13e   : > { %6879 = vst [vmem:[#allocation27_spill] sm:$0xff] %v5068_v39  ;;  %3722 = vmatmul.msk.f32.gmra.mxu1 %vm593_vm1, %v4563_v5  ;;  %3726 = vmatmul.msk.f32.vlgmr.msra.gmra.mxu2 %vm593_vm1, %v4433_v51 }
 0x13f   : > { %3781 = vmatpush.msk.msra.mxu2 %vm612_vm0, %v6881_v52  ;;  %2055 = vmatpush.msra.mxu3 %v6882_v15 }
 0x141   : > { %v1161_v14 = vpop.f32.mrf.mxu2  ;;  %2019 = vmatpush.msra.mxu2 %v6883_v7  ;;  %2056 = vmatpush.msra.mxu3 %v6884_v22 }
 0x142   : > { %v5084_v32 = vadd.f32 %v1199_v38, %v1161_v14  ;;  %v1239_v29 = vpop.f32.mrf.mxu0  ;;  %3734 = vmatmul.msk.f32.gmra.mxu3 %vm593_vm1, %v4472_v56  ;;  %v6888_v14 = vld [vmem:[#allocation14_spill] sm:$0xff] }
 0x143   : > { %v1285_v43 = vpop.f32.mrf.mxu1  ;;  %2020 = vmatpush.msra.mxu2 %v6885_v44 }
 0x145   : > { %3717 = vmatmul.msk.f32.gmra.mxu0 %vm593_vm1, %v4598_v10  ;;  %v1202_v50 = vpop.f32.mrf.mxu3  ;;  %2021 = vmatpush.msra.mxu2 %v6886_v21 }
 0x146   : > { %3723 = vmatmul.msk.f32.gmra.mxu1 %vm593_vm1, %v4589_v9  ;;  %3727 = vmatmul.msk.f32.gmra.mxu2 %vm593_vm1, %v4478_v57 }
 0x149   : > { %v1164_v30 = vpop.f32.mrf.mxu2 }
 0x14a   : > { %v5096_v6 = vadd.f32 %v1202_v50, %v1164_v30  ;;  %v1242_v36 = vpop.f32.mrf.mxu0  ;;  %3735 = vmatmul.msk.f32.gmra.mxu3 %vm593_vm1, %v4506_v60 }
 0x14b   : > { %v1288_v20 = vpop.f32.mrf.mxu1 }
 0x14d   : > { %3740 = vmatmul.msk.f32.vlgmr.msra.gmra.mxu0 %vm593_vm1, %v4515_v62  ;;  %v1205_v24 = vpop.f32.mrf.mxu3 }
 0x14e   : > { %3724 = vmatmul.msk.f32.gmra.mxu1 %vm593_vm1, %v4603_v11  ;;  %3728 = vmatmul.msk.f32.gmra.mxu2 %vm593_vm1, %v4512_v61 }
 0x14f   : > { %3795 = vmatpush.msk.msra.mxu0 %vm612_vm0, %v6887_v12 }
 0x151   : > { %v1167_v38 = vpop.f32.mrf.mxu2  ;;  %2089 = vmatpush.msra.mxu0 %v6888_v14 }
 0x152   : > { %v5109_v50 = vadd.f32 %v1205_v24, %v1167_v38  ;;  %v1245_v30 = vpop.f32.mrf.mxu0  ;;  %3736 = vmatmul.msk.f32.gmra.mxu3 %vm593_vm1, %v4350_v37  ;;  %v6891_v24 = vld [vmem:[#allocation17_spill] sm:$0xff]  ;;  %v6892_v37 = vld [vmem:[#allocation18_spill] sm:$0xff] }
 0x153   : > { %v1291_v42 = vpop.f32.mrf.mxu1  ;;  %2090 = vmatpush.msra.mxu0 %v6889_v3 }
 0x155   : > { %3741 = vmatmul.msk.f32.gmra.mxu0 %vm593_vm1, %v4535_v1  ;;  %v1208_v54 = vpop.f32.mrf.mxu3 }
 0x156   : > { %3729 = vmatmul.msk.f32.gmra.mxu2 %vm593_vm1, %v4532_v0  ;;  %3747 = vmatmul.msk.f32.vlgmr.msra.gmra.mxu1 %vm593_vm1, %v4433_v51 }
 0x157   : > { %3802 = vmatpush.msk.msra.mxu1 %vm612_vm0, %v6890_v46  ;;  %2091 = vmatpush.msra.mxu0 %v6891_v24 }
 0x159   : > { %v1170_v38 = vpop.f32.mrf.mxu2  ;;  %2130 = vmatpush.msra.mxu1 %v6892_v37 }
 0x15a   : > { %v5124_v28 = vadd.f32 %v1208_v54, %v1170_v38  ;;  %v1248_v47 = vpop.f32.mrf.mxu0  ;;  %3737 = vmatmul.msk.f32.gmra.mxu3 %vm593_vm1, %v4420_v49  ;;  %v1303_v54 = vadd.f32 %v1285_v43, %v1254_v53 }
 0x15b   : > { %v1294_v39 = vpop.f32.mrf.mxu1  ;;  %2131 = vmatpush.msra.mxu1 %v6893_v2 }
 0x15d   : > { %3742 = vmatmul.msk.f32.gmra.mxu0 %vm593_vm1, %v4563_v5  ;;  %v5131_v51 = vpop.f32.mrf.mxu3  ;;  %2132 = vmatpush.msra.mxu1 %v6894_v23 }
 0x15e   : > { %3730 = vmatmul.msk.f32.gmra.mxu2 %vm593_vm1, %v4367_v40  ;;  %3748 = vmatmul.msk.f32.gmra.mxu1 %vm593_vm1, %v4478_v57  ;;  %v1255_v40 = vadd.f32 %v1239_v29, %v5058_v26 }
 0x160   : > { %v1304_v57 = vadd.f32 %v1288_v20, %v1255_v40  ;;  %v6896_v20 = vld [vmem:[#allocation15_spill] sm:$0xff] }
 0x161   : > { %v1334_v49 = vpop.f32.mrf.mxu2 }
 0x162   : > { %v5139_v38 = vadd.f32 %v1334_v49, %v1303_v54  ;;  %v5141_v33 = vpop.f32.mrf.mxu0  ;;  %3738 = vmatmul.msk.f32.gmra.mxu3 %vm593_vm1, %v4803_v17  ;;  %v5194_v49 = vld [vmem:[%s4343_s22 + $0x28] sm:$0xff] }
 0x163   : > { %v1297_v58 = vpop.f32.mrf.mxu1 }
 0x165   : > { %3743 = vmatmul.msk.f32.gmra.mxu0 %vm593_vm1, %v4589_v9  ;;  %v5147_v25 = vpop.f32.mrf.mxu3 }
 0x166   : > { %3731 = vmatmul.msk.f32.gmra.mxu2 %vm593_vm1, %v4646_v16  ;;  %3749 = vmatmul.msk.f32.gmra.mxu1 %vm593_vm1, %v4512_v61  ;;  %v1256_v61 = vadd.f32 %v1242_v36, %v5084_v32  ;;  %v6897_v36 = vld [vmem:[#allocation21_spill] sm:$0xff] }
 0x169   : > { %v1337_v53 = vpop.f32.mrf.mxu2 }
 0x16a   : > { %v5154_v13 = vadd.f32 %v1337_v53, %v1304_v57  ;;  %v5156_v43 = vpop.f32.mrf.mxu0  ;;  %3761 = vmatmul.msk.f32.vlgmr.msrb.gmra.mxu3 %vm593_vm1, %v4417_v48  ;;  %v6895_v48 = vld [vmem:[#allocation11_spill] sm:$0xff] }
 0x16b   : > { %v1300_v54 = vpop.f32.mrf.mxu1  ;;  %3816 = vmatpush.msk.msrb.mxu3 %vm612_vm0, %v6881_v52  ;;  %v1305_v52 = vadd.f32 %v1291_v42, %v1256_v61 }
 0x16d   : > { %3744 = vmatmul.msk.f32.gmra.mxu0 %vm593_vm1, %v4603_v11  ;;  %v5164_v26 = vpop.f32.mrf.mxu3  ;;  %2212 = vmatpush.msrb.mxu3 %v6883_v7 }
 0x16e   : > { %3750 = vmatmul.msk.f32.gmra.mxu1 %vm593_vm1, %v4532_v0  ;;  %3754 = vmatmul.msk.f32.vlgmr.msrb.gmra.mxu2 %vm593_vm1, %v4463_v55  ;;  %v5182_v0 = vld [vmem:[%s4343_s22 + $0xa0] sm:$0xff] }
 0x16f   : > { %3809 = vmatpush.msk.msrb.mxu2 %vm612_vm0, %v6895_v48  ;;  %2213 = vmatpush.msrb.mxu3 %v6885_v44  ;;  %v6898_v44 = vld [vmem:[#allocation22_spill] sm:$0xff] }
 0x171   : > { %v1340_v29 = vpop.f32.mrf.mxu2  ;;  %2171 = vmatpush.msrb.mxu2 %v6896_v20  ;;  %2214 = vmatpush.msrb.mxu3 %v6886_v21  ;;  %v1257_v21 = vadd.f32 %v1245_v30, %v5096_v6  ;;  %v1258_v30 = vadd.f32 %v1248_v47, %v5109_v50 }
 0x172   : > { %v5177_v7 = vadd.f32 %v1340_v29, %v1305_v52  ;;  %v5179_v32 = vpop.f32.mrf.mxu0  ;;  %3762 = vmatmul.msk.f32.gmra.mxu3 %vm593_vm1, %v4472_v56  ;;  %v5223_v29 = vld [vmem:[%s4343_s22 + $0x58] sm:$0xff] }
 0x173   : > { %v1445_v55 = vpop.f32.mrf.mxu1  ;;  %2172 = vmatpush.msrb.mxu2 %v6897_v36  ;;  %v1306_v56 = vadd.f32 %v1294_v39, %v1257_v21  ;;  %v1307_v39 = vadd.f32 %v1297_v58, %v1258_v30  ;;  %v1259_v58 = vadd.f32 %v5141_v33, %v5124_v28  ;;  %v5247_v28 = vld [vmem:[%s4343_s22 + $0x60] sm:$0xff]  ;;  %v6901_v30 = vmax.f32 %v5005_v34, %v5007_v31 }
 0x175   : > { %3745 = vmatmul.msk.f32.gmra.mxu0 %vm593_vm1, %v5182_v0  ;;  %v5189_v42 = vpop.f32.mrf.mxu3  ;;  %2173 = vmatpush.msrb.mxu2 %v6898_v44 }
 0x176   : > { %3751 = vmatmul.msk.f32.gmra.mxu1 %vm593_vm1, %v5194_v49  ;;  %3755 = vmatmul.msk.f32.gmra.mxu2 %vm593_vm1, %v4498_v59 }
 0x179   : > { %v1343_v40 = vpop.f32.mrf.mxu2 }
 0x17a   : > { %v5200_v57 = vadd.f32 %v1343_v40, %v1306_v56  ;;  %v5202_v53 = vpop.f32.mrf.mxu0  ;;  %3763 = vmatmul.msk.f32.gmra.mxu3 %vm593_vm1, %v4506_v60 }
 0x17b   : > { %v1448_v61 = vpop.f32.mrf.mxu1 }
 0x17d   : > { %3768 = vmatmul.msk.f32.vlgmr.msrb.gmra.mxu0 %vm593_vm1, %v4515_v62  ;;  %v5208_v6 = vpop.f32.mrf.mxu3 }
 0x17e   : > { %3752 = vmatmul.msk.f32.gmra.mxu1 %vm593_vm1, %v4646_v16  ;;  %3756 = vmatmul.msk.f32.gmra.mxu2 %vm593_vm1, %v4527_v63 }
 0x17f   : > { %3823 = vmatpush.msk.msrb.mxu0 %vm612_vm0, %v6877_v27  ;;  %v1308_v27 = vadd.f32 %v1300_v54, %v1259_v58 }
 0x181   : > { %v1346_v52 = vpop.f32.mrf.mxu2  ;;  %2247 = vmatpush.msrb.mxu0 %v6880_v41 }
 0x182   : > { %v5218_v60 = vadd.f32 %v1346_v52, %v1307_v39  ;;  %v5220_v62 = vpop.f32.mrf.mxu0  ;;  %3764 = vmatmul.msk.f32.gmra.mxu3 %vm593_vm1, %v5223_v29 }
 0x183   : > { %v1451_v16 = vpop.f32.mrf.mxu1  ;;  %2248 = vmatpush.msrb.mxu0 %v6882_v15 }
 0x185   : > { %3769 = vmatmul.msk.f32.gmra.mxu0 %vm593_vm1, %v4535_v1  ;;  %v5230_v47 = vpop.f32.mrf.mxu3 }
 0x186   : > { %3757 = vmatmul.msk.f32.gmra.mxu2 %vm593_vm1, %v4554_v4  ;;  %3775 = vmatmul.msk.f32.vlgmr.msrb.gmra.mxu1 %vm593_vm1, %v4498_v59 }
 0x187   : > { %3830 = vmatpush.msk.msrb.mxu1 %vm612_vm0, %v6887_v12  ;;  %2249 = vmatpush.msrb.mxu0 %v6884_v22  ;;  %v1411_v22 = vadd.f32 %v5156_v43, %v5131_v51  ;;  %v1414_v43 = vadd.f32 %v5179_v32, %v5147_v25  ;;  %v4087_v25 = vld [vmem:[%s4343_s22 + $0x70] sm:$0xff]  ;;  %v5298_v32 = vld [vmem:[%s4343_s22 + $0xa8] sm:$0xff] }
 0x189   : > { %v1349_v41 = vpop.f32.mrf.mxu2  ;;  %2282 = vmatpush.msrb.mxu1 %v6888_v14  ;;  %v1463_v12 = vadd.f32 %v1445_v55, %v1411_v22  ;;  %v1464_v54 = vadd.f32 %v1448_v61, %v1414_v43  ;;  %v6899_v55 = vmax.f32 %v4968_v18, %v4970_v45  ;;  %v1417_v18 = vadd.f32 %v5202_v53, %v5164_v26  ;;  %v5315_v53 = vld [vmem:[%s4343_s22 + $0x78] sm:$0xff]  ;;  %v5334_v61 = vld [vmem:[%s4343_s22 + $0xb0] sm:$0xff]  ;;  %v6902_v22 = vld [vmem:[#allocation23_spill] sm:$0xff] }
 0x18a   : > { %v5242_v1 = vadd.f32 %v1349_v41, %v1308_v27  ;;  %v5244_v15 = vpop.f32.mrf.mxu0  ;;  %3765 = vmatmul.msk.f32.gmra.mxu3 %vm593_vm1, %v5247_v28  ;;  %v6900_v26 = vmax.f32 %v4985_v35, %v4987_v19  ;;  %v5354_v27 = vld [vmem:[%s4343_s22 + $0x8] sm:$0xff] }
 0x18b   : > { %v1454_v33 = vpop.f32.mrf.mxu1  ;;  %2283 = vmatpush.msrb.mxu1 %v6889_v3  ;;  %v1423_v31 = vadd.f32 %v5244_v15, %v5208_v6 }
 0x18d   : > { %3770 = vmatmul.msk.f32.gmra.mxu0 %vm593_vm1, %v4563_v5  ;;  %v1527_v59 = vpop.f32.mrf.mxu3  ;;  %2284 = vmatpush.msrb.mxu1 %v6891_v24 }
 0x18e   : > { %3758 = vmatmul.msk.f32.gmra.mxu2 %vm593_vm1, %v4582_v8  ;;  %3776 = vmatmul.msk.f32.gmra.mxu1 %vm593_vm1, %v4527_v63 }
 0x191   : > { %v1486_v14 = vpop.f32.mrf.mxu2 }
 0x192   : > { %v1504_v50 = vadd.f32 %v1486_v14, %v1463_v12  ;;  %v5261_v3 = vpop.f32.mrf.mxu0  ;;  %3766 = vmatmul.msk.f32.gmra.mxu3 %vm593_vm1, %v4803_v17  ;;  %v6903_v12 = vld [vmem:[#allocation24_spill] sm:$0xff] }
 0x193   : > { %v5265_v5 = vpop.f32.mrf.mxu1  ;;  %v6904_v14 = vmax.f32 %v6902_v22, %v6903_v12  ;;  %v4103_v22 = vld [vmem:[%s4343_s22 + $0x20] sm:$0xff]  ;;  %v5444_v12 = vld [vmem:[%s4343_s22 + $0x50] sm:$0xff] }
 0x194   : > { %v1545_v24 = vadd.f32 %v1527_v59, %v1504_v50  ;;  %v1467_v59 = vadd.f32 %v5265_v5, %v1423_v31  ;;  %v5430_v31 = vld [vmem:[%s4343_s22 + $0x98] sm:$0xff] }
 0x195   : > { %3771 = vmatmul.msk.f32.gmra.mxu0 %vm593_vm1, %v4589_v9  ;;  %v1530_v51 = vpop.f32.mrf.mxu3 }
 0x196   : > { %v1551_v63 = vmax.f32 %v5139_v38, %v1545_v24  ;;  %3759 = vmatmul.msk.f32.gmra.mxu2 %vm593_vm1, %v4598_v10  ;;  %3777 = vmatmul.msk.f32.gmra.mxu1 %vm593_vm1, %v4554_v4  ;;  %v5377_v24 = vld [vmem:[%s4343_s22 + $0x88] sm:$0xff] }
 0x198   : > { %v5279_v21 = vmax.f32 %v6899_v55, %v1551_v63  ;;  %v4095_v63 = vld [vmem:[%s4343_s22 + $0x10] sm:$0xff] }
 0x199   : > { %v1489_v9 = vpop.f32.mrf.mxu2 }
 0x19a   : > { %v1505_v56 = vadd.f32 %v1489_v9, %v1464_v54  ;;  %v5281_v40 = vpop.f32.mrf.mxu0  ;;  %3789 = vmatmul.msk.f32.vlgmr.msra.gmra.mxu3 %vm593_vm1, %v4087_v25  ;;  %v1426_v54 = vadd.f32 %v5261_v3, %v5230_v47  ;;  %v5387_v9 = vld [vmem:[%s4343_s22 + $0xc0] sm:$0xff] }
 0x19b   : > { %v5285_v38 = vpop.f32.mrf.mxu1  ;;  %3844 = vmatpush.msk.msra.mxu3 %vm612_vm0, %v6895_v48 }
 0x19c   : > { %v1546_v4 = vadd.f32 %v1530_v51, %v1505_v56  ;;  %v5392_v56 = vld [vmem:[%s4343_s22 + $0x40] sm:$0xff]  ;;  %v1468_v25 = vadd.f32 %v5285_v38, %v1426_v54 }
 0x19d   : > { %3772 = vmatmul.msk.f32.gmra.mxu0 %vm593_vm1, %v4603_v11  ;;  %v1533_v10 = vpop.f32.mrf.mxu3  ;;  %2364 = vmatpush.msra.mxu3 %v6896_v20  ;;  %v1465_v11 = vadd.f32 %v1451_v16, %v1417_v18  ;;  %v5351_v16 = vld [vmem:[%s4343_s22 + $0xd8] sm:$0xff] }
 0x19e   : > { %v1552_v45 = vmax.f32 %v5154_v13, %v1546_v4  ;;  %3778 = vmatmul.msk.f32.gmra.mxu1 %vm593_vm1, %v4582_v8  ;;  %3782 = vmatmul.msk.f32.vlgmr.msra.gmra.mxu2 %vm593_vm1, %v5298_v32  ;;  %v6905_v4 = vld [vmem:[#allocation25_spill] sm:$0xff] }
 0x19f   : > { %3837 = vmatpush.msk.msra.mxu2 %vm612_vm0, %v6890_v46  ;;  %2365 = vmatpush.msra.mxu3 %v6897_v36  ;;  %v5322_v36 = vld [vmem:[%s4343_s22 + $0xd0] sm:$0xff] }
 0x1a0   : > { %v5308_v48 = vmax.f32 %v6900_v26, %v1552_v45 }
 0x1a1   : > { %v1492_v13 = vpop.f32.mrf.mxu2  ;;  %2323 = vmatpush.msra.mxu2 %v6892_v37  ;;  %2366 = vmatpush.msra.mxu3 %v6898_v44  ;;  %v1420_v37 = vadd.f32 %v5220_v62, %v5189_v42 }
 0x1a2   : > { %v1506_v8 = vadd.f32 %v1492_v13, %v1465_v11  ;;  %v5312_v20 = vpop.f32.mrf.mxu0  ;;  %3790 = vmatmul.msk.f32.gmra.mxu3 %vm593_vm1, %v5315_v53  ;;  %v5405_v11 = vld [vmem:[%s4343_s22 + $0x90] sm:$0xff] }
 0x1a3   : > { %v5319_v46 = vpop.f32.mrf.mxu1  ;;  %2324 = vmatpush.msra.mxu2 %v6893_v2  ;;  %v1466_v2 = vadd.f32 %v1454_v33, %v1420_v37  ;;  %v5364_v33 = vld [vmem:[%s4343_s22 + $0xb8] sm:$0xff]  ;;  %v5418_v37 = vld [vmem:[%s4343_s22 + $0x48] sm:$0xff] }
 0x1a4   : > { %v1547_v35 = vadd.f32 %v1533_v10, %v1506_v8  ;;  %v6906_v10 = vld [vmem:[#allocation26_spill] sm:$0xff] }
 0x1a5   : > { %3773 = vmatmul.msk.f32.gmra.mxu0 %vm593_vm1, %v5182_v0  ;;  %v1536_v19 = vpop.f32.mrf.mxu3  ;;  %2325 = vmatpush.msra.mxu2 %v6894_v23  ;;  %v6907_v18 = vmax.f32 %v6905_v4, %v6906_v10  ;;  %v4099_v8 = vld [vmem:[%s4343_s22 + $0x18] sm:$0xff] }
 0x1a6   : > { %v1553_v44 = vmax.f32 %v5177_v7, %v1547_v35  ;;  %3779 = vmatmul.msk.f32.gmra.mxu1 %vm593_vm1, %v5322_v36  ;;  %3783 = vmatmul.msk.f32.gmra.mxu2 %vm593_vm1, %v5334_v61  ;;  %v5346_v7 = vld [vmem:[%s4343_s22 + $0x80] sm:$0xff] }
 0x1a8   : > { %v5341_v23 = vmax.f32 %v6901_v30, %v1553_v44  ;;  %v1631_v44 = vadd.f32 %v5319_v46, %v5281_v40  ;;  %v6909_v30 = vld [vmem:[#allocation27_spill] sm:$0xff]  ;;  %v5439_v46 = vld [vmem:[%s4343_s22 + $0xd0] sm:$0xff] }
 0x1a9   : > { %v1495_v39 = vpop.f32.mrf.mxu2 }
 0x1aa   : > { %v1507_v52 = vadd.f32 %v1495_v39, %v1466_v2  ;;  %v5343_v42 = vpop.f32.mrf.mxu0  ;;  %3791 = vmatmul.msk.f32.gmra.mxu3 %vm593_vm1, %v5346_v7  ;;  %v6908_v2 = vld [vmem:[#allocation4_spill] sm:$0xff] }
 0x1ab   : > { %v1633_v62 = vpop.f32.mrf.mxu1  ;;  %v6910_v39 = vmax.f32 %v6908_v2, %v6909_v30 }
 0x1ac   : > { %v1548_v58 = vadd.f32 %v1536_v19, %v1507_v52  ;;  %v5413_v19 = vld [vmem:[%s4343_s22 + $0xc8] sm:$0xff] }
 0x1ad   : > { %3796 = vmatmul.msk.f32.vlgmr.msra.gmra.mxu0 %vm593_vm1, %v5354_v27  ;;  %v1539_v34 = vpop.f32.mrf.mxu3 }
 0x1ae   : > { %v1554_v41 = vmax.f32 %v5200_v57, %v1548_v58  ;;  %3780 = vmatmul.msk.f32.gmra.mxu1 %vm593_vm1, %v5351_v16  ;;  %3784 = vmatmul.msk.f32.gmra.mxu2 %vm593_vm1, %v5364_v33 }
 0x1b0   : > { %v5372_v50 = vmax.f32 %v6904_v14, %v1554_v41  ;;  %v1634_v14 = vadd.f32 %v1633_v62, %v5312_v20 }
 0x1b1   : > { %v1498_v6 = vpop.f32.mrf.mxu2 }
 0x1b2   : > { %v1508_v15 = vadd.f32 %v1498_v6, %v1467_v59  ;;  %v5374_v57 = vpop.f32.mrf.mxu0  ;;  %3792 = vmatmul.msk.f32.gmra.mxu3 %vm593_vm1, %v5377_v24 }
 0x1b3   : > { %v1636_v51 = vpop.f32.mrf.mxu1 }
 0x1b4   : > { %v1549_v43 = vadd.f32 %v1539_v34, %v1508_v15  ;;  %v1637_v20 = vadd.f32 %v1636_v51, %v5343_v42 }
 0x1b5   : > { %3797 = vmatmul.msk.f32.gmra.mxu0 %vm593_vm1, %v4095_v63  ;;  %v1542_v5 = vpop.f32.mrf.mxu3 }
 0x1b6   : > { %v1555_v55 = vmax.f32 %v5218_v60, %v1549_v43  ;;  %3785 = vmatmul.msk.f32.gmra.mxu2 %vm593_vm1, %v5387_v9  ;;  %3803 = vmatmul.msk.f32.vlgmr.msra.gmra.mxu1 %vm593_vm1, %v5392_v56 }
 0x1b8   : > { %v5400_v47 = vmax.f32 %v6907_v18, %v1555_v55  ;;  %v4106_v18 = vld [vmem:[%s4343_s22 + $0x30] sm:$0xff] }
 0x1b9   : > { %v1501_v60 = vpop.f32.mrf.mxu2 }
 0x1ba   : > { %v1509_v3 = vadd.f32 %v1501_v60, %v1468_v25  ;;  %v5402_v45 = vpop.f32.mrf.mxu0  ;;  %3793 = vmatmul.msk.f32.gmra.mxu3 %vm593_vm1, %v5405_v11 }
 0x1bb   : > { %v1639_v26 = vpop.f32.mrf.mxu1 }
 0x1bc   : > { %v1550_v13 = vadd.f32 %v1542_v5, %v1509_v3  ;;  %v1640_v42 = vadd.f32 %v1639_v26, %v5374_v57 }
 0x1bd   : > { %3798 = vmatmul.msk.f32.gmra.mxu0 %vm593_vm1, %v4099_v8  ;;  %v1706_v38 = vpop.f32.mrf.mxu3 }
 0x1be   : > { %v1556_v35 = vmax.f32 %v5242_v1, %v1550_v13  ;;  %3786 = vmatmul.msk.f32.gmra.mxu2 %vm593_vm1, %v5413_v19  ;;  %3804 = vmatmul.msk.f32.gmra.mxu1 %vm593_vm1, %v5418_v37 }
 0x1c0   : > { %v5427_v52 = vmax.f32 %v6910_v39, %v1556_v35 }
 0x1c1   : > { %v1665_v1 = vpop.f32.mrf.mxu2 }
 0x1c2   : > { %6911 = vst [vmem:[#allocation6_spill] sm:$0xff] %v5427_v52  ;;  %v1683_v58 = vadd.f32 %v1665_v1, %v1631_v44  ;;  %v1610_v34 = vpop.f32.mrf.mxu0  ;;  %3794 = vmatmul.msk.f32.gmra.mxu3 %vm593_vm1, %v5430_v31  ;;  %v5512_v1 = vld [vmem:[%s6783_s3 + $0x30] sm:$0xff]  ;;  %v5913_v52 = vld [vmem:[%s6783_s3 + $0xe8] sm:$0xff] }
 0x1c3   : > { %v1642_v41 = vpop.f32.mrf.mxu1 }
 0x1c4   : > { %v5434_v59 = vadd.f32 %v1706_v38, %v1683_v58  ;;  %v1643_v57 = vadd.f32 %v1642_v41, %v5402_v45  ;;  %v5506_v45 = vld [vmem:[%s6783_s3 + $0x38] sm:$0xff] }
 0x1c5   : > { %3799 = vmatmul.msk.f32.gmra.mxu0 %vm593_vm1, %v4103_v22  ;;  %v1709_v40 = vpop.f32.mrf.mxu3 }
 0x1c6   : > { %3787 = vmatmul.msk.f32.gmra.mxu2 %vm593_vm1, %v5439_v46  ;;  %3805 = vmatmul.msk.f32.gmra.mxu1 %vm593_vm1, %v5444_v12 }
 0x1c9   : > { %v1668_v6 = vpop.f32.mrf.mxu2 }
 0x1ca   : > { %v1684_v15 = vadd.f32 %v1668_v6, %v1634_v14  ;;  %v5449_v43 = vpop.f32.mrf.mxu0  ;;  %3817 = vmatmul.msk.f32.vlgmr.msrb.gmra.mxu3 %vm593_vm1, %v5354_v27  ;;  %v5532_v14 = vld [vmem:[%s6783_s3 + $0x20] sm:$0xff]  ;;  %v5544_v6 = vld [vmem:[%s6783_s3 + $0x18] sm:$0xff] }
 0x1cb   : > { %v1645_v5 = vpop.f32.mrf.mxu1 }
 0x1cc   : > { %v5453_v54 = vadd.f32 %v1709_v40, %v1684_v15  ;;  %v1646_v39 = vadd.f32 %v1645_v5, %v1610_v34  ;;  %v5550_v15 = vld [vmem:[%s6783_s3 + $0x10] sm:$0xff] }
 0x1cd   : > { %3800 = vmatmul.msk.f32.gmra.mxu0 %vm593_vm1, %v5194_v49  ;;  %v1712_v55 = vpop.f32.mrf.mxu3 }
 0x1ce   : > { %3806 = vmatmul.msk.f32.gmra.mxu1 %vm593_vm1, %v5223_v29  ;;  %3810 = vmatmul.msk.f32.vlgmr.msrb.gmra.mxu2 %vm593_vm1, %v5315_v53 }
 0x1d1   : > { %v1671_v62 = vpop.f32.mrf.mxu2 }
 0x1d2   : > { %v1685_v25 = vadd.f32 %v1671_v62, %v1637_v20  ;;  %v5462_v4 = vpop.f32.mrf.mxu0  ;;  %3818 = vmatmul.msk.f32.gmra.mxu3 %vm593_vm1, %v4095_v63 }
 0x1d3   : > { %v1806_v27 = vpop.f32.mrf.mxu1 }
 0x1d4   : > { %v5465_v10 = vadd.f32 %v1712_v55, %v1685_v25  ;;  %v5567_v25 = vld [vmem:[%s6783_s3] sm:$0xff] }
 0x1d5   : > { %3801 = vmatmul.msk.f32.gmra.mxu0 %vm593_vm1, %v4106_v18  ;;  %v1715_v60 = vpop.f32.mrf.mxu3 }
 0x1d6   : > { %3807 = vmatmul.msk.f32.gmra.mxu1 %vm593_vm1, %v5247_v28  ;;  %3811 = vmatmul.msk.f32.gmra.mxu2 %vm593_vm1, %v5346_v7 }
 0x1d9   : > { %v1674_v51 = vpop.f32.mrf.mxu2 }
 0x1da   : > { %v1686_v3 = vadd.f32 %v1674_v51, %v1640_v42  ;;  %v5474_v13 = vpop.f32.mrf.mxu0  ;;  %3819 = vmatmul.msk.f32.gmra.mxu3 %vm593_vm1, %v4099_v8 }
 0x1db   : > { %v1809_v63 = vpop.f32.mrf.mxu1 }
 0x1dc   : > { %v5477_v38 = vadd.f32 %v1715_v60, %v1686_v3  ;;  %v5583_v3 = vld [vmem:[%s6783_s3 + $0xd0] sm:$0xff] }
 0x1dd   : > { %3824 = vmatmul.msk.f32.vlgmr.msrb.gmra.mxu0 %vm593_vm1, %v5298_v32  ;;  %v1718_v35 = vpop.f32.mrf.mxu3  ;;  %v5494_v32 = vld [vmem:[%s6783_s3 + $0x40] sm:$0xff]  ;;  %2539 = vmatpush.msrb.mxu2 %v5583_v3 }
 0x1de   : > { %3808 = vmatmul.msk.f32.gmra.mxu1 %vm593_vm1, %v4803_v17  ;;  %3812 = vmatmul.msk.f32.gmra.mxu2 %vm593_vm1, %v5377_v24 }
 0x1df   : > { %2497 = vmatpush.msra.mxu1 %v5494_v32 }
 0x1e1   : > { %v1677_v26 = vpop.f32.mrf.mxu2  ;;  %2498 = vmatpush.msra.mxu1 %v5506_v45 }
 0x1e2   : > { %v1687_v44 = vadd.f32 %v1677_v26, %v1643_v57  ;;  %v5486_v2 = vpop.f32.mrf.mxu0  ;;  %3820 = vmatmul.msk.f32.gmra.mxu3 %vm593_vm1, %v4103_v22 }
 0x1e3   : > { %v1812_v8 = vpop.f32.mrf.mxu1  ;;  %2499 = vmatpush.msra.mxu1 %v5512_v1 }
 0x1e4   : > { %v5489_v30 = vadd.f32 %v1718_v35, %v1687_v44 }
 0x1e5   : > { %3825 = vmatmul.msk.f32.gmra.mxu0 %vm593_vm1, %v5334_v61  ;;  %v1721_v17 = vpop.f32.mrf.mxu3 }
 0x1e6   : > { %3813 = vmatmul.msk.f32.gmra.mxu2 %vm593_vm1, %v5405_v11  ;;  %3831 = vmatmul.msk.f32.vlgmr.msrb.gmra.mxu1 %vm593_vm1, %v5392_v56  ;;  %v5522_v56 = vld [vmem:[%s6783_s3 + $0x28] sm:$0xff] }
 0x1e7   : > { %2500 = vmatpush.msra.mxu1 %v5522_v56 }
 0x1e9   : > { %v1680_v58 = vpop.f32.mrf.mxu2  ;;  %2501 = vmatpush.msra.mxu1 %v5532_v14 }
 0x1ea   : > { %v1688_v41 = vadd.f32 %v1680_v58, %v1646_v39  ;;  %v5515_v22 = vpop.f32.mrf.mxu0  ;;  %3821 = vmatmul.msk.f32.gmra.mxu3 %vm593_vm1, %v5194_v49  ;;  %v5616_v39 = vadd.f32 %v5449_v43, %v5434_v59  ;;  %v5642_v43 = vld [vmem:[%s6783_s3 + $0xa8] sm:$0xff] }
 0x1eb   : > { %v5524_v34 = vpop.f32.mrf.mxu1  ;;  %2502 = vmatpush.msra.mxu1 %v5544_v6 }
 0x1ec   : > { %v5527_v40 = vadd.f32 %v1721_v17, %v1688_v41 }
 0x1ed   : > { %3826 = vmatmul.msk.f32.gmra.mxu0 %vm593_vm1, %v5364_v33  ;;  %v1876_v49 = vpop.f32.mrf.mxu3  ;;  %2503 = vmatpush.msra.mxu1 %v5550_v15 }
 0x1ee   : > { %3814 = vmatmul.msk.f32.gmra.mxu2 %vm593_vm1, %v5430_v31  ;;  %3832 = vmatmul.msk.f32.gmra.mxu1 %vm593_vm1, %v5418_v37  ;;  %v5559_v37 = vld [vmem:[%s6783_s3 + $0x8] sm:$0xff] }
 0x1ef   : > { %2504 = vmatpush.msra.mxu1 %v5559_v37 }
 0x1f1   : > { %v1841_v5 = vpop.f32.mrf.mxu2  ;;  %2505 = vmatpush.msra.mxu1 %v5567_v25 }
 0x1f2   : > { %v1842_v55 = vadd.f32 %v1841_v5, %v1806_v27  ;;  %v5553_v20 = vpop.f32.mrf.mxu0  ;;  %3822 = vmatmul.msk.f32.gmra.mxu3 %vm593_vm1, %v4106_v18 }
 0x1f3   : > { %v5561_v62 = vpop.f32.mrf.mxu1 }
 0x1f5   : > { %3827 = vmatmul.msk.f32.gmra.mxu0 %vm593_vm1, %v5387_v9  ;;  %v1879_v27 = vpop.f32.mrf.mxu3 }
 0x1f6   : > { %3815 = vmatmul.msk.f32.gmra.mxu2 %vm593_vm1, %v5182_v0  ;;  %3833 = vmatmul.msk.f32.gmra.mxu1 %vm593_vm1, %v5444_v12  ;;  %v1894_v12 = vadd.f32 %v1876_v49, %v1842_v55 }
 0x1f9   : > { %v1844_v18 = vpop.f32.mrf.mxu2 }
 0x1fa   : > { %v1845_v60 = vadd.f32 %v1844_v18, %v1809_v63  ;;  %v1917_v42 = vpop.f32.mrf.mxu0  ;;  %3845 = vmatmul.msk.f32.vlgmr.msra.gmra.mxu3 %vm593_vm1, %v5334_v61  ;;  %v5597_v61 = vld [vmem:[%s6783_s3 + $0xc8] sm:$0xff]  ;;  %v5603_v63 = vld [vmem:[%s6783_s3 + $0xc0] sm:$0xff] }
 0x1fb   : > { %v5578_v51 = vpop.f32.mrf.mxu1  ;;  %2540 = vmatpush.msrb.mxu2 %v5597_v61 }
 0x1fc   : > { %v1895_v49 = vadd.f32 %v1879_v27, %v1845_v60  ;;  %v5663_v27 = vld [vmem:[%s6783_s3 + $0x98] sm:$0xff]  ;;  %v3856_v60 = vld [vmem:[%s6783_s3 + $0x70] sm:$0xff] }
 0x1fd   : > { %3828 = vmatmul.msk.f32.gmra.mxu0 %vm593_vm1, %v5413_v19  ;;  %v5587_v35 = vpop.f32.mrf.mxu3  ;;  %2541 = vmatpush.msrb.mxu2 %v5603_v63 }
 0x1fe   : > { %3834 = vmatmul.msk.f32.gmra.mxu1 %vm593_vm1, %v5223_v29  ;;  %3838 = vmatmul.msk.f32.vlgmr.msra.gmra.mxu2 %vm593_vm1, %v5315_v53  ;;  %v1935_v29 = vadd.f32 %v1917_v42, %v1894_v12  ;;  %v5611_v53 = vld [vmem:[%s6783_s3 + $0xb8] sm:$0xff] }
 0x1ff   : > { %2542 = vmatpush.msrb.mxu2 %v5611_v53 }
 0x201   : > { %v1847_v57 = vpop.f32.mrf.mxu2 }
 0x202   : > { %v1848_v26 = vadd.f32 %v1847_v57, %v1812_v8  ;;  %v1920_v44 = vpop.f32.mrf.mxu0  ;;  %3846 = vmatmul.msk.f32.gmra.mxu3 %vm593_vm1, %v5364_v33  ;;  %v5623_v8 = vld [vmem:[%s6783_s3 + $0xb0] sm:$0xff]  ;;  %v3859_v33 = vld [vmem:[%s6783_s3 + $0x88] sm:$0xff] }
 0x203   : > { %v1976_v17 = vpop.f32.mrf.mxu1  ;;  %2543 = vmatpush.msrb.mxu2 %v5623_v8  ;;  %2664 = vmatpush.msrb.mxu1 %v3859_v33  ;;  %v1936_v55 = vadd.f32 %v1920_v44, %v1895_v49  ;;  %v3855_v44 = vld [vmem:[%s6783_s3 + $0x68] sm:$0xff] }
 0x204   : > { %v5618_v58 = vadd.f32 %v1976_v17, %v1935_v29  ;;  %2456 = vmatpush.msra.mxu0 %v3859_v33  ;;  %v5683_v29 = vld [vmem:[%s6783_s3 + $0x90] sm:$0xff]  ;;  %v3854_v33 = vld [vmem:[%s6783_s3 + $0x60] sm:$0xff]  ;;  %v1896_v49 = vadd.f32 %v5587_v35, %v1848_v26 }
 0x205   : > { %3829 = vmatmul.msk.f32.gmra.mxu0 %vm593_vm1, %v5439_v46  ;;  %v5630_v41 = vpop.f32.mrf.mxu3  ;;  %v3858_v46 = vld [vmem:[%s6783_s3 + $0x80] sm:$0xff]  ;;  %2544 = vmatpush.msrb.mxu2 %v5642_v43 }
 0x206   : > { %3835 = vmatmul.msk.f32.gmra.mxu1 %vm593_vm1, %v5247_v28  ;;  %3839 = vmatmul.msk.f32.gmra.mxu2 %vm593_vm1, %v5346_v7  ;;  %v5651_v28 = vld [vmem:[%s6783_s3 + $0xa0] sm:$0xff]  ;;  %v3857_v7 = vld [vmem:[%s6783_s3 + $0x78] sm:$0xff] }
 0x207   : > { %2665 = vmatpush.msrb.mxu1 %v3858_v46  ;;  %2545 = vmatpush.msrb.mxu2 %v5651_v28 }
 0x208   : > { %2457 = vmatpush.msra.mxu0 %v3858_v46 }
 0x209   : > { %v1850_v5 = vpop.f32.mrf.mxu2  ;;  %2666 = vmatpush.msrb.mxu1 %v3857_v7  ;;  %2546 = vmatpush.msrb.mxu2 %v5663_v27 }
 0x20a   : > { %v1851_v18 = vadd.f32 %v1850_v5, %v5524_v34  ;;  %v1923_v42 = vpop.f32.mrf.mxu0  ;;  %3847 = vmatmul.msk.f32.gmra.mxu3 %vm593_vm1, %v5387_v9  ;;  %v5672_v34 = vld [vmem:[%s6782_s2] ss:$0 sm:$0xff]  ;;  %v5676_v9 = vadd.f32 %v5462_v4, %v5453_v54  ;;  %2458 = vmatpush.msra.mxu0 %v3857_v7  ;;  %v4107_v4 = vld [vmem:[%s4343_s22 + $0x68] sm:$0xff]  ;;  %v3853_v7 = vld [vmem:[%s6783_s3 + $0x58] sm:$0xff]  ;;  %s3492_s22 = sshll.u32 %s6958_s20, 3 }
 0x20b   : > { %v1979_v12 = vpop.f32.mrf.mxu1  ;;  %2667 = vmatpush.msrb.mxu1 %v3856_v60  ;;  %2547 = vmatpush.msrb.mxu2 %v5683_v29  ;;  %v5700_v46 = vadd.f32 %v5672_v34, %v5279_v21  ;;  %v3852_v21 = vld [vmem:[%s6783_s3 + $0x50] sm:$0xff]  ;;  %s527_s27 = scalar_lea.vmem %s6791_s11, %s3492_s22 }
 0x20c   : > { %v5678_v57 = vadd.f32 %v1979_v12, %v1936_v55  ;;  %2459 = vmatpush.msra.mxu0 %v3856_v60  ;;  %v5716_v55 = vadd.f32 %v5474_v13, %v5465_v10  ;;  %v1567_v10 = vadd.f32 %v5672_v34, %v5308_v48  ;;  %v1897_v13 = vadd.f32 %v5630_v41, %v1851_v18  ;;  %v5899_v60 = vld [vmem:[%s6783_s3 + $0xf0] sm:$0xff] }
 0x20d   : > { %v1888_v17 = vpop.f32.mrf.mxu3  ;;  %2668 = vmatpush.msrb.mxu1 %v3855_v44  ;;  %6912 = vst [vmem:[#allocation3_spill] sm:$0xff] %v5700_v46  ;;  %2693 = vmatpush.msra.mxu2 %v5494_v32  ;;  %v6838_v32 = vmax.f32 %v5700_v46, 0.0 }
 0x20e   : > { %3836 = vmatmul.msk.f32.gmra.mxu1 %vm593_vm1, %v4107_v4  ;;  %3840 = vmatmul.msk.f32.gmra.mxu2 %vm593_vm1, %v5377_v24  ;;  %v1937_v24 = vadd.f32 %v1923_v42, %v1896_v49 }
 0x20f   : > { %2669 = vmatpush.msrb.mxu1 %v3854_v33  ;;  %2460 = vmatpush.msra.mxu0 %v3855_v44  ;;  %v5739_v44 = vmax.f32 %v1567_v10, 0.0  ;;  %v1570_v10 = vadd.f32 %v5672_v34, %v5400_v47 }
 0x210   : > { %2694 = vmatpush.msra.mxu2 %v5506_v45 }
 0x211   : > { %v1853_v5 = vpop.f32.mrf.mxu2  ;;  %2670 = vmatpush.msrb.mxu1 %v3853_v7  ;;  %2461 = vmatpush.msra.mxu0 %v3854_v33  ;;  %6913 = vst [vmem:[#allocation8_spill] sm:$0xff] %v5739_v44 }
 0x212   : > { %3848 = vmatmul.msk.f32.gmra.mxu3 %vm593_vm1, %v5413_v19  ;;  %v1926_v35 = vpop.f32.mrf.mxu0  ;;  %v3851_v19 = vld [vmem:[%s6783_s3 + $0x48] sm:$0xff]  ;;  %2695 = vmatpush.msra.mxu2 %v5512_v1  ;;  %v1854_v48 = vadd.f32 %v1853_v5, %v5561_v62  ;;  %v5790_v5 = vadd.f32 %v5553_v20, %v5527_v40 }
 0x213   : > { %v1982_v26 = vpop.f32.mrf.mxu1  ;;  %2671 = vmatpush.msrb.mxu1 %v3852_v21  ;;  %2462 = vmatpush.msra.mxu0 %v3853_v7  ;;  %v1938_v12 = vadd.f32 %v1926_v35, %v1897_v13 }
 0x214   : > { %v5718_v42 = vadd.f32 %v1982_v26, %v1937_v24  ;;  %2696 = vmatpush.msra.mxu2 %v5522_v56  ;;  %v5743_v56 = vadd.f32 %v5486_v2, %v5477_v38  ;;  %v1568_v38 = vadd.f32 %v5672_v34, %v5341_v23  ;;  %v1898_v2 = vadd.f32 %v1888_v17, %v1854_v48 }
 0x215   : > { %v1891_v45 = vpop.f32.mrf.mxu3  ;;  %2672 = vmatpush.msrb.mxu1 %v3851_v19  ;;  %2463 = vmatpush.msra.mxu0 %v3852_v21  ;;  %6918 = vst [vmem:[#allocation12_spill] sm:$0xff] %v5790_v5  ;;  %v3900_v5 = vld [vmem:[%s6783_s3 + $0x150] sm:$0xff] }
 0x216   : > { %3841 = vmatmul.msk.f32.gmra.mxu2 %vm593_vm1, %v5405_v11  ;;  %3864 = vmatmul.msk.f32.vlgmr.msra.gmra.mxu1 %vm2436_vm2, %v6838_v32  ;;  %v5765_v4 = vmax.f32 %v1568_v38, 0.0 }
 0x217   : > { %2697 = vmatpush.msra.mxu2 %v5532_v14  ;;  %2464 = vmatpush.msra.mxu0 %v3851_v19 }
 0x218   : > { %6914 = vst [vmem:[#allocation5_spill] sm:$0xff] %v5765_v4 }
 0x219   : > { %v1856_v1 = vpop.f32.mrf.mxu2  ;;  %2698 = vmatpush.msra.mxu2 %v5544_v6 }
 0x21a   : > { %3849 = vmatmul.msk.f32.gmra.mxu3 %vm593_vm1, %v5322_v36  ;;  %v1929_v18 = vpop.f32.mrf.mxu0 }
 0x21b   : > { %v1985_v11 = vpop.f32.mrf.mxu1  ;;  %2699 = vmatpush.msra.mxu2 %v5550_v15  ;;  %v1939_v15 = vadd.f32 %v1929_v18, %v1898_v2  ;;  %v5853_v2 = vld [vmem:[%s6783_s3 + $0x110] sm:$0xff] }
 0x21c   : > { %v5746_v41 = vadd.f32 %v1985_v11, %v1938_v12  ;;  %v5830_v12 = vmax.f32 %v1570_v10, 0.0  ;;  %v5835_v11 = vld [vmem:[%s6783_s3 + $0x118] sm:$0xff] }
 0x21d   : > { %v5748_v14 = vpop.f32.mrf.mxu3  ;;  %2700 = vmatpush.msra.mxu2 %v5559_v37  ;;  %v1857_v37 = vadd.f32 %v1856_v1, %v5578_v51  ;;  %2585 = vmatpush.msrb.mxu3 %v5835_v11  ;;  %v5885_v10 = vld [vmem:[%s6783_s3 + $0xf8] sm:$0xff] }
 0x21e   : > { %3842 = vmatmul.msk.f32.gmra.mxu2 %vm593_vm1, %v5430_v31  ;;  %3865 = vmatmul.msk.f32.gmra.mxu1 %vm2436_vm2, %v5739_v44  ;;  %v5769_v31 = vadd.f32 %v5515_v22, %v5489_v30  ;;  %v1569_v30 = vadd.f32 %v5672_v34, %v5372_v50  ;;  %6920 = vst [vmem:[#allocation16_spill] sm:$0xff] %v5830_v12 }
 0x21f   : > { %2701 = vmatpush.msra.mxu2 %v5567_v25  ;;  %v1899_v22 = vadd.f32 %v1891_v45, %v1857_v37  ;;  %2586 = vmatpush.msrb.mxu3 %v5853_v2  ;;  %v5865_v37 = vld [vmem:[%s6783_s3 + $0x108] sm:$0xff] }
 0x220   : > { %6915 = vst [vmem:[#allocation10_spill] sm:$0xff] %v5769_v31  ;;  %v5786_v7 = vmax.f32 %v1569_v30, 0.0  ;;  %v5873_v30 = vld [vmem:[%s6783_s3 + $0x100] sm:$0xff]  ;;  %v3899_v31 = vld [vmem:[%s6783_s3 + $0x148] sm:$0xff] }
 0x221   : > { %v5760_v6 = vpop.f32.mrf.mxu2  ;;  %2587 = vmatpush.msrb.mxu3 %v5865_v37 }
 0x222   : > { %3850 = vmatmul.msk.f32.gmra.mxu3 %vm593_vm1, %v5351_v16  ;;  %v1932_v16 = vpop.f32.mrf.mxu0  ;;  %6917 = vst [vmem:[#allocation9_spill] sm:$0xff] %v5786_v7 }
 0x223   : > { %v1988_v62 = vpop.f32.mrf.mxu1  ;;  %v1940_v51 = vadd.f32 %v1932_v16, %v1899_v22  ;;  %2588 = vmatpush.msrb.mxu3 %v5873_v30 }
 0x224   : > { %v5772_v33 = vadd.f32 %v1988_v62, %v1939_v15 }
 0x225   : > { %v5774_v23 = vpop.f32.mrf.mxu3  ;;  %2589 = vmatpush.msrb.mxu3 %v5885_v10 }
 0x226   : > { %6916 = vst [vmem:[#allocation7_spill] sm:$0xff] %v5772_v33  ;;  %3843 = vmatmul.msk.f32.gmra.mxu2 %vm593_vm1, %v5182_v0  ;;  %3866 = vmatmul.msk.f32.gmra.mxu1 %vm2436_vm2, %v5765_v4  ;;  %v5932_v33 = vld [vmem:[%s6783_s3 + $0xe0] sm:$0xff] }
 0x227   : > { %2590 = vmatpush.msrb.mxu3 %v5899_v60 }
 0x229   : > { %v5784_v17 = vpop.f32.mrf.mxu2  ;;  %2591 = vmatpush.msrb.mxu3 %v5913_v52 }
 0x22a   : > { %v5804_v35 = vpop.f32.mrf.mxu0 }
 0x22b   : > { %v1991_v49 = vpop.f32.mrf.mxu1  ;;  %2592 = vmatpush.msrb.mxu3 %v5932_v33 }
 0x22c   : > { %v5792_v24 = vadd.f32 %v1991_v49, %v1940_v51 }
 0x22d   : > { %v5794_v0 = vpop.f32.mrf.mxu3 }
 0x22e   : > { %6919 = vst [vmem:[#allocation14_spill] sm:$0xff] %v5792_v24  ;;  %3867 = vmatmul.msk.f32.gmra.mxu1 %vm2436_vm2, %v5786_v7  ;;  %3877 = vmatmul.msk.f32.vlgmr.msrb.gmra.mxu2 %vm2436_vm2, %v5739_v44  ;;  %v3901_v24 = vld [vmem:[%s6783_s3 + $0x158] sm:$0xff] }
 0x231   : > { %v5802_v50 = vpop.f32.mrf.mxu2 }
 0x232   : > { %v5822_v45 = vpop.f32.mrf.mxu0 }
 0x233   : > { %v5812_v40 = vpop.f32.mrf.mxu1 }
 0x235   : > { %v5806_v26 = vpop.f32.mrf.mxu3 }
 0x236   : > { %3878 = vmatmul.msk.f32.gmra.mxu2 %vm2436_vm2, %v5765_v4  ;;  %3907 = vmatmul.msk.f32.vlgmr.msrb.gmra.mxu1 %vm2436_vm2, %v5739_v44 }
 0x239   : > { %v5814_v20 = vpop.f32.mrf.mxu2 }
 0x23a   : > { %v5844_v47 = vpop.f32.mrf.mxu0 }
 0x23b   : > { %v5826_v13 = vpop.f32.mrf.mxu1 }
 0x23d   : > { %v5816_v19 = vpop.f32.mrf.mxu3 }
 0x23e   : > { %3879 = vmatmul.msk.f32.gmra.mxu2 %vm2436_vm2, %v5786_v7  ;;  %3908 = vmatmul.msk.f32.gmra.mxu1 %vm2436_vm2, %v5765_v4 }
 0x241   : > { %v5828_v1 = vpop.f32.mrf.mxu2 }
 0x242   : > { %v5867_v16 = vpop.f32.mrf.mxu0 }
 0x243   : > { %v5848_v38 = vpop.f32.mrf.mxu1 }
 0x245   : > { %v5837_v48 = vpop.f32.mrf.mxu3 }
 0x246   : > { %6921 = vst [vmem:[#allocation13_spill] sm:$0xff] %v5837_v48  ;;  %3880 = vmatmul.msk.f32.gmra.mxu2 %vm2436_vm2, %v5830_v12  ;;  %3909 = vmatmul.msk.f32.gmra.mxu1 %vm2436_vm2, %v5786_v7 }
 0x249   : > { %v5846_v18 = vpop.f32.mrf.mxu2 }
 0x24a   : > { %6922 = vst [vmem:[#allocation17_spill] sm:$0xff] %v5846_v18  ;;  %v5887_v32 = vpop.f32.mrf.mxu0 }
 0x24b   : > { %v5875_v22 = vpop.f32.mrf.mxu1 }
 0x24d   : > { %v5855_v15 = vpop.f32.mrf.mxu3 }
 0x24e   : > { %3910 = vmatmul.msk.f32.gmra.mxu1 %vm2436_vm2, %v5830_v12  ;;  %v3902_v12 = vld [vmem:[%s6783_s3 + $0x160] sm:$0xff] }
 0x24f   : > { %2791 = vmatpush.msra.mxu1 %v3902_v12  ;;  %2631 = vmatpush.msrb.mxu0 %v3902_v12 }
 0x251   : > { %v5860_v62 = vpop.f32.mrf.mxu2  ;;  %2792 = vmatpush.msra.mxu1 %v3901_v24  ;;  %2632 = vmatpush.msrb.mxu0 %v3901_v24  ;;  %v5941_v24 = vld [vmem:[%s6783_s3 + $0xd8] sm:$0xff] }
 0x252   : > { %v5904_v59 = vpop.f32.mrf.mxu0  ;;  %6926 = vst [vmem:[#allocation11_spill] sm:$0xff] %v5941_v24  ;;  %2593 = vmatpush.msrb.mxu3 %v5941_v24 }
 0x253   : > { %v5892_v25 = vpop.f32.mrf.mxu1  ;;  %6923 = vst [vmem:[#allocation18_spill] sm:$0xff] %v5904_v59  ;;  %2793 = vmatpush.msra.mxu1 %v3900_v5  ;;  %2633 = vmatpush.msrb.mxu0 %v3900_v5  ;;  %v3898_v59 = vld [vmem:[%s6783_s3 + $0x140] sm:$0xff]  ;;  %v3897_v5 = vld [vmem:[%s6783_s3 + $0x138] sm:$0xff] }
 0x254   : > { %2722 = vmatpush.msra.mxu3 %v5583_v3  ;;  %v3895_v3 = vld [vmem:[%s6783_s3 + $0x128] sm:$0xff] }
 0x255   : > { %v5877_v51 = vpop.f32.mrf.mxu3  ;;  %2794 = vmatpush.msra.mxu1 %v3899_v31  ;;  %2634 = vmatpush.msrb.mxu0 %v3899_v31  ;;  %v3896_v31 = vld [vmem:[%s6783_s3 + $0x130] sm:$0xff] }
 0x256   : > { %2723 = vmatpush.msra.mxu3 %v5597_v61 }
 0x257   : > { %2795 = vmatpush.msra.mxu1 %v3898_v59  ;;  %2635 = vmatpush.msrb.mxu0 %v3898_v59 }
 0x258   : > { %2724 = vmatpush.msra.mxu3 %v5603_v63  ;;  %v2059_v63 = vadd.f32 %v5748_v14, %v5760_v6  ;;  %v5987_v14 = vld [vmem:[%s6783_s3 + $0x1e0] sm:$0xff] }
 0x259   : > { %v5880_v49 = vpop.f32.mrf.mxu2  ;;  %2796 = vmatpush.msra.mxu1 %v3897_v5  ;;  %2636 = vmatpush.msrb.mxu0 %v3897_v5  ;;  %v5970_v5 = vld [vmem:[%s6783_s3 + $0x1f0] sm:$0xff] }
 0x25a   : > { %v2251_v4 = vpop.f32.mrf.mxu0  ;;  %2725 = vmatpush.msra.mxu3 %v5611_v53  ;;  %2848 = vmatpush.msrb.mxu2 %v5970_v5  ;;  %v5979_v53 = vld [vmem:[%s6783_s3 + $0x1e8] sm:$0xff]  ;;  %v2111_v24 = vadd.f32 %v5804_v35, %v2059_v63 }
 0x25b   : > { %v5906_v44 = vpop.f32.mrf.mxu1  ;;  %2797 = vmatpush.msra.mxu1 %v3896_v31  ;;  %2637 = vmatpush.msrb.mxu0 %v3896_v31  ;;  %v2252_v31 = vadd.f32 %v2251_v4, %v5855_v15 }
 0x25c   : > { %6924 = vst [vmem:[#allocation19_spill] sm:$0xff] %v5906_v44  ;;  %2726 = vmatpush.msra.mxu3 %v5623_v8  ;;  %2849 = vmatpush.msrb.mxu2 %v5979_v53  ;;  %v2152_v6 = vadd.f32 %v5812_v40, %v2111_v24  ;;  %v5995_v8 = vld [vmem:[%s6783_s3 + $0x1d8] sm:$0xff]  ;;  %v6013_v24 = vld [vmem:[%s6783_s3 + $0x1c8] sm:$0xff] }
 0x25d   : > { %v5889_v21 = vpop.f32.mrf.mxu3  ;;  %2798 = vmatpush.msra.mxu1 %v3895_v3  ;;  %2638 = vmatpush.msrb.mxu0 %v3895_v3 }
 0x25e   : > { %2727 = vmatpush.msra.mxu3 %v5642_v43  ;;  %2850 = vmatpush.msrb.mxu2 %v5987_v14  ;;  %v2193_v35 = vadd.f32 %v5860_v62, %v2152_v6  ;;  %v6003_v43 = vld [vmem:[%s6783_s3 + $0x1d0] sm:$0xff]  ;;  %v6046_v6 = vld [vmem:[%s6783_s3 + $0x280] sm:$0xff] }
 0x260   : > { %2728 = vmatpush.msra.mxu3 %v5651_v28  ;;  %2851 = vmatpush.msrb.mxu2 %v5995_v8 }
 0x261   : > { %v5894_v36 = vpop.f32.mrf.mxu2 }
 0x262   : > { %2729 = vmatpush.msra.mxu3 %v5663_v27  ;;  %2852 = vmatpush.msrb.mxu2 %v6003_v43  ;;  %v6929_v27 = vmax.f32 %v5616_v39, %v5618_v58  ;;  %v6032_v39 = vld [vmem:[%s6783_s3 + $0x1b8] sm:$0xff] }
 0x263   : > { %v2286_v12 = vpop.f32.mrf.mxu1 }
 0x264   : > { %2730 = vmatpush.msra.mxu3 %v5683_v29  ;;  %2853 = vmatpush.msrb.mxu2 %v6013_v24 }
 0x265   : > { %v5902_v54 = vpop.f32.mrf.mxu3 }
 0x269   : > { %v5908_v46 = vpop.f32.mrf.mxu2 }
 0x26b   : > { %v2289_v61 = vpop.f32.mrf.mxu1 }
 0x26d   : > { %v5918_v7 = vpop.f32.mrf.mxu3 }
 0x271   : > { %v5927_v44 = vpop.f32.mrf.mxu2 }
 0x272   : > { %6925 = vst [vmem:[#allocation20_spill] sm:$0xff] %v5927_v44  ;;  %v2304_v44 = vadd.f32 %v2286_v12, %v2252_v31 }
 0x273   : > { %v2292_v62 = vpop.f32.mrf.mxu1 }
 0x275   : > { %v5946_v48 = vpop.f32.mrf.mxu3 }
 0x276   : > { %6927 = vst [vmem:[#allocation15_spill] sm:$0xff] %v5946_v48  ;;  %v2254_v48 = vpop.f32.mrf.mxu0 }
 0x277   : > { %v2255_v40 = vadd.f32 %v2254_v48, %v5877_v51  ;;  %v6024_v48 = vld [vmem:[%s6783_s3 + $0x1c0] sm:$0xff] }
 0x278   : > { %2854 = vmatpush.msrb.mxu2 %v6024_v48 }
 0x279   : > { %v5954_v18 = vpop.f32.mrf.mxu2  ;;  %v2305_v63 = vadd.f32 %v2289_v61, %v2255_v40 }
 0x27a   : > { %6928 = vst [vmem:[#allocation21_spill] sm:$0xff] %v5954_v18  ;;  %v3894_v18 = vld [vmem:[%s6783_s3 + $0x120] sm:$0xff]  ;;  %2855 = vmatpush.msrb.mxu2 %v6032_v39 }
 0x27b   : > { %2799 = vmatpush.msra.mxu1 %v3894_v18  ;;  %2639 = vmatpush.msrb.mxu0 %v3894_v18 }
 0x27d   : > { %v2368_v59 = vpop.f32.mrf.mxu3  ;;  %2959 = vmatpush.msrb.mxu1 %v6046_v6 }
 0x27e   : > { %v2257_v15 = vpop.f32.mrf.mxu0 }
 0x281   : > { %v2327_v3 = vpop.f32.mrf.mxu2 }
 0x282   : > { %v2345_v4 = vadd.f32 %v2327_v3, %v2304_v44  ;;  %v2062_v44 = vadd.f32 %v5774_v23, %v5784_v17 }
 0x284   : > { %v2386_v18 = vadd.f32 %v2368_v59, %v2345_v4  ;;  %v2112_v59 = vadd.f32 %v5822_v45, %v2062_v44  ;;  %v2065_v4 = vadd.f32 %v5794_v0, %v5802_v50  ;;  %v6930_v50 = vmax.f32 %v5676_v9, %v5678_v57  ;;  %v2295_v44 = vpop.f32.mrf.mxu1  ;;  %v6080_v9 = vld [vmem:[%s6783_s3 + $0x268] sm:$0xff] }
 0x285   : > { %v2371_v12 = vpop.f32.mrf.mxu3 }
 0x286   : > { %v2392_v28 = vmax.f32 %v2193_v35, %v2386_v18  ;;  %v2153_v51 = vadd.f32 %v5826_v13, %v2112_v59  ;;  %v6041_v13 = vld [vmem:[%s6783_s3 + $0x1b0] sm:$0xff]  ;;  %v2260_v18 = vpop.f32.mrf.mxu0  ;;  %v2113_v0 = vadd.f32 %v5844_v47, %v2065_v4  ;;  %v6142_v4 = vld [vmem:[%s6783_s3 + $0x2c8] sm:$0xff] }
 0x287   : > { %2856 = vmatpush.msrb.mxu2 %v6041_v13 }
 0x288   : > { %v2398_v23 = vmax.f32 %v6929_v27, %v2392_v28  ;;  %v2194_v58 = vadd.f32 %v5880_v49, %v2153_v51  ;;  %v2258_v49 = vadd.f32 %v2257_v15, %v5889_v21  ;;  %v6071_v28 = vld [vmem:[%s6783_s3 + $0x270] sm:$0xff]  ;;  %v2154_v59 = vadd.f32 %v5848_v38, %v2113_v0  ;;  %v6088_v38 = vld [vmem:[%s6783_s3 + $0x260] sm:$0xff] }
 0x289   : > { %v2330_v17 = vpop.f32.mrf.mxu2  ;;  %v2068_v27 = vadd.f32 %v5806_v26, %v5814_v20 }
 0x28a   : > { %v2404_v31 = vadd.f32 %v5672_v34, %v2398_v23  ;;  %v2346_v29 = vadd.f32 %v2330_v17, %v2305_v63  ;;  %v2306_v21 = vadd.f32 %v2292_v62, %v2258_v49  ;;  %v2195_v57 = vadd.f32 %v5894_v36, %v2154_v59  ;;  %v6105_v36 = vld [vmem:[%s6783_s3 + $0x1a8] sm:$0xff] }
 0x28b   : > { %v2261_v23 = vadd.f32 %v2260_v18, %v5902_v54  ;;  %v6110_v54 = vld [vmem:[%s6783_s3 + $0x258] sm:$0xff]  ;;  %v2114_v26 = vadd.f32 %v5867_v16, %v2068_v27  ;;  %v6127_v16 = vld [vmem:[%s6783_s3 + $0x1a0] sm:$0xff]  ;;  %v2071_v18 = vadd.f32 %v5816_v19, %v5828_v1 }
 0x28c   : > { %v6035_v45 = vmax.f32 %v2404_v31, 0.0  ;;  %v2387_v61 = vadd.f32 %v2371_v12, %v2346_v29  ;;  %v6060_v12 = vld [vmem:[%s6783_s3 + $0x278] sm:$0xff] }
 0x28d   : > { %v2374_v3 = vpop.f32.mrf.mxu3  ;;  %2960 = vmatpush.msrb.mxu1 %v6060_v12  ;;  %v2307_v20 = vadd.f32 %v2295_v44, %v2261_v23  ;;  %v6169_v19 = vld [vmem:[%s6783_s3 + $0x198] sm:$0xff]  ;;  %v2115_v1 = vadd.f32 %v5887_v32, %v2071_v18  ;;  %v6217_v23 = vld [vmem:[%s6783_s3 + $0x2a8] sm:$0xff] }
 0x28e   : > { %v2393_v35 = vmax.f32 %v2194_v58, %v2387_v61  ;;  %3860 = vmatmul.msk.f32.vlgmr.msra.gmra.mxu0 %vm2436_vm2, %v6035_v45  ;;  %3911 = vmatmul.msk.f32.vlgmr.msra.gmra.mxu2 %vm2436_vm2, %v6035_v45  ;;  %v2263_v31 = vpop.f32.mrf.mxu0  ;;  %v6122_v58 = vld [vmem:[%s6783_s3 + $0x250] sm:$0xff]  ;;  %v6191_v32 = vld [vmem:[%s6783_s3 + $0x2b8] sm:$0xff] }
 0x28f   : > { %2755 = vmatpush.msra.mxu0 %v5835_v11  ;;  %2961 = vmatpush.msrb.mxu1 %v6071_v28  ;;  %v2264_v0 = vadd.f32 %v2263_v31, %v5918_v7  ;;  %v6174_v7 = vld [vmem:[%s6783_s3 + $0x2c0] sm:$0xff] }
 0x290   : > { %v2399_v15 = vmax.f32 %v6930_v50, %v2393_v35  ;;  %3002 = vmatpush.msra.mxu2 %v6142_v4  ;;  %v6932_v50 = vmax.f32 %v5743_v56, %v5746_v41  ;;  %v2156_v56 = vadd.f32 %v5892_v25, %v2115_v1  ;;  %v6250_v1 = vld [vmem:[%s6783_s3 + $0x298] sm:$0xff] }
 0x291   : > { %v2333_v40 = vpop.f32.mrf.mxu2  ;;  %2756 = vmatpush.msra.mxu0 %v5853_v2  ;;  %2962 = vmatpush.msrb.mxu1 %v6080_v9 }
 0x292   : > { %v2405_v47 = vadd.f32 %v5672_v34, %v2399_v15  ;;  %v2347_v62 = vadd.f32 %v2333_v40, %v2306_v21  ;;  %3003 = vmatpush.msra.mxu2 %v6174_v7  ;;  %v6186_v40 = vld [vmem:[%s6783_s3 + $0x190] sm:$0xff] }
 0x293   : > { %2757 = vmatpush.msra.mxu0 %v5865_v37  ;;  %2963 = vmatpush.msrb.mxu1 %v6088_v38  ;;  %v6931_v37 = vmax.f32 %v5716_v55, %v5718_v42  ;;  %v2155_v55 = vadd.f32 %v5875_v22, %v2114_v26  ;;  %v6935_v26 = vld [vmem:[#allocation17_spill] sm:$0xff] }
 0x294   : > { %v6083_v11 = vmax.f32 %v2405_v47, 0.0  ;;  %v2388_v63 = vadd.f32 %v2374_v3, %v2347_v62  ;;  %v6137_v3 = vld [vmem:[%s6783_s3 + $0x248] sm:$0xff]  ;;  %3004 = vmatpush.msra.mxu2 %v6191_v32  ;;  %v6201_v62 = vld [vmem:[%s6783_s3 + $0x2b0] sm:$0xff] }
 0x295   : > { %v2377_v2 = vpop.f32.mrf.mxu3  ;;  %2758 = vmatpush.msra.mxu0 %v5873_v30  ;;  %2964 = vmatpush.msrb.mxu1 %v6110_v54  ;;  %v2298_v30 = vpop.f32.mrf.mxu1  ;;  %v2196_v22 = vadd.f32 %v5908_v46, %v2155_v55  ;;  %v6239_v55 = vld [vmem:[%s6783_s3 + $0x180] sm:$0xff] }
 0x296   : > { %v2394_v17 = vmax.f32 %v2195_v57, %v2388_v63  ;;  %3861 = vmatmul.msk.f32.gmra.mxu0 %vm2436_vm2, %v6083_v11  ;;  %3890 = vmatmul.msk.f32.vlgmr.msrb.gmra.mxu3 %vm2436_vm2, %v6083_v11  ;;  %v2308_v21 = vadd.f32 %v2298_v30, %v2264_v0  ;;  %v2266_v47 = vpop.f32.mrf.mxu0  ;;  %v6206_v57 = vld [vmem:[%s6783_s3 + $0x188] sm:$0xff] }
 0x297   : > { %3912 = vmatmul.msk.f32.gmra.mxu2 %vm2436_vm2, %v6083_v11  ;;  %2877 = vmatpush.msrb.mxu3 %v6105_v36 }
 0x298   : > { %v2400_v51 = vmax.f32 %v6931_v37, %v2394_v17  ;;  %2759 = vmatpush.msra.mxu0 %v5885_v10  ;;  %2965 = vmatpush.msrb.mxu1 %v6122_v58  ;;  %v6153_v10 = vld [vmem:[%s6783_s3 + $0x240] sm:$0xff] }
 0x299   : > { %v2336_v29 = vpop.f32.mrf.mxu2  ;;  %2878 = vmatpush.msrb.mxu3 %v6127_v16  ;;  %3005 = vmatpush.msra.mxu2 %v6201_v62  ;;  %v6934_v17 = vld [vmem:[#allocation11_spill] sm:$0xff] }
 0x29a   : > { %v2406_v42 = vadd.f32 %v5672_v34, %v2400_v51  ;;  %v2348_v61 = vadd.f32 %v2336_v29, %v2307_v20  ;;  %2760 = vmatpush.msra.mxu0 %v5899_v60  ;;  %2966 = vmatpush.msrb.mxu1 %v6137_v3  ;;  %v6936_v20 = vld [vmem:[#allocation13_spill] sm:$0xff]  ;;  %v6937_v37 = vld [vmem:[#allocation15_spill] sm:$0xff] }
 0x29b   : > { %2879 = vmatpush.msrb.mxu3 %v6169_v19  ;;  %v2267_v51 = vadd.f32 %v2266_v47, %v6937_v37  ;;  %v6234_v29 = vld [vmem:[%s6783_s3 + $0x2a0] sm:$0xff]  ;;  %3006 = vmatpush.msra.mxu2 %v6217_v23  ;;  %v6945_v37 = vld [vmem:[#allocation12_spill] sm:$0xff] }
 0x29c   : > { %v6145_v49 = vmax.f32 %v2406_v42, 0.0  ;;  %v2389_v35 = vadd.f32 %v2377_v2, %v2348_v61  ;;  %2967 = vmatpush.msrb.mxu1 %v6153_v10  ;;  %2761 = vmatpush.msra.mxu0 %v5913_v52  ;;  %v6933_v52 = vld [vmem:[#allocation20_spill] sm:$0xff]  ;;  %v6938_v42 = vld [vmem:[#allocation18_spill] sm:$0xff] }
 0x29d   : > { %v2380_v60 = vpop.f32.mrf.mxu3  ;;  %2880 = vmatpush.msrb.mxu3 %v6186_v40  ;;  %v2197_v25 = vadd.f32 %v6933_v52, %v2156_v56  ;;  %v2301_v27 = vpop.f32.mrf.mxu1  ;;  %3007 = vmatpush.msra.mxu2 %v6234_v29  ;;  %v6258_v56 = vld [vmem:[%s6783_s3 + $0x178] sm:$0xff] }
 0x29e   : > { %v2395_v46 = vmax.f32 %v2196_v22, %v2389_v35  ;;  %3862 = vmatmul.msk.f32.gmra.mxu0 %vm2436_vm2, %v6145_v49  ;;  %3891 = vmatmul.msk.f32.gmra.mxu3 %vm2436_vm2, %v6145_v49  ;;  %v2309_v30 = vadd.f32 %v2301_v27, %v2267_v51  ;;  %v6939_v22 = vld [vmem:[#allocation10_spill] sm:$0xff]  ;;  %v6940_v35 = vld [vmem:[#allocation7_spill] sm:$0xff] }
 0x29f   : > { %3913 = vmatmul.msk.f32.gmra.mxu2 %vm2436_vm2, %v6145_v49  ;;  %3923 = vmatmul.msk.f32.vlgmr.msra.gmra.mxu1 %vm2436_vm2, %v6145_v49  ;;  %v6941_v18 = vmax.f32 %v6939_v22, %v6940_v35  ;;  %v6946_v51 = vld [vmem:[#allocation14_spill] sm:$0xff]  ;;  %v3958_v35 = vld [vmem:[%s6783_s3 + $0x220] sm:$0xff] }
 0x2a0   : > { %v2401_v15 = vmax.f32 %v6932_v50, %v2395_v46  ;;  %2762 = vmatpush.msra.mxu0 %v5932_v33  ;;  %2881 = vmatpush.msrb.mxu3 %v6206_v57  ;;  %v2074_v33 = vadd.f32 %v6936_v20, %v6935_v26  ;;  %v6284_v26 = vld [vmem:[%s6783_s3 + $0x288] sm:$0xff]  ;;  %v6289_v20 = vld [vmem:[%s6783_s3 + $0x170] sm:$0xff] }
 0x2a1   : > { %v2339_v44 = vpop.f32.mrf.mxu2  ;;  %3008 = vmatpush.msra.mxu2 %v6250_v1 }
 0x2a2   : > { %v2407_v41 = vadd.f32 %v5672_v34, %v2401_v15  ;;  %v2349_v59 = vadd.f32 %v2339_v44, %v2308_v21  ;;  %2763 = vmatpush.msra.mxu0 %v6934_v17  ;;  %v2116_v61 = vadd.f32 %v6938_v42, %v2074_v33  ;;  %2882 = vmatpush.msrb.mxu3 %v6239_v55  ;;  %v6942_v21 = vld [vmem:[#allocation19_spill] sm:$0xff]  ;;  %v6944_v17 = vld [vmem:[#allocation5_spill] sm:$0xff] }
 0x2a3   : > { %v3960_v33 = vld [vmem:[%s6783_s3 + $0x230] sm:$0xff] }
 0x2a4   : > { %v6210_v63 = vmax.f32 %v2407_v41, 0.0  ;;  %v2390_v2 = vadd.f32 %v2380_v60, %v2349_v59  ;;  %v2157_v50 = vadd.f32 %v6942_v21, %v2116_v61  ;;  %v6943_v41 = vld [vmem:[#allocation21_spill] sm:$0xff]  ;;  %2883 = vmatpush.msrb.mxu3 %v6258_v56  ;;  %v3959_v61 = vld [vmem:[%s6783_s3 + $0x228] sm:$0xff] }
 0x2a5   : > { %v2383_v60 = vpop.f32.mrf.mxu3  ;;  %v6949_v21 = vld [vmem:[#allocation16_spill] sm:$0xff] }
 0x2a6   : > { %v2396_v31 = vmax.f32 %v2197_v25, %v2390_v2  ;;  %3863 = vmatmul.msk.f32.gmra.mxu0 %vm2436_vm2, %v6210_v63  ;;  %3892 = vmatmul.msk.f32.gmra.mxu3 %vm2436_vm2, %v6210_v63  ;;  %v2198_v59 = vadd.f32 %v6943_v41, %v2157_v50  ;;  %v3961_v25 = vld [vmem:[%s6783_s3 + $0x238] sm:$0xff]  ;;  %v6271_v2 = vld [vmem:[%s6783_s3 + $0x290] sm:$0xff] }
 0x2a7   : > { %3914 = vmatmul.msk.f32.gmra.mxu2 %vm2436_vm2, %v6210_v63  ;;  %3924 = vmatmul.msk.f32.gmra.mxu1 %vm2436_vm2, %v6210_v63 }
 0x2a8   : > { %v2402_v0 = vmax.f32 %v6941_v18, %v2396_v31  ;;  %3093 = vmatpush.msra.mxu1 %v3961_v25  ;;  %v6947_v31 = vmax.f32 %v6945_v37, %v6946_v51  ;;  %3009 = vmatpush.msra.mxu2 %v6271_v2 }
 0x2a9   : > { %v2342_v46 = vpop.f32.mrf.mxu2  ;;  %2884 = vmatpush.msrb.mxu3 %v6289_v20 }
 0x2aa   : > { %v2408_v15 = vadd.f32 %v5672_v34, %v2402_v0  ;;  %v2350_v44 = vadd.f32 %v2342_v46, %v2309_v30  ;;  %v6305_v30 = vld [vmem:[%s6783_s3 + $0x168] sm:$0xff]  ;;  %3094 = vmatpush.msra.mxu1 %v3960_v33  ;;  %3010 = vmatpush.msra.mxu2 %v6284_v26  ;;  %v3957_v0 = vld [vmem:[%s6783_s3 + $0x218] sm:$0xff]  ;;  %v6948_v46 = vld [vmem:[#allocation9_spill] sm:$0xff] }
 0x2ab   : > { %2885 = vmatpush.msrb.mxu3 %v6305_v30 }
 0x2ac   : > { %v6261_v47 = vmax.f32 %v2408_v15, 0.0  ;;  %v2391_v52 = vadd.f32 %v2383_v60, %v2350_v44  ;;  %3095 = vmatpush.msra.mxu1 %v3959_v61  ;;  %v3955_v60 = vld [vmem:[%s6783_s3 + $0x208] sm:$0xff] }
 0x2ae   : > { %v2397_v27 = vmax.f32 %v2198_v59, %v2391_v52  ;;  %3893 = vmatmul.msk.f32.gmra.mxu3 %vm2436_vm2, %v6261_v47  ;;  %3903 = vmatmul.msk.f32.vlgmr.msrb.gmra.mxu0 %vm2436_vm2, %v6944_v17 }
 0x2af   : > { %3925 = vmatmul.msk.f32.gmra.mxu1 %vm2436_vm2, %v6261_v47  ;;  %3945 = vmatmul.msk.f32.vlgmr.msrb.gmra.mxu2 %vm2436_vm2, %v6035_v45 }
 0x2b0   : > { %v2403_v42 = vmax.f32 %v6947_v31, %v2397_v27  ;;  %2916 = vmatpush.msrb.mxu0 %v3961_v25  ;;  %3126 = vmatpush.msrb.mxu2 %v6046_v6  ;;  %v3956_v6 = vld [vmem:[%s6783_s3 + $0x210] sm:$0xff] }
 0x2b1   : > { %3096 = vmatpush.msra.mxu1 %v3958_v35 }
 0x2b2   : > { %v6308_v22 = vadd.f32 %v5672_v34, %v2403_v42  ;;  %2917 = vmatpush.msrb.mxu0 %v3960_v33  ;;  %3127 = vmatpush.msrb.mxu2 %v6060_v12 }
 0x2b3   : > { %3097 = vmatpush.msra.mxu1 %v3957_v0 }
 0x2b4   : > { %v2415_v18 = vmax.f32 %v6308_v22, 0.0  ;;  %2918 = vmatpush.msrb.mxu0 %v3959_v61  ;;  %3128 = vmatpush.msrb.mxu2 %v6071_v28 }
 0x2b5   : > { %3098 = vmatpush.msra.mxu1 %v3956_v6 }
 0x2b6   : > { %3904 = vmatmul.msk.f32.gmra.mxu0 %vm2436_vm2, %v6948_v46  ;;  %3915 = vmatmul.msk.f32.vlgmr.msra.gmra.mxu3 %vm2436_vm2, %v6083_v11 }
 0x2b7   : > { %3926 = vmatmul.msk.f32.gmra.mxu1 %vm2436_vm2, %v2415_v18  ;;  %3946 = vmatmul.msk.f32.gmra.mxu2 %vm2436_vm2, %v6083_v11 }
 0x2b8   : > { %3035 = vmatpush.msra.mxu3 %v5970_v5  ;;  %2919 = vmatpush.msrb.mxu0 %v3958_v35  ;;  %v3954_v5 = vld [vmem:[%s6783_s3 + $0x200] sm:$0xff] }
 0x2b9   : > { %3099 = vmatpush.msra.mxu1 %v3955_v60  ;;  %3129 = vmatpush.msrb.mxu2 %v6080_v9 }
 0x2ba   : > { %3036 = vmatpush.msra.mxu3 %v5979_v53  ;;  %2920 = vmatpush.msrb.mxu0 %v3957_v0  ;;  %v3953_v53 = vld [vmem:[%s6783_s3 + $0x1f8] sm:$0xff] }
 0x2bb   : > { %3100 = vmatpush.msra.mxu1 %v3954_v5  ;;  %3130 = vmatpush.msrb.mxu2 %v6088_v38 }
 0x2bc   : > { %3037 = vmatpush.msra.mxu3 %v5987_v14  ;;  %2921 = vmatpush.msrb.mxu0 %v3956_v6  ;;  %v6950_v14 = vld [vmem:[#allocation6_spill] sm:$0xff] }
 0x2bd   : > { %v1571_v12 = vadd.f32 %v5672_v34, %v6950_v14  ;;  %3101 = vmatpush.msra.mxu1 %v3953_v53  ;;  %3131 = vmatpush.msrb.mxu2 %v6110_v54  ;;  %v6951_v34 = vld [vmem:[#allocation3_spill] sm:$0xff] }
 0x2be   : > { %3905 = vmatmul.msk.f32.gmra.mxu0 %vm2436_vm2, %v6949_v21  ;;  %3916 = vmatmul.msk.f32.gmra.mxu3 %vm2436_vm2, %v6145_v49 }
 0x2bf   : > { %3947 = vmatmul.msk.f32.gmra.mxu2 %vm2436_vm2, %v6145_v49  ;;  %3975 = vmatmul.msk.f32.vlgmr.msrb.gmra.mxu1 %vm2436_vm2, %v6083_v11  ;;  %v6361_v28 = vmax.f32 %v1571_v12, 0.0 }
 0x2c0   : > { %3038 = vmatpush.msra.mxu3 %v5995_v8  ;;  %2922 = vmatpush.msrb.mxu0 %v3955_v60  ;;  %v6952_v8 = vmax.f32 %v6951_v34, 0.0 }
 0x2c1   : > { %3132 = vmatpush.msrb.mxu2 %v6122_v58 }
 0x2c2   : > { %3039 = vmatpush.msra.mxu3 %v6003_v43  ;;  %2923 = vmatpush.msrb.mxu0 %v3954_v5  ;;  %v6953_v43 = vld [vmem:[#allocation8_spill] sm:$0xff] }
 0x2c3   : > { %3133 = vmatpush.msrb.mxu2 %v6137_v3 }
 0x2c4   : > { %3040 = vmatpush.msra.mxu3 %v6013_v24  ;;  %2924 = vmatpush.msrb.mxu0 %v3953_v53  ;;  %v2507_v24 = vpop.f32.mrf.mxu1 }
 0x2c5   : > { %3134 = vmatpush.msrb.mxu2 %v6153_v10 }
 0x2c6   : > { %3906 = vmatmul.msk.f32.gmra.mxu0 %vm2436_vm2, %v6361_v28  ;;  %3917 = vmatmul.msk.f32.gmra.mxu3 %vm2436_vm2, %v6210_v63 }
 0x2c7   : > { %3948 = vmatmul.msk.f32.gmra.mxu2 %vm2436_vm2, %v6210_v63  ;;  %3976 = vmatmul.msk.f32.gmra.mxu1 %vm2436_vm2, %v6145_v49 }
 0x2c8   : > { %3041 = vmatpush.msra.mxu3 %v6024_v48  ;;  %v2549_v48 = vpop.f32.mrf.mxu2 }
 0x2ca   : > { %3042 = vmatpush.msra.mxu3 %v6032_v39 }
 0x2cc   : > { %3043 = vmatpush.msra.mxu3 %v6041_v13  ;;  %v2510_v39 = vpop.f32.mrf.mxu1 }
 0x2ce   : > { %3918 = vmatmul.msk.f32.gmra.mxu3 %vm2436_vm2, %v6261_v47  ;;  %3919 = vmatmul.msk.f32.vlgmr.msra.gmra.mxu0 %vm2436_vm2, %v6944_v17 }
 0x2cf   : > { %3977 = vmatmul.msk.f32.gmra.mxu1 %vm2436_vm2, %v6210_v63  ;;  %3988 = vmatmul.msk.f32.vlgmr.msra.gmra.mxu2 %vm2436_vm2, %v6944_v17 }
 0x2d0   : > { %3064 = vmatpush.msra.mxu0 %v6105_v36  ;;  %v2552_v13 = vpop.f32.mrf.mxu2 }
 0x2d2   : > { %3065 = vmatpush.msra.mxu0 %v6127_v16 }
 0x2d4   : > { %3066 = vmatpush.msra.mxu0 %v6169_v19  ;;  %v2513_v9 = vpop.f32.mrf.mxu1 }
 0x2d6   : > { %3920 = vmatmul.msk.f32.gmra.mxu0 %vm2436_vm2, %v6948_v46  ;;  %3949 = vmatmul.msk.f32.vlgmr.msrb.gmra.mxu3 %vm2436_vm2, %v6952_v8 }
 0x2d7   : > { %3978 = vmatmul.msk.f32.gmra.mxu1 %vm2436_vm2, %v6261_v47  ;;  %3989 = vmatmul.msk.f32.gmra.mxu2 %vm2436_vm2, %v6948_v46 }
 0x2d8   : > { %3159 = vmatpush.msrb.mxu3 %v6142_v4  ;;  %3067 = vmatpush.msra.mxu0 %v6186_v40  ;;  %v2555_v38 = vpop.f32.mrf.mxu2 }
 0x2da   : > { %3160 = vmatpush.msrb.mxu3 %v6174_v7  ;;  %3068 = vmatpush.msra.mxu0 %v6206_v57 }
 0x2dc   : > { %3161 = vmatpush.msrb.mxu3 %v6191_v32  ;;  %3069 = vmatpush.msra.mxu0 %v6239_v55  ;;  %v2516_v36 = vpop.f32.mrf.mxu1 }
 0x2de   : > { %3921 = vmatmul.msk.f32.gmra.mxu0 %vm2436_vm2, %v6949_v21  ;;  %3950 = vmatmul.msk.f32.gmra.mxu3 %vm2436_vm2, %v6953_v43 }
 0x2df   : > { %3990 = vmatmul.msk.f32.gmra.mxu2 %vm2436_vm2, %v6949_v21  ;;  %4000 = vmatmul.msk.f32.vlgmr.msra.gmra.mxu1 %vm2436_vm2, %v6083_v11 }
 0x2e0   : > { %3162 = vmatpush.msrb.mxu3 %v6201_v62  ;;  %3070 = vmatpush.msra.mxu0 %v6258_v56  ;;  %v2558_v54 = vpop.f32.mrf.mxu2 }
 0x2e2   : > { %3163 = vmatpush.msrb.mxu3 %v6217_v23  ;;  %3071 = vmatpush.msra.mxu0 %v6289_v20 }
 0x2e4   : > { %3164 = vmatpush.msrb.mxu3 %v6234_v29  ;;  %3072 = vmatpush.msra.mxu0 %v6305_v30  ;;  %v2674_v16 = vpop.f32.mrf.mxu1 }
 0x2e6   : > { %3922 = vmatmul.msk.f32.gmra.mxu0 %vm2436_vm2, %v6361_v28  ;;  %3951 = vmatmul.msk.f32.gmra.mxu3 %vm2436_vm2, %v6944_v17 }
 0x2e7   : > { %3991 = vmatmul.msk.f32.gmra.mxu2 %vm2436_vm2, %v6361_v28  ;;  %4001 = vmatmul.msk.f32.gmra.mxu1 %vm2436_vm2, %v6145_v49 }
 0x2e8   : > { %3165 = vmatpush.msrb.mxu3 %v6250_v1 }
 0x2ea   : > { %3166 = vmatpush.msrb.mxu3 %v6271_v2 }
 0x2ec   : > { %3167 = vmatpush.msrb.mxu3 %v6284_v26  ;;  %v2677_v19 = vpop.f32.mrf.mxu1 }
 0x2ee   : > { %3952 = vmatmul.msk.f32.gmra.mxu3 %vm2436_vm2, %v6948_v46  ;;  %3962 = vmatmul.msk.f32.vlgmr.msrb.gmra.mxu0 %vm2436_vm2, %v6953_v43 }
 0x2ef   : > { %4002 = vmatmul.msk.f32.gmra.mxu1 %vm2436_vm2, %v6210_v63  ;;  %4004 = vmatmul.msk.f32.vlgmr.msrb.gmra.mxu2 %vm2436_vm2, %v6944_v17 }
 0x2f6   : > { %3963 = vmatmul.msk.f32.gmra.mxu0 %vm2436_vm2, %v6944_v17  ;;  %3992 = vmatmul.msk.f32.vlgmr.msra.gmra.mxu3 %vm2436_vm2, %v6953_v43 }
 0x2f7   : > { %4003 = vmatmul.msk.f32.gmra.mxu1 %vm2436_vm2, %v6261_v47  ;;  %4005 = vmatmul.msk.f32.gmra.mxu2 %vm2436_vm2, %v6948_v46 }
 0x2fe   : > { %3964 = vmatmul.msk.f32.gmra.mxu0 %vm2436_vm2, %v6948_v46  ;;  %3993 = vmatmul.msk.f32.gmra.mxu3 %vm2436_vm2, %v6944_v17 }
 0x2ff   : > { %4006 = vmatmul.msk.f32.gmra.mxu2 %vm2436_vm2, %v6949_v21 }
 0x306   : > { %3965 = vmatmul.msk.f32.gmra.mxu0 %vm2436_vm2, %v6949_v21  ;;  %3994 = vmatmul.msk.f32.gmra.mxu3 %vm2436_vm2, %v6948_v46 }
 0x307   : > { %4007 = vmatmul.msk.f32.gmra.mxu2 %vm2436_vm2, %v6361_v28 }
 0x30b   : > { %v2466_v58 = vpop.f32.mrf.mxu0 }
 0x30c   : > { %v2508_v10 = vadd.f32 %v2507_v24, %v2466_v58 }
 0x30e   : > { %3995 = vmatmul.msk.f32.gmra.mxu3 %vm2436_vm2, %v6949_v21  ;;  %3996 = vmatmul.msk.f32.vlgmr.msra.gmra.mxu0 %vm2436_vm2, %v6035_v45  ;;  %v2561_v7 = vadd.f32 %v2549_v48, %v2508_v10  ;;  %v2680_v45 = vpop.f32.mrf.mxu1 }
 0x311   : > { %v2703_v3 = vpop.f32.mrf.mxu2 }
 0x313   : > { %v2469_v4 = vpop.f32.mrf.mxu0 }
 0x314   : > { %v2511_v23 = vadd.f32 %v2510_v39, %v2469_v4 }
 0x316   : > { %3997 = vmatmul.msk.f32.gmra.mxu0 %vm2436_vm2, %v6083_v11  ;;  %4008 = vmatmul.msk.f32.vlgmr.msrb.gmra.mxu3 %vm2436_vm2, %v6145_v49  ;;  %v2562_v29 = vadd.f32 %v2552_v13, %v2511_v23  ;;  %v2683_v59 = vpop.f32.mrf.mxu1 }
 0x319   : > { %v2595_v40 = vpop.f32.mrf.mxu3 }
 0x31a   : > { %v2607_v32 = vadd.f32 %v2595_v40, %v2561_v7  ;;  %v2706_v62 = vpop.f32.mrf.mxu2 }
 0x31b   : > { %v2472_v57 = vpop.f32.mrf.mxu0  ;;  %v2707_v30 = vadd.f32 %v2706_v62, %v2677_v19 }
 0x31c   : > { %v2514_v15 = vadd.f32 %v2513_v9, %v2472_v57 }
 0x31e   : > { %3998 = vmatmul.msk.f32.gmra.mxu0 %vm2436_vm2, %v6145_v49  ;;  %4009 = vmatmul.msk.f32.gmra.mxu3 %vm2436_vm2, %v6210_v63  ;;  %v2563_v41 = vadd.f32 %v2555_v38, %v2514_v15  ;;  %v2801_v61 = vpop.f32.mrf.mxu1  ;;  %v3211_v15 = vld [vmem:[%s6785_s5 + $0x38] sm:$0xff] }
 0x31f   : > { %3256 = vmatpush.msrb.mxu1 %v3211_v15 }
 0x321   : > { %v2598_v55 = vpop.f32.mrf.mxu3 }
 0x322   : > { %v2608_v1 = vadd.f32 %v2598_v55, %v2562_v29  ;;  %v2709_v11 = vpop.f32.mrf.mxu2 }
 0x323   : > { %v2475_v50 = vpop.f32.mrf.mxu0  ;;  %v2710_v60 = vadd.f32 %v2709_v11, %v2680_v45 }
 0x324   : > { %v2517_v44 = vadd.f32 %v2516_v36, %v2475_v50 }
 0x326   : > { %3999 = vmatmul.msk.f32.gmra.mxu0 %vm2436_vm2, %v6210_v63  ;;  %4010 = vmatmul.msk.f32.gmra.mxu3 %vm2436_vm2, %v6261_v47  ;;  %v2564_v56 = vadd.f32 %v2558_v54, %v2517_v44  ;;  %v2704_v47 = vadd.f32 %v2703_v3, %v2674_v16  ;;  %v3210_v44 = vld [vmem:[%s6785_s5 + $0x30] sm:$0xff] }
 0x327   : > { %3257 = vmatpush.msrb.mxu1 %v3210_v44 }
 0x329   : > { %v2601_v49 = vpop.f32.mrf.mxu3 }
 0x32a   : > { %v2609_v52 = vadd.f32 %v2601_v49, %v2563_v41  ;;  %v2712_v25 = vpop.f32.mrf.mxu2  ;;  %v3209_v49 = vld [vmem:[%s6785_s5 + $0x28] sm:$0xff] }
 0x32b   : > { %v2713_v2 = vadd.f32 %v2712_v25, %v2683_v59  ;;  %v2641_v27 = vpop.f32.mrf.mxu0  ;;  %3258 = vmatpush.msrb.mxu1 %v3209_v49 }
 0x32c   : > { %v6473_v17 = vadd.f32 %v2641_v27, %v2607_v32  ;;  %v3207_v27 = vld [vmem:[%s6785_s5 + $0x18] sm:$0xff] }
 0x32e   : > { %4011 = vmatmul.msk.f32.gmra.mxu3 %vm2436_vm2, %v2415_v18  ;;  %v2804_v18 = vpop.f32.mrf.mxu1 }
 0x331   : > { %v2604_v26 = vpop.f32.mrf.mxu3 }
 0x332   : > { %v2610_v20 = vadd.f32 %v2604_v26, %v2564_v56  ;;  %v6482_v35 = vpop.f32.mrf.mxu2  ;;  %v4018_v26 = vld [vmem:[%s6785_s5 + $0x70] sm:$0xff] }
 0x333   : > { %v2644_v63 = vpop.f32.mrf.mxu0 }
 0x334   : > { %v6478_v33 = vadd.f32 %v2644_v63, %v2608_v1 }
 0x336   : > { %v2807_v8 = vpop.f32.mrf.mxu1 }
 0x339   : > { %v2732_v37 = vpop.f32.mrf.mxu3 }
 0x33a   : > { %v2744_v51 = vadd.f32 %v2732_v37, %v2704_v47  ;;  %v6486_v53 = vpop.f32.mrf.mxu2  ;;  %v4017_v47 = vld [vmem:[%s6785_s5 + $0x68] sm:$0xff] }
 0x33b   : > { %v2647_v31 = vpop.f32.mrf.mxu0  ;;  %v3205_v37 = vld [vmem:[%s6785_s5 + $0x8] sm:$0xff] }
 0x33c   : > { %v6480_v42 = vadd.f32 %v2647_v31, %v2609_v52  ;;  %v3208_v52 = vld [vmem:[%s6785_s5 + $0x20] sm:$0xff]  ;;  %v4038_v31 = vld [vmem:[%s6785_s5 + $0xf8] sm:$0xff] }
 0x33d   : > { %3259 = vmatpush.msrb.mxu1 %v3208_v52  ;;  %3321 = vmatpush.msra.mxu3 %v4038_v31  ;;  %v4023_v52 = vld [vmem:[%s6785_s5 + $0x88] sm:$0xff] }
 0x33e   : > { %v2810_v54 = vpop.f32.mrf.mxu1 }
 0x33f   : > { %3260 = vmatpush.msrb.mxu1 %v3207_v27  ;;  %v4034_v27 = vld [vmem:[%s6785_s5 + $0xd8] sm:$0xff] }
 0x341   : > { %v2735_v0 = vpop.f32.mrf.mxu3 }
 0x342   : > { %v2745_v46 = vadd.f32 %v2735_v0, %v2707_v30  ;;  %v6492_v13 = vpop.f32.mrf.mxu2 }
 0x343   : > { %v2650_v22 = vpop.f32.mrf.mxu0 }
 0x344   : > { %v6484_v6 = vadd.f32 %v2650_v22, %v2610_v20  ;;  %v3206_v20 = vld [vmem:[%s6785_s5 + $0x10] sm:$0xff]  ;;  %v4016_v22 = vld [vmem:[%s6785_s5 + $0x60] sm:$0xff] }
 0x345   : > { %3261 = vmatpush.msrb.mxu1 %v3206_v20 }
 0x346   : > { %v6508_v32 = vpop.f32.mrf.mxu1 }
 0x347   : > { %3262 = vmatpush.msrb.mxu1 %v3205_v37 }
 0x349   : > { %v2738_v5 = vpop.f32.mrf.mxu3 }
 0x34a   : > { %v2746_v21 = vadd.f32 %v2738_v5, %v2710_v60  ;;  %v6502_v4 = vpop.f32.mrf.mxu2  ;;  %v4015_v60 = vld [vmem:[%s6785_s5 + $0x58] sm:$0xff] }
 0x34b   : > { %v2765_v14 = vpop.f32.mrf.mxu0 }
 0x34c   : > { %v2777_v12 = vadd.f32 %v2765_v14, %v2744_v51  ;;  %v4029_v51 = vld [vmem:[%s6785_s5 + $0xb8] sm:$0xff] }
 0x34d   : > { %3288 = vmatpush.msra.mxu2 %v4029_v51 }
 0x34e   : > { %v6488_v28 = vadd.f32 %v2801_v61, %v2777_v12  ;;  %v6520_v55 = vpop.f32.mrf.mxu1  ;;  %v4028_v61 = vld [vmem:[%s6785_s5 + $0xb0] sm:$0xff]  ;;  %v4027_v12 = vld [vmem:[%s6785_s5 + $0xa8] sm:$0xff] }
 0x34f   : > { %3289 = vmatpush.msra.mxu2 %v4028_v61  ;;  %v4032_v61 = vld [vmem:[%s6785_s5 + $0xc8] sm:$0xff] }
 0x350   : > { %v2817_v34 = vmax.f32 %v6473_v17, %v6488_v28 }
 0x351   : > { %v2741_v43 = vpop.f32.mrf.mxu3  ;;  %3290 = vmatpush.msra.mxu2 %v4027_v12 }
 0x352   : > { %v2747_v24 = vadd.f32 %v2741_v43, %v2713_v2  ;;  %v6514_v23 = vpop.f32.mrf.mxu2  ;;  %v4019_v2 = vld [vmem:[%s6785_s5 + $0x78] sm:$0xff]  ;;  %v4036_v43 = vld [vmem:[%s6785_s5 + $0xe8] sm:$0xff] }
 0x353   : > { %v2768_v48 = vpop.f32.mrf.mxu0  ;;  %3233 = vmatpush.msrb.mxu0 %v4019_v2 }
 0x354   : > { %v2778_v39 = vadd.f32 %v2768_v48, %v2745_v46  ;;  %v4037_v46 = vld [vmem:[%s6785_s5 + $0xf0] sm:$0xff]  ;;  %v4035_v48 = vld [vmem:[%s6785_s5 + $0xe0] sm:$0xff] }
 0x355   : > { %3234 = vmatpush.msrb.mxu0 %v4018_v26  ;;  %3322 = vmatpush.msra.mxu3 %v4037_v46  ;;  %v4033_v26 = vld [vmem:[%s6785_s5 + $0xd0] sm:$0xff] }
 0x356   : > { %v6494_v9 = vadd.f32 %v2804_v18, %v2778_v39  ;;  %v6534_v56 = vpop.f32.mrf.mxu1  ;;  %v3204_v18 = vld [vmem:[%s6785_s5] sm:$0xff] }
 0x357   : > { %3235 = vmatpush.msrb.mxu0 %v4017_v47  ;;  %3263 = vmatpush.msrb.mxu1 %v3204_v18 }
 0x358   : > { %v2818_v38 = vmax.f32 %v6478_v33, %v6494_v9  ;;  %3323 = vmatpush.msra.mxu3 %v4036_v43 }
 0x359   : > { %v6498_v36 = vpop.f32.mrf.mxu3  ;;  %3236 = vmatpush.msrb.mxu0 %v4016_v22 }
 0x35a   : > { %v6524_v11 = vpop.f32.mrf.mxu2  ;;  %3324 = vmatpush.msra.mxu3 %v4035_v48 }
 0x35b   : > { %v2771_v58 = vpop.f32.mrf.mxu0  ;;  %3237 = vmatpush.msrb.mxu0 %v4015_v60 }
 0x35c   : > { %v2779_v16 = vadd.f32 %v2771_v58, %v2746_v21  ;;  %v4014_v21 = vld [vmem:[%s6785_s5 + $0x50] sm:$0xff]  ;;  %3325 = vmatpush.msra.mxu3 %v4034_v27 }
 0x35d   : > { %3238 = vmatpush.msrb.mxu0 %v4014_v21 }
 0x35e   : > { %v6500_v3 = vadd.f32 %v2807_v8, %v2779_v16  ;;  %v6573_v30 = vpop.f32.mrf.mxu1  ;;  %v4013_v8 = vld [vmem:[%s6785_s5 + $0x48] sm:$0xff]  ;;  %v4025_v16 = vld [vmem:[%s6785_s5 + $0x98] sm:$0xff]  ;;  %3326 = vmatpush.msra.mxu3 %v4033_v26 }
 0x35f   : > { %3239 = vmatpush.msrb.mxu0 %v4013_v8 }
 0x360   : > { %v2819_v10 = vmax.f32 %v6480_v42, %v6500_v3  ;;  %3327 = vmatpush.msra.mxu3 %v4032_v61  ;;  %v3354_v42 = vld [vmem:[%s6787_s7 + $0x70] sm:$0xff]  ;;  %v3353_v3 = vld [vmem:[%s6787_s7 + $0x68] sm:$0xff]  ;;  %v3343_v61 = vld [vmem:[%s6787_s7 + $0x18] sm:$0xff] }
 0x361   : > { %v6506_v19 = vpop.f32.mrf.mxu3 }
 0x362   : > { %v6544_v25 = vpop.f32.mrf.mxu2  ;;  %v2891_v47 = vadd.f32 %v6506_v19, %v6486_v53 }
 0x363   : > { %v2774_v7 = vpop.f32.mrf.mxu0 }
 0x364   : > { %v2780_v40 = vadd.f32 %v2774_v7, %v2747_v24  ;;  %v4026_v24 = vld [vmem:[%s6785_s5 + $0xa0] sm:$0xff]  ;;  %v4024_v7 = vld [vmem:[%s6785_s5 + $0x90] sm:$0xff] }
 0x365   : > { %3291 = vmatpush.msra.mxu2 %v4026_v24 }
 0x366   : > { %v6510_v62 = vadd.f32 %v2810_v54, %v2780_v40  ;;  %v4012_v54 = vld [vmem:[%s6785_s5 + $0x40] sm:$0xff]  ;;  %v3103_v58 = vpop.f32.mrf.mxu1  ;;  %v2888_v40 = vadd.f32 %v6498_v36, %v6482_v35 }
 0x367   : > { %3240 = vmatpush.msrb.mxu0 %v4012_v54  ;;  %3292 = vmatpush.msra.mxu2 %v4025_v16  ;;  %v4022_v36 = vld [vmem:[%s6785_s5 + $0x80] sm:$0xff] }
 0x368   : > { %v2820_v57 = vmax.f32 %v6484_v6, %v6510_v62  ;;  %v3351_v6 = vld [vmem:[%s6787_s7 + $0x58] sm:$0xff]  ;;  %v3350_v62 = vld [vmem:[%s6787_s7 + $0x50] sm:$0xff] }
 0x369   : > { %v6516_v45 = vpop.f32.mrf.mxu3  ;;  %3293 = vmatpush.msra.mxu2 %v4024_v7  ;;  %3364 = vmatpush.msra.mxu0 %v3354_v42 }
 0x36a   : > { %v6589_v5 = vpop.f32.mrf.mxu2 }
 0x36b   : > { %v6518_v29 = vpop.f32.mrf.mxu0  ;;  %3294 = vmatpush.msra.mxu2 %v4023_v52  ;;  %3365 = vmatpush.msra.mxu0 %v3353_v3 }
 0x36c   : > { %v2938_v2 = vadd.f32 %v6518_v29, %v2888_v40 }
 0x36d   : > { %3295 = vmatpush.msra.mxu2 %v4022_v36 }
 0x36e   : > { %v2981_v29 = vadd.f32 %v6508_v32, %v2938_v2  ;;  %v3106_v20 = vpop.f32.mrf.mxu1  ;;  %v4031_v32 = vld [vmem:[%s6785_s5 + $0xc0] sm:$0xff] }
 0x36f   : > { %3328 = vmatpush.msra.mxu3 %v4031_v32  ;;  %v3394_v32 = vld [vmem:[%s6789_s9 + $0x50] sm:$0xf] }
 0x370   : > { %v3024_v22 = vadd.f32 %v6514_v23, %v2981_v29  ;;  %4041 = vmatpush.msk.msra.mxu1 %vm612_vm0, %v3394_v32 }
 0x371   : > { %v6522_v1 = vpop.f32.mrf.mxu3 }
 0x372   : > { %v3136_v44 = vpop.f32.mrf.mxu2 }
 0x373   : > { %v6526_v50 = vpop.f32.mrf.mxu0 }
 0x374   : > { %v2939_v46 = vadd.f32 %v6526_v50, %v2891_v47  ;;  %v2894_v50 = vadd.f32 %v6516_v45, %v6492_v13  ;;  %v2897_v45 = vadd.f32 %v6522_v1, %v6502_v4  ;;  %v3347_v47 = vld [vmem:[%s6787_s7 + $0x38] sm:$0xff] }
 0x376   : > { %v2982_v12 = vadd.f32 %v6520_v55, %v2939_v46  ;;  %v3109_v48 = vpop.f32.mrf.mxu1  ;;  %v3342_v46 = vld [vmem:[%s6787_s7 + $0x10] sm:$0xff] }
 0x378   : > { %v3025_v16 = vadd.f32 %v6524_v11, %v2982_v12  ;;  %v3388_v12 = vld [vmem:[%s6789_s9 + $0x20] sm:$0xff] }
 0x379   : > { %v3045_v41 = vpop.f32.mrf.mxu3 }
 0x37a   : > { %v3139_v60 = vpop.f32.mrf.mxu2 }
 0x37b   : > { %v6539_v59 = vpop.f32.mrf.mxu0 }
 0x37c   : > { %v2940_v54 = vadd.f32 %v6539_v59, %v2894_v50 }
 0x37e   : > { %v3112_v26 = vpop.f32.mrf.mxu1 }
 0x381   : > { %v3048_v63 = vpop.f32.mrf.mxu3 }
 0x382   : > { %v3142_v17 = vpop.f32.mrf.mxu2 }
 0x383   : > { %v6575_v0 = vpop.f32.mrf.mxu0 }
 0x389   : > { %v3051_v14 = vpop.f32.mrf.mxu3 }
 0x38b   : > { %v3074_v39 = vpop.f32.mrf.mxu0 }
 0x38c   : > { %v3075_v15 = vadd.f32 %v3074_v39, %v3045_v41 }
 0x38e   : > { %v3115_v41 = vadd.f32 %v3103_v58, %v3075_v15 }
 0x390   : > { %v3148_v51 = vadd.f32 %v3136_v44, %v3115_v41  ;;  %v2941_v44 = vadd.f32 %v6575_v0, %v2897_v45 }
 0x391   : > { %v3054_v49 = vpop.f32.mrf.mxu3 }
 0x392   : > { %v2984_v33 = vadd.f32 %v6573_v30, %v2941_v44 }
 0x393   : > { %v3077_v35 = vpop.f32.mrf.mxu0 }
 0x394   : > { %v3078_v37 = vadd.f32 %v3077_v35, %v3048_v63  ;;  %v4080_v63 = vld [vmem:[%s6784_s4] ss:$0 sm:$0xff]  ;;  %v3027_v36 = vadd.f32 %v6589_v5, %v2984_v33 }
 0x395   : > { %v3348_v5 = vld [vmem:[%s6787_s7 + $0x40] sm:$0xff] }
 0x396   : > { %v3116_v53 = vadd.f32 %v3106_v20, %v3078_v37  ;;  %v3346_v37 = vld [vmem:[%s6787_s7 + $0x30] sm:$0xff] }
 0x398   : > { %v3149_v24 = vadd.f32 %v3139_v60, %v3116_v53  ;;  %v3393_v60 = vld [vmem:[%s6789_s9 + $0x48] sm:$0xff]  ;;  %v3391_v53 = vld [vmem:[%s6789_s9 + $0x38] sm:$0xff] }
 0x399   : > { %v3169_v31 = vpop.f32.mrf.mxu3  ;;  %3412 = vmatpush.msra.mxu1 %v3393_v60 }
 0x39a   : > { %v3181_v18 = vadd.f32 %v3169_v31, %v3148_v51  ;;  %v3345_v51 = vld [vmem:[%s6787_s7 + $0x28] sm:$0xff]  ;;  %v3344_v31 = vld [vmem:[%s6787_s7 + $0x20] sm:$0xff] }
 0x39b   : > { %v3080_v21 = vpop.f32.mrf.mxu0 }
 0x39c   : > { %v3185_v19 = vmax.f32 %v3024_v22, %v3181_v18  ;;  %v3081_v43 = vadd.f32 %v3080_v21, %v3051_v14  ;;  %v3341_v22 = vld [vmem:[%s6787_s7 + $0x8] sm:$0xff]  ;;  %v3340_v18 = vld [vmem:[%s6787_s7] sm:$0xff] }
 0x39d   : > { %v3392_v21 = vld [vmem:[%s6789_s9 + $0x40] sm:$0xff] }
 0x39e   : > { %v3189_v23 = vmax.f32 %v2817_v34, %v3185_v19  ;;  %v3117_v55 = vadd.f32 %v3109_v48, %v3081_v43  ;;  %v2983_v34 = vadd.f32 %v6534_v56, %v2940_v54  ;;  %3413 = vmatpush.msra.mxu1 %v3392_v21  ;;  %v3390_v19 = vld [vmem:[%s6789_s9 + $0x30] sm:$0xff] }
 0x3a0   : > { %v3196_v8 = vadd.f32 %v4080_v63, %v3189_v23  ;;  %v3150_v15 = vadd.f32 %v3142_v17, %v3117_v55  ;;  %v3026_v2 = vadd.f32 %v6544_v25, %v2983_v34  ;;  %3414 = vmatpush.msra.mxu1 %v3391_v53  ;;  %v3387_v23 = vld [vmem:[%s6789_s9 + $0x18] sm:$0xff]  ;;  %v3386_v55 = vld [vmem:[%s6789_s9 + $0x10] sm:$0xff]  ;;  %v3384_v17 = vld [vmem:[%s6789_s9] sm:$0xff] }
 0x3a1   : > { %v3172_v39 = vpop.f32.mrf.mxu3 }
 0x3a2   : > { %v3200_v58 = vmax.f32 %v3196_v8, 0.0  ;;  %v3182_v7 = vadd.f32 %v3172_v39, %v3149_v24  ;;  %3415 = vmatpush.msra.mxu1 %v3390_v19  ;;  %v4081_v39 = vld [vmem:[%s6786_s6] ss:$0 sm:$0xff] }
 0x3a3   : > { %v3083_v28 = vpop.f32.mrf.mxu0 }
 0x3a4   : > { %v3186_v40 = vmax.f32 %v3025_v16, %v3182_v7  ;;  %4021 = vmatmul.msk.f32.vlgmr.msrb.gmra.mxu1 %vm3221_vm3, %v3200_v58  ;;  %v3084_v14 = vadd.f32 %v3083_v28, %v3054_v49  ;;  %v4082_v28 = vld [vmem:[%s6788_s8] ss:$0 sm:$0xff] }
 0x3a6   : > { %v3190_v13 = vmax.f32 %v2818_v38, %v3186_v40  ;;  %v3118_v35 = vadd.f32 %v3112_v26, %v3084_v14  ;;  %v3145_v38 = vpop.f32.mrf.mxu2  ;;  %v3385_v40 = vld [vmem:[%s6789_s9 + $0x8] sm:$0xff] }
 0x3a8   : > { %v3197_v59 = vadd.f32 %v4080_v63, %v3190_v13  ;;  %v3151_v1 = vadd.f32 %v3145_v38, %v3118_v35 }
 0x3a9   : > { %v3175_v11 = vpop.f32.mrf.mxu3 }
 0x3aa   : > { %v3201_v52 = vmax.f32 %v3197_v59, 0.0  ;;  %v3183_v27 = vadd.f32 %v3175_v11, %v3150_v15  ;;  %v4083_v59 = vld [vmem:[%s6790_s10] ss:$0 sm:$0xff] }
 0x3ac   : > { %v3187_v56 = vmax.f32 %v3026_v2, %v3183_v27  ;;  %4020 = vmatmul.msk.f32.vlgmr.msrb.gmra.mxu0 %vm3221_vm3, %v3201_v52 }
 0x3ae   : > { %v3191_v9 = vmax.f32 %v2819_v10, %v3187_v56  ;;  %v3352_v10 = vld [vmem:[%s6787_s7 + $0x60] sm:$0xff] }
 0x3af   : > { %3366 = vmatpush.msra.mxu0 %v3352_v10 }
 0x3b0   : > { %v3198_v4 = vadd.f32 %v4080_v63, %v3191_v9 }
 0x3b1   : > { %v3178_v49 = vpop.f32.mrf.mxu3  ;;  %3367 = vmatpush.msra.mxu0 %v3351_v6 }
 0x3b2   : > { %v3202_v0 = vmax.f32 %v3198_v4, 0.0  ;;  %v3184_v25 = vadd.f32 %v3178_v49, %v3151_v1 }
 0x3b3   : > { %3368 = vmatpush.msra.mxu0 %v3350_v62 }
 0x3b4   : > { %v3188_v41 = vmax.f32 %v3027_v36, %v3184_v25  ;;  %4030 = vmatmul.msk.f32.vlgmr.msra.gmra.mxu2 %vm3221_vm3, %v3202_v0 }
 0x3b6   : > { %v3192_v29 = vmax.f32 %v2820_v57, %v3188_v41  ;;  %v3349_v57 = vld [vmem:[%s6787_s7 + $0x48] sm:$0xff] }
 0x3b7   : > { %3369 = vmatpush.msra.mxu0 %v3349_v57 }
 0x3b8   : > { %v3199_v30 = vadd.f32 %v4080_v63, %v3192_v29  ;;  %v3389_v63 = vld [vmem:[%s6789_s9 + $0x28] sm:$0xff] }
 0x3b9   : > { %3370 = vmatpush.msra.mxu0 %v3348_v5  ;;  %3416 = vmatpush.msra.mxu1 %v3389_v63 }
 0x3ba   : > { %v3203_v20 = vmax.f32 %v3199_v30, 0.0 }
 0x3bb   : > { %3371 = vmatpush.msra.mxu0 %v3347_v47  ;;  %3417 = vmatpush.msra.mxu1 %v3388_v12 }
 0x3bc   : > { %4039 = vmatmul.msk.f32.vlgmr.msra.gmra.mxu3 %vm3221_vm3, %v3203_v20 }
 0x3bd   : > { %3372 = vmatpush.msra.mxu0 %v3346_v37  ;;  %3418 = vmatpush.msra.mxu1 %v3387_v23 }
 0x3bf   : > { %3373 = vmatpush.msra.mxu0 %v3345_v51  ;;  %3419 = vmatpush.msra.mxu1 %v3386_v55 }
 0x3c1   : > { %3374 = vmatpush.msra.mxu0 %v3344_v31  ;;  %3420 = vmatpush.msra.mxu1 %v3385_v40 }
 0x3c3   : > { %3375 = vmatpush.msra.mxu0 %v3343_v61  ;;  %3421 = vmatpush.msra.mxu1 %v3384_v17 }
 0x3c5   : > { %3376 = vmatpush.msra.mxu0 %v3342_v46 }
 0x3c7   : > { %3377 = vmatpush.msra.mxu0 %v3341_v22 }
 0x3c9   : > { %3378 = vmatpush.msra.mxu0 %v3340_v18 }
 0x421   : > { %v3265_v8 = vpop.f32.mrf.mxu1 }
 0x429   : > { %v3242_v50 = vpop.f32.mrf.mxu0 }
 0x42a   : > { %v3266_v24 = vadd.f32 %v3265_v8, %v3242_v50 }
 0x437   : > { %v3297_v43 = vpop.f32.mrf.mxu2 }
 0x438   : > { %v3300_v48 = vadd.f32 %v3297_v43, %v3266_v24 }
 0x43f   : > { %v3330_v54 = vpop.f32.mrf.mxu3 }
 0x440   : > { %v3333_v58 = vadd.f32 %v3330_v54, %v3300_v48 }
 0x442   : > { %v3338_v16 = vadd.f32 %v4081_v39, %v3333_v58 }
 0x444   : > { %v3339_v7 = vmax.f32 %v3338_v16, 0.0 }
 0x446   : > { %4040 = vmatmul.msk.f32.vlgmr.msra.gmra.mxu0 %vm3359_vm4, %v3339_v7 }
 0x4c3   : > { %v3380_v34 = vpop.f32.mrf.mxu0 }
 0x4c4   : > { %v3381_v13 = vadd.f32 %v4082_v28, %v3380_v34 }
 0x4c6   : > { %v3383_v45 = vmax.f32 %v3381_v13, 0.0 }
 0x4c8   : > { %4042 = vmatmul.msk.f32.vlgmr.msra.gmra.mxu1 %vm3399_vm5, %v3383_v45 }
 0x545   : > { %v3423_v14 = vpop.f32.mrf.mxu1 }
 0x546   : > { %v3424_v15 = vadd.f32 %v4083_v59, %v3423_v14 }
 0x548   : > { %3426 = vst [vmem:[%s527_s27] sm:$0xff] %v3424_v15 }
 0x549 PF: > { %p18_p9 = scmp.ge.s32.totalorder %s4209_s21, 4   ;;  %s6954_s17 = smov %s4126_s18 }
 0x54a   : > { %s6955_s18 = smov %s4218_s24  ;;  %s6956_s19 = smov %s4209_s21 }
 0x54b   :  { %20 = sbr.rel (!%p18_p9) target bundleno = 2 (0x2), region = 165 }

</bundles_post_ra>
